<compile_context>
chip_gen: v5e
topology: v5e:2x2
jax: 0.10.0
libtpu: 0.0.40
codegen_flags: <defaults>
</compile_context>

<pallas_src>
import functools

import jax
import jax.numpy as jnp
from jax.experimental import pallas as pl
from jax.experimental.pallas import tpu as pltpu

EPS = 1e-5
TM_TARGET = 512                      # row-tile size (multiple of 16 for bf16 sublane packing)
VMEM_LIMIT = 32 * 1024 * 1024        # safe on v5e/v6e (128 MiB) and v7x (64 MiB)


def _round_up(x, m):
    return ((x + m - 1) // m) * m


# ----------------------------- fused per-module kernel -----------------------------

def fused_module_kernel(x_ref, w_ref, gamma_ref, beta_ref, o_ref,
                        sum_ref, sumsq_ref, scale_ref, shift_ref,
                        *, kk, coutp, inv_count, activation):
    """Two-phase kernel: phase 0 accumulates BN stats, phase 1 applies BN affine + activation.

    grid = (2, n_tiles).  Columns of w / o are ordered (a, b, co) with co zero-padded to
    `coutp`, so the k*k groups of one output channel are contiguous blocks of `coutp` lanes.
    """
    phase = pl.program_id(0)
    tile = pl.program_id(1)
    n_tiles = pl.num_programs(1)

    @pl.when((phase == 0) & (tile == 0))
    def _init():
        sum_ref[...] = jnp.zeros_like(sum_ref)
        sumsq_ref[...] = jnp.zeros_like(sumsq_ref)

    # bf16 operands, f32 accumulation on the MXU.
    conv = jnp.dot(x_ref[...], w_ref[...], preferred_element_type=jnp.float32)

    @pl.when(phase == 0)
    def _accumulate():
        sum_ref[...] += jnp.sum(conv, axis=0, keepdims=True)
        sumsq_ref[...] += jnp.sum(conv * conv, axis=0, keepdims=True)

    @pl.when((phase == 0) & (tile == n_tiles - 1))
    def _finalize_stats():
        # Fold the k*k column groups of each channel into per-channel statistics (runs once).
        s_all = sum_ref[...]
        ss_all = sumsq_ref[...]
        s = s_all[:, 0:coutp]
        ss = ss_all[:, 0:coutp]
        for g in range(1, kk):
            s = s + s_all[:, g * coutp:(g + 1) * coutp]
            ss = ss + ss_all[:, g * coutp:(g + 1) * coutp]
        mean = s * inv_count
        # TODO(synk): E[X^2]-E[X]^2 in f32 can cancel badly at production batch sizes;
        # switch to a Welford / compensated update if that regime matters.
        var = jnp.maximum(ss * inv_count - mean * mean, 0.0)      # biased variance, f32
        sc = gamma_ref[...] * jax.lax.rsqrt(var + EPS)
        sh = beta_ref[...] - mean * sc
        scale_ref[...] = jnp.concatenate([sc] * kk, axis=1) if kk > 1 else sc
        shift_ref[...] = jnp.concatenate([sh] * kk, axis=1) if kk > 1 else sh

    @pl.when(phase == 1)
    def _apply():
        y = conv * scale_ref[...] + shift_ref[...]                # fused BN affine (2 VPU ops)
        if activation == "relu":
            y = jnp.maximum(y, 0.0)
        else:  # "sigmoid"
            y = jax.nn.sigmoid(y)
        o_ref[...] = y.astype(o_ref.dtype)


# ----------------------------- module wrapper -----------------------------

def decoder_module_pallas(x_flat, weight, gamma, beta, stride, activation="relu",
                          out_dtype=jnp.bfloat16):
    """One DecoderModule.

    x_flat : [M, Cin]  rows ordered (n, h, w) (NHWC-flat); any float dtype (cast to bf16).
    weight : [Cin, Cout, k, k]  (PyTorch ConvTranspose2d layout), k == stride.
    returns: ([M, kk*Coutp] out_dtype, columns ordered (a, b, co) with co padded to Coutp, Coutp)
    """
    M, Cin = x_flat.shape
    Cout = weight.shape[1]
    k = stride
    kk = k * k

    # Pad Cout so kk*Coutp is a lane multiple -> lane-dense stores + aligned group slices.
    coutp = _round_up(Cout, 128 // kk) if 128 % kk == 0 else _round_up(Cout, 128)
    ncp = kk * coutp

    tm = min(TM_TARGET, _round_up(M, 16))
    mp = _round_up(M, tm)
    n_tiles = mp // tm

    # Weight matrix, columns ordered (a, b, co) with co zero-padded to coutp; bf16 MXU operand.
    w_p = jnp.zeros((Cin, k, k, coutp), jnp.bfloat16)
    w_p = w_p.at[:, :, :, :Cout].set(jnp.transpose(weight, (0, 2, 3, 1)).astype(jnp.bfloat16))
    w_p = w_p.reshape(Cin, ncp)

    # The contraction dim (Cin) is never padded; only rows are padded to the tile size.
    # Zero rows contribute nothing to the statistics since no bias is added inside the kernel.
    x_b = x_flat.astype(jnp.bfloat16)
    if mp != M:
        x_b = jnp.zeros((mp, Cin), jnp.bfloat16).at[:M].set(x_b)

    gamma_p = jnp.zeros((1, coutp), jnp.float32).at[0, :Cout].set(gamma.astype(jnp.float32))
    beta_p = jnp.zeros((1, coutp), jnp.float32).at[0, :Cout].set(beta.astype(jnp.float32))

    kernel = functools.partial(fused_module_kernel, kk=kk, coutp=coutp,
                               inv_count=1.0 / float(M * kk), activation=activation)

    out_p = pl.pallas_call(
        kernel,
        out_shape=jax.ShapeDtypeStruct((mp, ncp), out_dtype),
        grid=(2, n_tiles),
        in_specs=[pl.BlockSpec((tm, Cin), lambda p, i: (i, 0)),
                  pl.BlockSpec((Cin, ncp), lambda p, i: (0, 0)),
                  pl.BlockSpec((1, coutp), lambda p, i: (0, 0)),
                  pl.BlockSpec((1, coutp), lambda p, i: (0, 0))],
        out_specs=pl.BlockSpec((tm, ncp), lambda p, i: (i, 0)),
        scratch_shapes=[pltpu.VMEM((1, ncp), jnp.float32),   # per-column sum
                        pltpu.VMEM((1, ncp), jnp.float32),   # per-column sum of squares
                        pltpu.VMEM((1, ncp), jnp.float32),   # fused BN scale
                        pltpu.VMEM((1, ncp), jnp.float32)],  # fused BN shift
        compiler_params=pltpu.CompilerParams(
            dimension_semantics=("arbitrary", "arbitrary"),
            vmem_limit_bytes=VMEM_LIMIT),
    )(x_b, w_p, gamma_p, beta_p)

    return out_p[:M], coutp


def _shuffle_to_next_input(out_cols, N, H, W, Cout, coutp, k):
    """[N*H*W, k*k*coutp] (rows (n,h,w), cols (a,b,co)) -> [N*(H*k)*(W*k), Cout] NHWC-flat."""
    y = out_cols.reshape(N, H, W, k, k, coutp)
    y = jnp.transpose(y, (0, 1, 3, 2, 4, 5))      # N, H, a, W, b, co  (no-op for k == 1)
    y = y.reshape(N * H * k * W * k, coutp)
    return y[:, :Cout] if coutp != Cout else y


def decoder_pallas(x, params, pooling_kernels, decoder_input_size):
    """Full Decoder forward.  params: 4 dicts with 'w' [Cin,Cout,k,k], 'gamma', 'beta' ('b' is
    unused: the ConvTranspose bias is cancelled exactly by training-mode BatchNorm centering)."""
    s = decoder_input_size
    x = x.reshape(-1, 256, s, s)
    N = x.shape[0]
    xf = jnp.transpose(x, (0, 2, 3, 1)).reshape(N * s * s, 256)
    H = W = s
    strides = (1, pooling_kernels[1], pooling_kernels[0], 1)     # m1, m2, m3, m4
    n_layers = len(params)
    Cout = 256
    # TODO(synk): all four modules could be fused into a single VMEM-resident pallas_call
    # (activations are < 1 MiB at these sizes), but that needs the pixel shuffle (6-D relayout)
    # inside the kernel; kept as one fused 2-phase kernel per module + XLA shuffle in between.
    for li, (p, k) in enumerate(zip(params, strides)):
        Cout = p["w"].shape[1]
        # Intermediates stay bf16 (the next layer's MXU operand dtype); final layer is f32.
        out_dtype = jnp.float32 if li == n_layers - 1 else jnp.bfloat16
        cols, coutp = decoder_module_pallas(xf, p["w"], p["gamma"], p["beta"], k,
                                            activation="relu", out_dtype=out_dtype)
        xf = _shuffle_to_next_input(cols, N, H, W, Cout, coutp, k)
        H, W = H * k, W * k
    return xf.reshape(N, H, W, Cout).transpose(0, 3, 1, 2)       # single final NCHW transpose


decoder_pallas_jit = jax.jit(decoder_pallas, static_argnums=(2, 3))


# ----------------------------- pure-JAX reference -----------------------------

def _ref_module(x, w, b, gamma, beta, k, activation="relu"):
    N, Cin, H, W = x.shape
    Cout = w.shape[1]
    # PyTorch ConvTranspose2d with kernel==stride, no padding:
    # out[n,co,i*k+a,j*k+b] = sum_ci x[n,ci,i,j] * w[ci,co,a,b] + bias[co]
    y = jnp.einsum("ncij,cdab->ndiajb", x, w).reshape(N, Cout, H * k, W * k)
    y = y + b[None, :, None, None]
    mean = y.mean(axis=(0, 2, 3), keepdims=True)
    var = ((y - mean) ** 2).mean(axis=(0, 2, 3), keepdims=True)
    y = (y - mean) * jax.lax.rsqrt(var + EPS)
    y = y * gamma[None, :, None, None] + beta[None, :, None, None]
    return jnp.maximum(y, 0.0) if activation == "relu" else jax.nn.sigmoid(y)


def decoder_reference(x, params, pooling_kernels, decoder_input_size):
    s = decoder_input_size
    out = x.reshape(-1, 256, s, s)
    strides = (1, pooling_kernels[1], pooling_kernels[0], 1)
    for p, k in zip(params, strides):
        out = _ref_module(out, p["w"], p["b"], p["gamma"], p["beta"], k)
    return out


# ----------------------------- test -----------------------------

if __name__ == "__main__":
    batch = 2
    color_channels = 3
    pooling_kernels = (2, 2)
    decoder_input_size = 4

    key = jax.random.PRNGKey(0)
    layer_dims = [(256, 128, 1),
                  (128, 64, pooling_kernels[1]),
                  (64, 32, pooling_kernels[0]),
                  (32, color_channels, 1)]
    params = []
    for (cin, cout, k) in layer_dims:
        key, kw, kb, kg, kbe = jax.random.split(key, 5)
        params.append(dict(
            w=0.1 * jax.random.normal(kw, (cin, cout, k, k), jnp.float32),
            b=0.1 * jax.random.normal(kb, (cout,), jnp.float32),
            gamma=1.0 + 0.1 * jax.random.normal(kg, (cout,), jnp.float32),
            beta=0.1 * jax.random.normal(kbe, (cout,), jnp.float32),
        ))

    key, kx = jax.random.split(key)
    x = jax.random.normal(kx, (batch, 256 * decoder_input_size * decoder_input_size),
                          dtype=jnp.float32)

    out = decoder_pallas_jit(x, params, pooling_kernels, decoder_input_size)
    out = jax.block_until_ready(out)

    ref = jax.block_until_ready(
        decoder_reference(x, params, pooling_kernels, decoder_input_size))

    h_final = decoder_input_size * pooling_kernels[0] * pooling_kernels[1]
    assert out.shape == (batch, color_channels, h_final, h_final), out.shape
    # bf16 MXU operands + bf16 intermediate activations vs. the f32 reference: a few 1e-2 of
    # error per normalized layer; a layout/semantics bug would show up as O(1) error.
    max_err = float(jnp.max(jnp.abs(out - ref)))
    assert max_err < 1.5e-1, f"max abs err {max_err}"
    print("KERNEL_OK")
</pallas_src>

<mosaic_0001>
module attributes {stable_mosaic.version = 11 : i64} {
  func.func @fused_module_kernel(%arg0: i32, %arg1: i32, %arg2: memref<32x256xbf16, #tpu.memory_space<vmem>>, %arg3: memref<256x128xbf16, #tpu.memory_space<vmem>>, %arg4: memref<1x128xf32, #tpu.memory_space<vmem>>, %arg5: memref<1x128xf32, #tpu.memory_space<vmem>>, %arg6: memref<32x128xbf16, #tpu.memory_space<vmem>>, %arg7: memref<1x128xf32, #tpu.memory_space<vmem>>, %arg8: memref<1x128xf32, #tpu.memory_space<vmem>>, %arg9: memref<1x128xf32, #tpu.memory_space<vmem>>, %arg10: memref<1x128xf32, #tpu.memory_space<vmem>>) attributes {dimension_semantics = [#tpu.dimension_semantics<arbitrary>, #tpu.dimension_semantics<arbitrary>], iteration_bounds = array<i64: 2, 1>, scalar_prefetch = 0 : i64, scratch_operands = 4 : i64, tpu.core_type = #tpu.core_type<tc>, window_params = [{transform_indices = @transform_0, window_bounds = array<i64: 32, 256>}, {pipeline_mode = #tpu.pipeline_mode<synchronous>, transform_indices = @transform_1, window_bounds = array<i64: 256, 128>}, {pipeline_mode = #tpu.pipeline_mode<synchronous>, transform_indices = @transform_2, window_bounds = array<i64: 1, 128>}, {pipeline_mode = #tpu.pipeline_mode<synchronous>, transform_indices = @transform_3, window_bounds = array<i64: 1, 128>}, {transform_indices = @transform_4, window_bounds = array<i64: 32, 128>}]} {
    %c0_i32 = arith.constant 0 : i32
    %0 = arith.cmpi eq, %arg0, %c0_i32 : i32
    %c0_i32_0 = arith.constant 0 : i32
    %1 = arith.cmpi eq, %arg1, %c0_i32_0 : i32
    %2 = arith.andi %0, %1 : i1
    %3 = arith.extui %2 : i1 to i32
    %c0_i32_1 = arith.constant 0 : i32
    %4 = arith.cmpi ne, %3, %c0_i32_1 : i32
    scf.if %4 {
      %cst_11 = arith.constant 0.000000e+00 : f32
      %19 = vector.broadcast %cst_11 : f32 to vector<1x128xf32>
      %c0_12 = arith.constant 0 : index
      %c0_13 = arith.constant 0 : index
      %20 = vector.load %arg7[%c0_12, %c0_13] : memref<1x128xf32, #tpu.memory_space<vmem>>, vector<1x128xf32>
      tpu.vector_store %arg7[%c0_12, %c0_13], %19 {strides = array<i32>} : memref<1x128xf32, #tpu.memory_space<vmem>>, vector<1x128xf32>,
      %cst_14 = arith.constant 0.000000e+00 : f32
      %21 = vector.broadcast %cst_14 : f32 to vector<1x128xf32>
      %c0_15 = arith.constant 0 : index
      %c0_16 = arith.constant 0 : index
      %22 = vector.load %arg8[%c0_15, %c0_16] : memref<1x128xf32, #tpu.memory_space<vmem>>, vector<1x128xf32>
      tpu.vector_store %arg8[%c0_15, %c0_16], %21 {strides = array<i32>} : memref<1x128xf32, #tpu.memory_space<vmem>>, vector<1x128xf32>,
    } else {
    }
    %c0 = arith.constant 0 : index
    %c0_2 = arith.constant 0 : index
    %5 = vector.load %arg2[%c0, %c0_2] : memref<32x256xbf16, #tpu.memory_space<vmem>>, vector<32x256xbf16>
    %c0_3 = arith.constant 0 : index
    %c0_4 = arith.constant 0 : index
    %6 = vector.load %arg3[%c0_3, %c0_4] : memref<256x128xbf16, #tpu.memory_space<vmem>>, vector<256x128xbf16>
    %cst = arith.constant dense<0.000000e+00> : vector<32x128xf32>
    %7 = tpu.matmul %5, %6, %cst {dimension_numbers = #tpu.dot_dimension_numbers<[1], [0], [0], [1], [0, 0, 1, 1], [], []>} : vector<32x256xbf16>, vector<256x128xbf16>, vector<32x128xf32> -> vector<32x128xf32>
    %c0_i32_5 = arith.constant 0 : i32
    %8 = arith.cmpi eq, %arg0, %c0_i32_5 : i32
    %9 = arith.extui %8 : i1 to i32
    %c0_i32_6 = arith.constant 0 : i32
    %10 = arith.cmpi ne, %9, %c0_i32_6 : i32
    scf.if %10 {
      %c0_11 = arith.constant 0 : index
      %c0_12 = arith.constant 0 : index
      %19 = vector.load %arg7[%c0_11, %c0_12] : memref<1x128xf32, #tpu.memory_space<vmem>>, vector<1x128xf32>
      %cst_13 = arith.constant dense<0.000000e+00> : vector<128xf32>
      %20 = vector.multi_reduction <add>, %7, %cst_13 [0] : vector<32x128xf32> to vector<128xf32>
      %21 = vector.shape_cast %20 : vector<128xf32> to vector<1x128xf32>
      %22 = arith.addf %19, %21 : vector<1x128xf32>
      %c0_14 = arith.constant 0 : index
      %c0_15 = arith.constant 0 : index
      %23 = vector.load %arg7[%c0_14, %c0_15] : memref<1x128xf32, #tpu.memory_space<vmem>>, vector<1x128xf32>
      tpu.vector_store %arg7[%c0_14, %c0_15], %22 {strides = array<i32>} : memref<1x128xf32, #tpu.memory_space<vmem>>, vector<1x128xf32>,
      %c0_16 = arith.constant 0 : index
      %c0_17 = arith.constant 0 : index
      %24 = vector.load %arg8[%c0_16, %c0_17] : memref<1x128xf32, #tpu.memory_space<vmem>>, vector<1x128xf32>
      %25 = arith.mulf %7, %7 : vector<32x128xf32>
      %cst_18 = arith.constant dense<0.000000e+00> : vector<128xf32>
      %26 = vector.multi_reduction <add>, %25, %cst_18 [0] : vector<32x128xf32> to vector<128xf32>
      %27 = vector.shape_cast %26 : vector<128xf32> to vector<1x128xf32>
      %28 = arith.addf %24, %27 : vector<1x128xf32>
      %c0_19 = arith.constant 0 : index
      %c0_20 = arith.constant 0 : index
      %29 = vector.load %arg8[%c0_19, %c0_20] : memref<1x128xf32, #tpu.memory_space<vmem>>, vector<1x128xf32>
      tpu.vector_store %arg8[%c0_19, %c0_20], %28 {strides = array<i32>} : memref<1x128xf32, #tpu.memory_space<vmem>>, vector<1x128xf32>,
    } else {
    }
    %c0_i32_7 = arith.constant 0 : i32
    %11 = arith.cmpi eq, %arg0, %c0_i32_7 : i32
    %c0_i32_8 = arith.constant 0 : i32
    %12 = arith.cmpi eq, %arg1, %c0_i32_8 : i32
    %13 = arith.andi %11, %12 : i1
    %14 = arith.extui %13 : i1 to i32
    %c0_i32_9 = arith.constant 0 : i32
    %15 = arith.cmpi ne, %14, %c0_i32_9 : i32
    scf.if %15 {
      %c0_11 = arith.constant 0 : index
      %c0_12 = arith.constant 0 : index
      %19 = vector.load %arg7[%c0_11, %c0_12] : memref<1x128xf32, #tpu.memory_space<vmem>>, vector<1x128xf32>
      %c0_13 = arith.constant 0 : index
      %c0_14 = arith.constant 0 : index
      %20 = vector.load %arg8[%c0_13, %c0_14] : memref<1x128xf32, #tpu.memory_space<vmem>>, vector<1x128xf32>
      %cst_15 = arith.constant 3.125000e-02 : f32
      %21 = vector.broadcast %cst_15 : f32 to vector<1x128xf32>
      %22 = arith.mulf %19, %21 : vector<1x128xf32>
      %cst_16 = arith.constant 3.125000e-02 : f32
      %23 = vector.broadcast %cst_16 : f32 to vector<1x128xf32>
      %24 = arith.mulf %20, %23 : vector<1x128xf32>
      %25 = arith.mulf %22, %22 : vector<1x128xf32>
      %26 = arith.subf %24, %25 : vector<1x128xf32>
      %cst_17 = arith.constant 0.000000e+00 : f32
      %27 = vector.broadcast %cst_17 : f32 to vector<1x128xf32>
      %28 = arith.maximumf %26, %27 : vector<1x128xf32>
      %c0_18 = arith.constant 0 : index
      %c0_19 = arith.constant 0 : index
      %29 = vector.load %arg4[%c0_18, %c0_19] : memref<1x128xf32, #tpu.memory_space<vmem>>, vector<1x128xf32>
      %cst_20 = arith.constant 9.99999974E-6 : f32
      %30 = vector.broadcast %cst_20 : f32 to vector<1x128xf32>
      %31 = arith.addf %28, %30 : vector<1x128xf32>
      %32 = math.rsqrt %31 : vector<1x128xf32>
      %33 = arith.mulf %29, %32 : vector<1x128xf32>
      %c0_21 = arith.constant 0 : index
      %c0_22 = arith.constant 0 : index
      %34 = vector.load %arg5[%c0_21, %c0_22] : memref<1x128xf32, #tpu.memory_space<vmem>>, vector<1x128xf32>
      %35 = arith.mulf %22, %33 : vector<1x128xf32>
      %36 = arith.subf %34, %35 : vector<1x128xf32>
      %c0_23 = arith.constant 0 : index
      %c0_24 = arith.constant 0 : index
      %37 = vector.load %arg9[%c0_23, %c0_24] : memref<1x128xf32, #tpu.memory_space<vmem>>, vector<1x128xf32>
      tpu.vector_store %arg9[%c0_23, %c0_24], %33 {strides = array<i32>} : memref<1x128xf32, #tpu.memory_space<vmem>>, vector<1x128xf32>,
      %c0_25 = arith.constant 0 : index
      %c0_26 = arith.constant 0 : index
      %38 = vector.load %arg10[%c0_25, %c0_26] : memref<1x128xf32, #tpu.memory_space<vmem>>, vector<1x128xf32>
      tpu.vector_store %arg10[%c0_25, %c0_26], %36 {strides = array<i32>} : memref<1x128xf32, #tpu.memory_space<vmem>>, vector<1x128xf32>,
    } else {
    }
    %c1_i32 = arith.constant 1 : i32
    %16 = arith.cmpi eq, %arg0, %c1_i32 : i32
    %17 = arith.extui %16 : i1 to i32
    %c0_i32_10 = arith.constant 0 : i32
    %18 = arith.cmpi ne, %17, %c0_i32_10 : i32
    scf.if %18 {
      %c0_11 = arith.constant 0 : index
      %c0_12 = arith.constant 0 : index
      %19 = vector.load %arg9[%c0_11, %c0_12] : memref<1x128xf32, #tpu.memory_space<vmem>>, vector<1x128xf32>
      %20 = vector.broadcast %19 : vector<1x128xf32> to vector<32x128xf32>
      %21 = arith.mulf %7, %20 : vector<32x128xf32>
      %c0_13 = arith.constant 0 : index
      %c0_14 = arith.constant 0 : index
      %22 = vector.load %arg10[%c0_13, %c0_14] : memref<1x128xf32, #tpu.memory_space<vmem>>, vector<1x128xf32>
      %23 = vector.broadcast %22 : vector<1x128xf32> to vector<32x128xf32>
      %24 = arith.addf %21, %23 : vector<32x128xf32>
      %cst_15 = arith.constant 0.000000e+00 : f32
      %25 = vector.broadcast %cst_15 : f32 to vector<32x128xf32>
      %26 = arith.maximumf %24, %25 : vector<32x128xf32>
      %27 = arith.truncf %26 : vector<32x128xf32> to vector<32x128xbf16>
      %c0_16 = arith.constant 0 : index
      %c0_17 = arith.constant 0 : index
      %28 = vector.load %arg6[%c0_16, %c0_17] : memref<32x128xbf16, #tpu.memory_space<vmem>>, vector<32x128xbf16>
      tpu.vector_store %arg6[%c0_16, %c0_17], %27 {strides = array<i32>} : memref<32x128xbf16, #tpu.memory_space<vmem>>, vector<32x128xbf16>,
    } else {
    }
    return
  }
  func.func @transform_0(%arg0: i32, %arg1: i32) -> (i32, i32) {
    %c0_i32 = arith.constant 0 : i32
    %c0_i32_0 = arith.constant 0 : i32
    return %arg1, %c0_i32 : i32, i32
  }
  func.func @transform_1(%arg0: i32, %arg1: i32) -> (i32, i32) {
    %c0_i32 = arith.constant 0 : i32
    %c0_i32_0 = arith.constant 0 : i32
    %c0_i32_1 = arith.constant 0 : i32
    return %c0_i32, %c0_i32_0 : i32, i32
  }
  func.func @transform_2(%arg0: i32, %arg1: i32) -> (i32, i32) {
    %c0_i32 = arith.constant 0 : i32
    %c0_i32_0 = arith.constant 0 : i32
    %c0_i32_1 = arith.constant 0 : i32
    return %c0_i32, %c0_i32_0 : i32, i32
  }
  func.func @transform_3(%arg0: i32, %arg1: i32) -> (i32, i32) {
    %c0_i32 = arith.constant 0 : i32
    %c0_i32_0 = arith.constant 0 : i32
    %c0_i32_1 = arith.constant 0 : i32
    return %c0_i32, %c0_i32_0 : i32, i32
  }
  func.func @transform_4(%arg0: i32, %arg1: i32) -> (i32, i32) {
    %c0_i32 = arith.constant 0 : i32
    %c0_i32_0 = arith.constant 0 : i32
    return %arg1, %c0_i32 : i32, i32
  }
}

module attributes {stable_mosaic.version = 11 : i64} {
  func.func @fused_module_kernel(%arg0: i32, %arg1: i32, %arg2: memref<32x128xbf16, #tpu.memory_space<vmem>>, %arg3: memref<128x256xbf16, #tpu.memory_space<vmem>>, %arg4: memref<1x64xf32, #tpu.memory_space<vmem>>, %arg5: memref<1x64xf32, #tpu.memory_space<vmem>>, %arg6: memref<32x256xbf16, #tpu.memory_space<vmem>>, %arg7: memref<1x256xf32, #tpu.memory_space<vmem>>, %arg8: memref<1x256xf32, #tpu.memory_space<vmem>>, %arg9: memref<1x256xf32, #tpu.memory_space<vmem>>, %arg10: memref<1x256xf32, #tpu.memory_space<vmem>>) attributes {dimension_semantics = [#tpu.dimension_semantics<arbitrary>, #tpu.dimension_semantics<arbitrary>], iteration_bounds = array<i64: 2, 1>, scalar_prefetch = 0 : i64, scratch_operands = 4 : i64, tpu.core_type = #tpu.core_type<tc>, window_params = [{transform_indices = @transform_0, window_bounds = array<i64: 32, 128>}, {pipeline_mode = #tpu.pipeline_mode<synchronous>, transform_indices = @transform_1, window_bounds = array<i64: 128, 256>}, {pipeline_mode = #tpu.pipeline_mode<synchronous>, transform_indices = @transform_2, window_bounds = array<i64: 1, 64>}, {pipeline_mode = #tpu.pipeline_mode<synchronous>, transform_indices = @transform_3, window_bounds = array<i64: 1, 64>}, {transform_indices = @transform_4, window_bounds = array<i64: 32, 256>}]} {
    %c0_i32 = arith.constant 0 : i32
    %0 = arith.cmpi eq, %arg0, %c0_i32 : i32
    %c0_i32_0 = arith.constant 0 : i32
    %1 = arith.cmpi eq, %arg1, %c0_i32_0 : i32
    %2 = arith.andi %0, %1 : i1
    %3 = arith.extui %2 : i1 to i32
    %c0_i32_1 = arith.constant 0 : i32
    %4 = arith.cmpi ne, %3, %c0_i32_1 : i32
    scf.if %4 {
      %cst_11 = arith.constant 0.000000e+00 : f32
      %19 = vector.broadcast %cst_11 : f32 to vector<1x256xf32>
      %c0_12 = arith.constant 0 : index
      %c0_13 = arith.constant 0 : index
      %20 = vector.load %arg7[%c0_12, %c0_13] : memref<1x256xf32, #tpu.memory_space<vmem>>, vector<1x256xf32>
      tpu.vector_store %arg7[%c0_12, %c0_13], %19 {strides = array<i32>} : memref<1x256xf32, #tpu.memory_space<vmem>>, vector<1x256xf32>,
      %cst_14 = arith.constant 0.000000e+00 : f32
      %21 = vector.broadcast %cst_14 : f32 to vector<1x256xf32>
      %c0_15 = arith.constant 0 : index
      %c0_16 = arith.constant 0 : index
      %22 = vector.load %arg8[%c0_15, %c0_16] : memref<1x256xf32, #tpu.memory_space<vmem>>, vector<1x256xf32>
      tpu.vector_store %arg8[%c0_15, %c0_16], %21 {strides = array<i32>} : memref<1x256xf32, #tpu.memory_space<vmem>>, vector<1x256xf32>,
    } else {
    }
    %c0 = arith.constant 0 : index
    %c0_2 = arith.constant 0 : index
    %5 = vector.load %arg2[%c0, %c0_2] : memref<32x128xbf16, #tpu.memory_space<vmem>>, vector<32x128xbf16>
    %c0_3 = arith.constant 0 : index
    %c0_4 = arith.constant 0 : index
    %6 = vector.load %arg3[%c0_3, %c0_4] : memref<128x256xbf16, #tpu.memory_space<vmem>>, vector<128x256xbf16>
    %cst = arith.constant dense<0.000000e+00> : vector<32x256xf32>
    %7 = tpu.matmul %5, %6, %cst {dimension_numbers = #tpu.dot_dimension_numbers<[1], [0], [0], [1], [0, 0, 1, 1], [], []>} : vector<32x128xbf16>, vector<128x256xbf16>, vector<32x256xf32> -> vector<32x256xf32>
    %c0_i32_5 = arith.constant 0 : i32
    %8 = arith.cmpi eq, %arg0, %c0_i32_5 : i32
    %9 = arith.extui %8 : i1 to i32
    %c0_i32_6 = arith.constant 0 : i32
    %10 = arith.cmpi ne, %9, %c0_i32_6 : i32
    scf.if %10 {
      %c0_11 = arith.constant 0 : index
      %c0_12 = arith.constant 0 : index
      %19 = vector.load %arg7[%c0_11, %c0_12] : memref<1x256xf32, #tpu.memory_space<vmem>>, vector<1x256xf32>
      %cst_13 = arith.constant dense<0.000000e+00> : vector<256xf32>
      %20 = vector.multi_reduction <add>, %7, %cst_13 [0] : vector<32x256xf32> to vector<256xf32>
      %21 = vector.shape_cast %20 : vector<256xf32> to vector<1x256xf32>
      %22 = arith.addf %19, %21 : vector<1x256xf32>
      %c0_14 = arith.constant 0 : index
      %c0_15 = arith.constant 0 : index
      %23 = vector.load %arg7[%c0_14, %c0_15] : memref<1x256xf32, #tpu.memory_space<vmem>>, vector<1x256xf32>
      tpu.vector_store %arg7[%c0_14, %c0_15], %22 {strides = array<i32>} : memref<1x256xf32, #tpu.memory_space<vmem>>, vector<1x256xf32>,
      %c0_16 = arith.constant 0 : index
      %c0_17 = arith.constant 0 : index
      %24 = vector.load %arg8[%c0_16, %c0_17] : memref<1x256xf32, #tpu.memory_space<vmem>>, vector<1x256xf32>
      %25 = arith.mulf %7, %7 : vector<32x256xf32>
      %cst_18 = arith.constant dense<0.000000e+00> : vector<256xf32>
      %26 = vector.multi_reduction <add>, %25, %cst_18 [0] : vector<32x256xf32> to vector<256xf32>
      %27 = vector.shape_cast %26 : vector<256xf32> to vector<1x256xf32>
      %28 = arith.addf %24, %27 : vector<1x256xf32>
      %c0_19 = arith.constant 0 : index
      %c0_20 = arith.constant 0 : index
      %29 = vector.load %arg8[%c0_19, %c0_20] : memref<1x256xf32, #tpu.memory_space<vmem>>, vector<1x256xf32>
      tpu.vector_store %arg8[%c0_19, %c0_20], %28 {strides = array<i32>} : memref<1x256xf32, #tpu.memory_space<vmem>>, vector<1x256xf32>,
    } else {
    }
    %c0_i32_7 = arith.constant 0 : i32
    %11 = arith.cmpi eq, %arg0, %c0_i32_7 : i32
    %c0_i32_8 = arith.constant 0 : i32
    %12 = arith.cmpi eq, %arg1, %c0_i32_8 : i32
    %13 = arith.andi %11, %12 : i1
    %14 = arith.extui %13 : i1 to i32
    %c0_i32_9 = arith.constant 0 : i32
    %15 = arith.cmpi ne, %14, %c0_i32_9 : i32
    scf.if %15 {
      %c0_11 = arith.constant 0 : index
      %c0_12 = arith.constant 0 : index
      %19 = vector.load %arg7[%c0_11, %c0_12] : memref<1x256xf32, #tpu.memory_space<vmem>>, vector<1x256xf32>
      %c0_13 = arith.constant 0 : index
      %c0_14 = arith.constant 0 : index
      %20 = vector.load %arg8[%c0_13, %c0_14] : memref<1x256xf32, #tpu.memory_space<vmem>>, vector<1x256xf32>
      %21 = vector.extract_strided_slice %19 {offsets = [0, 0], sizes = [1, 64], strides = [1, 1]} : vector<1x256xf32> to vector<1x64xf32>
      %22 = vector.extract_strided_slice %20 {offsets = [0, 0], sizes = [1, 64], strides = [1, 1]} : vector<1x256xf32> to vector<1x64xf32>
      %23 = vector.extract_strided_slice %19 {offsets = [0, 64], sizes = [1, 64], strides = [1, 1]} : vector<1x256xf32> to vector<1x64xf32>
      %24 = arith.addf %21, %23 : vector<1x64xf32>
      %25 = vector.extract_strided_slice %20 {offsets = [0, 64], sizes = [1, 64], strides = [1, 1]} : vector<1x256xf32> to vector<1x64xf32>
      %26 = arith.addf %22, %25 : vector<1x64xf32>
      %27 = vector.extract_strided_slice %19 {offsets = [0, 128], sizes = [1, 64], strides = [1, 1]} : vector<1x256xf32> to vector<1x64xf32>
      %28 = arith.addf %24, %27 : vector<1x64xf32>
      %29 = vector.extract_strided_slice %20 {offsets = [0, 128], sizes = [1, 64], strides = [1, 1]} : vector<1x256xf32> to vector<1x64xf32>
      %30 = arith.addf %26, %29 : vector<1x64xf32>
      %31 = vector.extract_strided_slice %19 {offsets = [0, 192], sizes = [1, 64], strides = [1, 1]} : vector<1x256xf32> to vector<1x64xf32>
      %32 = arith.addf %28, %31 : vector<1x64xf32>
      %33 = vector.extract_strided_slice %20 {offsets = [0, 192], sizes = [1, 64], strides = [1, 1]} : vector<1x256xf32> to vector<1x64xf32>
      %34 = arith.addf %30, %33 : vector<1x64xf32>
      %cst_15 = arith.constant 7.812500e-03 : f32
      %35 = vector.broadcast %cst_15 : f32 to vector<1x64xf32>
      %36 = arith.mulf %32, %35 : vector<1x64xf32>
      %cst_16 = arith.constant 7.812500e-03 : f32
      %37 = vector.broadcast %cst_16 : f32 to vector<1x64xf32>
      %38 = arith.mulf %34, %37 : vector<1x64xf32>
      %39 = arith.mulf %36, %36 : vector<1x64xf32>
      %40 = arith.subf %38, %39 : vector<1x64xf32>
      %cst_17 = arith.constant 0.000000e+00 : f32
      %41 = vector.broadcast %cst_17 : f32 to vector<1x64xf32>
      %42 = arith.maximumf %40, %41 : vector<1x64xf32>
      %c0_18 = arith.constant 0 : index
      %c0_19 = arith.constant 0 : index
      %43 = vector.load %arg4[%c0_18, %c0_19] : memref<1x64xf32, #tpu.memory_space<vmem>>, vector<1x64xf32>
      %cst_20 = arith.constant 9.99999974E-6 : f32
      %44 = vector.broadcast %cst_20 : f32 to vector<1x64xf32>
      %45 = arith.addf %42, %44 : vector<1x64xf32>
      %46 = math.rsqrt %45 : vector<1x64xf32>
      %47 = arith.mulf %43, %46 : vector<1x64xf32>
      %c0_21 = arith.constant 0 : index
      %c0_22 = arith.constant 0 : index
      %48 = vector.load %arg5[%c0_21, %c0_22] : memref<1x64xf32, #tpu.memory_space<vmem>>, vector<1x64xf32>
      %49 = arith.mulf %36, %47 : vector<1x64xf32>
      %50 = arith.subf %48, %49 : vector<1x64xf32>
      %51 = tpu.concatenate %47, %47, %47, %47 in 1 : vector<1x64xf32>, vector<1x64xf32>, vector<1x64xf32>, vector<1x64xf32> -> vector<1x256xf32>
      %c0_23 = arith.constant 0 : index
      %c0_24 = arith.constant 0 : index
      %52 = vector.load %arg9[%c0_23, %c0_24] : memref<1x256xf32, #tpu.memory_space<vmem>>, vector<1x256xf32>
      tpu.vector_store %arg9[%c0_23, %c0_24], %51 {strides = array<i32>} : memref<1x256xf32, #tpu.memory_space<vmem>>, vector<1x256xf32>,
      %53 = tpu.concatenate %50, %50, %50, %50 in 1 : vector<1x64xf32>, vector<1x64xf32>, vector<1x64xf32>, vector<1x64xf32> -> vector<1x256xf32>
      %c0_25 = arith.constant 0 : index
      %c0_26 = arith.constant 0 : index
      %54 = vector.load %arg10[%c0_25, %c0_26] : memref<1x256xf32, #tpu.memory_space<vmem>>, vector<1x256xf32>
      tpu.vector_store %arg10[%c0_25, %c0_26], %53 {strides = array<i32>} : memref<1x256xf32, #tpu.memory_space<vmem>>, vector<1x256xf32>,
    } else {
    }
    %c1_i32 = arith.constant 1 : i32
    %16 = arith.cmpi eq, %arg0, %c1_i32 : i32
    %17 = arith.extui %16 : i1 to i32
    %c0_i32_10 = arith.constant 0 : i32
    %18 = arith.cmpi ne, %17, %c0_i32_10 : i32
    scf.if %18 {
      %c0_11 = arith.constant 0 : index
      %c0_12 = arith.constant 0 : index
      %19 = vector.load %arg9[%c0_11, %c0_12] : memref<1x256xf32, #tpu.memory_space<vmem>>, vector<1x256xf32>
      %20 = vector.broadcast %19 : vector<1x256xf32> to vector<32x256xf32>
      %21 = arith.mulf %7, %20 : vector<32x256xf32>
      %c0_13 = arith.constant 0 : index
      %c0_14 = arith.constant 0 : index
      %22 = vector.load %arg10[%c0_13, %c0_14] : memref<1x256xf32, #tpu.memory_space<vmem>>, vector<1x256xf32>
      %23 = vector.broadcast %22 : vector<1x256xf32> to vector<32x256xf32>
      %24 = arith.addf %21, %23 : vector<32x256xf32>
      %cst_15 = arith.constant 0.000000e+00 : f32
      %25 = vector.broadcast %cst_15 : f32 to vector<32x256xf32>
      %26 = arith.maximumf %24, %25 : vector<32x256xf32>
      %27 = arith.truncf %26 : vector<32x256xf32> to vector<32x256xbf16>
      %c0_16 = arith.constant 0 : index
      %c0_17 = arith.constant 0 : index
      %28 = vector.load %arg6[%c0_16, %c0_17] : memref<32x256xbf16, #tpu.memory_space<vmem>>, vector<32x256xbf16>
      tpu.vector_store %arg6[%c0_16, %c0_17], %27 {strides = array<i32>} : memref<32x256xbf16, #tpu.memory_space<vmem>>, vector<32x256xbf16>,
    } else {
    }
    return
  }
  func.func @transform_0(%arg0: i32, %arg1: i32) -> (i32, i32) {
    %c0_i32 = arith.constant 0 : i32
    %c0_i32_0 = arith.constant 0 : i32
    return %arg1, %c0_i32 : i32, i32
  }
  func.func @transform_1(%arg0: i32, %arg1: i32) -> (i32, i32) {
    %c0_i32 = arith.constant 0 : i32
    %c0_i32_0 = arith.constant 0 : i32
    %c0_i32_1 = arith.constant 0 : i32
    return %c0_i32, %c0_i32_0 : i32, i32
  }
  func.func @transform_2(%arg0: i32, %arg1: i32) -> (i32, i32) {
    %c0_i32 = arith.constant 0 : i32
    %c0_i32_0 = arith.constant 0 : i32
    %c0_i32_1 = arith.constant 0 : i32
    return %c0_i32, %c0_i32_0 : i32, i32
  }
  func.func @transform_3(%arg0: i32, %arg1: i32) -> (i32, i32) {
    %c0_i32 = arith.constant 0 : i32
    %c0_i32_0 = arith.constant 0 : i32
    %c0_i32_1 = arith.constant 0 : i32
    return %c0_i32, %c0_i32_0 : i32, i32
  }
  func.func @transform_4(%arg0: i32, %arg1: i32) -> (i32, i32) {
    %c0_i32 = arith.constant 0 : i32
    %c0_i32_0 = arith.constant 0 : i32
    return %arg1, %c0_i32 : i32, i32
  }
}

module attributes {stable_mosaic.version = 11 : i64} {
  func.func @fused_module_kernel(%arg0: i32, %arg1: i32, %arg2: memref<128x64xbf16, #tpu.memory_space<vmem>>, %arg3: memref<64x128xbf16, #tpu.memory_space<vmem>>, %arg4: memref<1x32xf32, #tpu.memory_space<vmem>>, %arg5: memref<1x32xf32, #tpu.memory_space<vmem>>, %arg6: memref<128x128xbf16, #tpu.memory_space<vmem>>, %arg7: memref<1x128xf32, #tpu.memory_space<vmem>>, %arg8: memref<1x128xf32, #tpu.memory_space<vmem>>, %arg9: memref<1x128xf32, #tpu.memory_space<vmem>>, %arg10: memref<1x128xf32, #tpu.memory_space<vmem>>) attributes {dimension_semantics = [#tpu.dimension_semantics<arbitrary>, #tpu.dimension_semantics<arbitrary>], iteration_bounds = array<i64: 2, 1>, scalar_prefetch = 0 : i64, scratch_operands = 4 : i64, tpu.core_type = #tpu.core_type<tc>, window_params = [{transform_indices = @transform_0, window_bounds = array<i64: 128, 64>}, {pipeline_mode = #tpu.pipeline_mode<synchronous>, transform_indices = @transform_1, window_bounds = array<i64: 64, 128>}, {pipeline_mode = #tpu.pipeline_mode<synchronous>, transform_indices = @transform_2, window_bounds = array<i64: 1, 32>}, {pipeline_mode = #tpu.pipeline_mode<synchronous>, transform_indices = @transform_3, window_bounds = array<i64: 1, 32>}, {transform_indices = @transform_4, window_bounds = array<i64: 128, 128>}]} {
    %c0_i32 = arith.constant 0 : i32
    %0 = arith.cmpi eq, %arg0, %c0_i32 : i32
    %c0_i32_0 = arith.constant 0 : i32
    %1 = arith.cmpi eq, %arg1, %c0_i32_0 : i32
    %2 = arith.andi %0, %1 : i1
    %3 = arith.extui %2 : i1 to i32
    %c0_i32_1 = arith.constant 0 : i32
    %4 = arith.cmpi ne, %3, %c0_i32_1 : i32
    scf.if %4 {
      %cst_11 = arith.constant 0.000000e+00 : f32
      %19 = vector.broadcast %cst_11 : f32 to vector<1x128xf32>
      %c0_12 = arith.constant 0 : index
      %c0_13 = arith.constant 0 : index
      %20 = vector.load %arg7[%c0_12, %c0_13] : memref<1x128xf32, #tpu.memory_space<vmem>>, vector<1x128xf32>
      tpu.vector_store %arg7[%c0_12, %c0_13], %19 {strides = array<i32>} : memref<1x128xf32, #tpu.memory_space<vmem>>, vector<1x128xf32>,
      %cst_14 = arith.constant 0.000000e+00 : f32
      %21 = vector.broadcast %cst_14 : f32 to vector<1x128xf32>
      %c0_15 = arith.constant 0 : index
      %c0_16 = arith.constant 0 : index
      %22 = vector.load %arg8[%c0_15, %c0_16] : memref<1x128xf32, #tpu.memory_space<vmem>>, vector<1x128xf32>
      tpu.vector_store %arg8[%c0_15, %c0_16], %21 {strides = array<i32>} : memref<1x128xf32, #tpu.memory_space<vmem>>, vector<1x128xf32>,
    } else {
    }
    %c0 = arith.constant 0 : index
    %c0_2 = arith.constant 0 : index
    %5 = vector.load %arg2[%c0, %c0_2] : memref<128x64xbf16, #tpu.memory_space<vmem>>, vector<128x64xbf16>
    %c0_3 = arith.constant 0 : index
    %c0_4 = arith.constant 0 : index
    %6 = vector.load %arg3[%c0_3, %c0_4] : memref<64x128xbf16, #tpu.memory_space<vmem>>, vector<64x128xbf16>
    %cst = arith.constant dense<0.000000e+00> : vector<128x128xf32>
    %7 = tpu.matmul %5, %6, %cst {dimension_numbers = #tpu.dot_dimension_numbers<[1], [0], [0], [1], [0, 0, 1, 1], [], []>} : vector<128x64xbf16>, vector<64x128xbf16>, vector<128x128xf32> -> vector<128x128xf32>
    %c0_i32_5 = arith.constant 0 : i32
    %8 = arith.cmpi eq, %arg0, %c0_i32_5 : i32
    %9 = arith.extui %8 : i1 to i32
    %c0_i32_6 = arith.constant 0 : i32
    %10 = arith.cmpi ne, %9, %c0_i32_6 : i32
    scf.if %10 {
      %c0_11 = arith.constant 0 : index
      %c0_12 = arith.constant 0 : index
      %19 = vector.load %arg7[%c0_11, %c0_12] : memref<1x128xf32, #tpu.memory_space<vmem>>, vector<1x128xf32>
      %cst_13 = arith.constant dense<0.000000e+00> : vector<128xf32>
      %20 = vector.multi_reduction <add>, %7, %cst_13 [0] : vector<128x128xf32> to vector<128xf32>
      %21 = vector.shape_cast %20 : vector<128xf32> to vector<1x128xf32>
      %22 = arith.addf %19, %21 : vector<1x128xf32>
      %c0_14 = arith.constant 0 : index
      %c0_15 = arith.constant 0 : index
      %23 = vector.load %arg7[%c0_14, %c0_15] : memref<1x128xf32, #tpu.memory_space<vmem>>, vector<1x128xf32>
      tpu.vector_store %arg7[%c0_14, %c0_15], %22 {strides = array<i32>} : memref<1x128xf32, #tpu.memory_space<vmem>>, vector<1x128xf32>,
      %c0_16 = arith.constant 0 : index
      %c0_17 = arith.constant 0 : index
      %24 = vector.load %arg8[%c0_16, %c0_17] : memref<1x128xf32, #tpu.memory_space<vmem>>, vector<1x128xf32>
      %25 = arith.mulf %7, %7 : vector<128x128xf32>
      %cst_18 = arith.constant dense<0.000000e+00> : vector<128xf32>
      %26 = vector.multi_reduction <add>, %25, %cst_18 [0] : vector<128x128xf32> to vector<128xf32>
      %27 = vector.shape_cast %26 : vector<128xf32> to vector<1x128xf32>
      %28 = arith.addf %24, %27 : vector<1x128xf32>
      %c0_19 = arith.constant 0 : index
      %c0_20 = arith.constant 0 : index
      %29 = vector.load %arg8[%c0_19, %c0_20] : memref<1x128xf32, #tpu.memory_space<vmem>>, vector<1x128xf32>
      tpu.vector_store %arg8[%c0_19, %c0_20], %28 {strides = array<i32>} : memref<1x128xf32, #tpu.memory_space<vmem>>, vector<1x128xf32>,
    } else {
    }
    %c0_i32_7 = arith.constant 0 : i32
    %11 = arith.cmpi eq, %arg0, %c0_i32_7 : i32
    %c0_i32_8 = arith.constant 0 : i32
    %12 = arith.cmpi eq, %arg1, %c0_i32_8 : i32
    %13 = arith.andi %11, %12 : i1
    %14 = arith.extui %13 : i1 to i32
    %c0_i32_9 = arith.constant 0 : i32
    %15 = arith.cmpi ne, %14, %c0_i32_9 : i32
    scf.if %15 {
      %c0_11 = arith.constant 0 : index
      %c0_12 = arith.constant 0 : index
      %19 = vector.load %arg7[%c0_11, %c0_12] : memref<1x128xf32, #tpu.memory_space<vmem>>, vector<1x128xf32>
      %c0_13 = arith.constant 0 : index
      %c0_14 = arith.constant 0 : index
      %20 = vector.load %arg8[%c0_13, %c0_14] : memref<1x128xf32, #tpu.memory_space<vmem>>, vector<1x128xf32>
      %21 = vector.extract_strided_slice %19 {offsets = [0, 0], sizes = [1, 32], strides = [1, 1]} : vector<1x128xf32> to vector<1x32xf32>
      %22 = vector.extract_strided_slice %20 {offsets = [0, 0], sizes = [1, 32], strides = [1, 1]} : vector<1x128xf32> to vector<1x32xf32>
      %23 = vector.extract_strided_slice %19 {offsets = [0, 32], sizes = [1, 32], strides = [1, 1]} : vector<1x128xf32> to vector<1x32xf32>
      %24 = arith.addf %21, %23 : vector<1x32xf32>
      %25 = vector.extract_strided_slice %20 {offsets = [0, 32], sizes = [1, 32], strides = [1, 1]} : vector<1x128xf32> to vector<1x32xf32>
      %26 = arith.addf %22, %25 : vector<1x32xf32>
      %27 = vector.extract_strided_slice %19 {offsets = [0, 64], sizes = [1, 32], strides = [1, 1]} : vector<1x128xf32> to vector<1x32xf32>
      %28 = arith.addf %24, %27 : vector<1x32xf32>
      %29 = vector.extract_strided_slice %20 {offsets = [0, 64], sizes = [1, 32], strides = [1, 1]} : vector<1x128xf32> to vector<1x32xf32>
      %30 = arith.addf %26, %29 : vector<1x32xf32>
      %31 = vector.extract_strided_slice %19 {offsets = [0, 96], sizes = [1, 32], strides = [1, 1]} : vector<1x128xf32> to vector<1x32xf32>
      %32 = arith.addf %28, %31 : vector<1x32xf32>
      %33 = vector.extract_strided_slice %20 {offsets = [0, 96], sizes = [1, 32], strides = [1, 1]} : vector<1x128xf32> to vector<1x32xf32>
      %34 = arith.addf %30, %33 : vector<1x32xf32>
      %cst_15 = arith.constant 0.001953125 : f32
      %35 = vector.broadcast %cst_15 : f32 to vector<1x32xf32>
      %36 = arith.mulf %32, %35 : vector<1x32xf32>
      %cst_16 = arith.constant 0.001953125 : f32
      %37 = vector.broadcast %cst_16 : f32 to vector<1x32xf32>
      %38 = arith.mulf %34, %37 : vector<1x32xf32>
      %39 = arith.mulf %36, %36 : vector<1x32xf32>
      %40 = arith.subf %38, %39 : vector<1x32xf32>
      %cst_17 = arith.constant 0.000000e+00 : f32
      %41 = vector.broadcast %cst_17 : f32 to vector<1x32xf32>
      %42 = arith.maximumf %40, %41 : vector<1x32xf32>
      %c0_18 = arith.constant 0 : index
      %c0_19 = arith.constant 0 : index
      %43 = vector.load %arg4[%c0_18, %c0_19] : memref<1x32xf32, #tpu.memory_space<vmem>>, vector<1x32xf32>
      %cst_20 = arith.constant 9.99999974E-6 : f32
      %44 = vector.broadcast %cst_20 : f32 to vector<1x32xf32>
      %45 = arith.addf %42, %44 : vector<1x32xf32>
      %46 = math.rsqrt %45 : vector<1x32xf32>
      %47 = arith.mulf %43, %46 : vector<1x32xf32>
      %c0_21 = arith.constant 0 : index
      %c0_22 = arith.constant 0 : index
      %48 = vector.load %arg5[%c0_21, %c0_22] : memref<1x32xf32, #tpu.memory_space<vmem>>, vector<1x32xf32>
      %49 = arith.mulf %36, %47 : vector<1x32xf32>
      %50 = arith.subf %48, %49 : vector<1x32xf32>
      %51 = tpu.concatenate %47, %47, %47, %47 in 1 : vector<1x32xf32>, vector<1x32xf32>, vector<1x32xf32>, vector<1x32xf32> -> vector<1x128xf32>
      %c0_23 = arith.constant 0 : index
      %c0_24 = arith.constant 0 : index
      %52 = vector.load %arg9[%c0_23, %c0_24] : memref<1x128xf32, #tpu.memory_space<vmem>>, vector<1x128xf32>
      tpu.vector_store %arg9[%c0_23, %c0_24], %51 {strides = array<i32>} : memref<1x128xf32, #tpu.memory_space<vmem>>, vector<1x128xf32>,
      %53 = tpu.concatenate %50, %50, %50, %50 in 1 : vector<1x32xf32>, vector<1x32xf32>, vector<1x32xf32>, vector<1x32xf32> -> vector<1x128xf32>
      %c0_25 = arith.constant 0 : index
      %c0_26 = arith.constant 0 : index
      %54 = vector.load %arg10[%c0_25, %c0_26] : memref<1x128xf32, #tpu.memory_space<vmem>>, vector<1x128xf32>
      tpu.vector_store %arg10[%c0_25, %c0_26], %53 {strides = array<i32>} : memref<1x128xf32, #tpu.memory_space<vmem>>, vector<1x128xf32>,
    } else {
    }
    %c1_i32 = arith.constant 1 : i32
    %16 = arith.cmpi eq, %arg0, %c1_i32 : i32
    %17 = arith.extui %16 : i1 to i32
    %c0_i32_10 = arith.constant 0 : i32
    %18 = arith.cmpi ne, %17, %c0_i32_10 : i32
    scf.if %18 {
      %c0_11 = arith.constant 0 : index
      %c0_12 = arith.constant 0 : index
      %19 = vector.load %arg9[%c0_11, %c0_12] : memref<1x128xf32, #tpu.memory_space<vmem>>, vector<1x128xf32>
      %20 = vector.broadcast %19 : vector<1x128xf32> to vector<128x128xf32>
      %21 = arith.mulf %7, %20 : vector<128x128xf32>
      %c0_13 = arith.constant 0 : index
      %c0_14 = arith.constant 0 : index
      %22 = vector.load %arg10[%c0_13, %c0_14] : memref<1x128xf32, #tpu.memory_space<vmem>>, vector<1x128xf32>
      %23 = vector.broadcast %22 : vector<1x128xf32> to vector<128x128xf32>
      %24 = arith.addf %21, %23 : vector<128x128xf32>
      %cst_15 = arith.constant 0.000000e+00 : f32
      %25 = vector.broadcast %cst_15 : f32 to vector<128x128xf32>
      %26 = arith.maximumf %24, %25 : vector<128x128xf32>
      %27 = arith.truncf %26 : vector<128x128xf32> to vector<128x128xbf16>
      %c0_16 = arith.constant 0 : index
      %c0_17 = arith.constant 0 : index
      %28 = vector.load %arg6[%c0_16, %c0_17] : memref<128x128xbf16, #tpu.memory_space<vmem>>, vector<128x128xbf16>
      tpu.vector_store %arg6[%c0_16, %c0_17], %27 {strides = array<i32>} : memref<128x128xbf16, #tpu.memory_space<vmem>>, vector<128x128xbf16>,
    } else {
    }
    return
  }
  func.func @transform_0(%arg0: i32, %arg1: i32) -> (i32, i32) {
    %c0_i32 = arith.constant 0 : i32
    %c0_i32_0 = arith.constant 0 : i32
    return %arg1, %c0_i32 : i32, i32
  }
  func.func @transform_1(%arg0: i32, %arg1: i32) -> (i32, i32) {
    %c0_i32 = arith.constant 0 : i32
    %c0_i32_0 = arith.constant 0 : i32
    %c0_i32_1 = arith.constant 0 : i32
    return %c0_i32, %c0_i32_0 : i32, i32
  }
  func.func @transform_2(%arg0: i32, %arg1: i32) -> (i32, i32) {
    %c0_i32 = arith.constant 0 : i32
    %c0_i32_0 = arith.constant 0 : i32
    %c0_i32_1 = arith.constant 0 : i32
    return %c0_i32, %c0_i32_0 : i32, i32
  }
  func.func @transform_3(%arg0: i32, %arg1: i32) -> (i32, i32) {
    %c0_i32 = arith.constant 0 : i32
    %c0_i32_0 = arith.constant 0 : i32
    %c0_i32_1 = arith.constant 0 : i32
    return %c0_i32, %c0_i32_0 : i32, i32
  }
  func.func @transform_4(%arg0: i32, %arg1: i32) -> (i32, i32) {
    %c0_i32 = arith.constant 0 : i32
    %c0_i32_0 = arith.constant 0 : i32
    return %arg1, %c0_i32 : i32, i32
  }
}

module attributes {stable_mosaic.version = 11 : i64} {
  func.func @fused_module_kernel(%arg0: i32, %arg1: i32, %arg2: memref<512x32xbf16, #tpu.memory_space<vmem>>, %arg3: memref<32x128xbf16, #tpu.memory_space<vmem>>, %arg4: memref<1x128xf32, #tpu.memory_space<vmem>>, %arg5: memref<1x128xf32, #tpu.memory_space<vmem>>, %arg6: memref<512x128xf32, #tpu.memory_space<vmem>>, %arg7: memref<1x128xf32, #tpu.memory_space<vmem>>, %arg8: memref<1x128xf32, #tpu.memory_space<vmem>>, %arg9: memref<1x128xf32, #tpu.memory_space<vmem>>, %arg10: memref<1x128xf32, #tpu.memory_space<vmem>>) attributes {dimension_semantics = [#tpu.dimension_semantics<arbitrary>, #tpu.dimension_semantics<arbitrary>], iteration_bounds = array<i64: 2, 1>, scalar_prefetch = 0 : i64, scratch_operands = 4 : i64, tpu.core_type = #tpu.core_type<tc>, window_params = [{transform_indices = @transform_0, window_bounds = array<i64: 512, 32>}, {pipeline_mode = #tpu.pipeline_mode<synchronous>, transform_indices = @transform_1, window_bounds = array<i64: 32, 128>}, {pipeline_mode = #tpu.pipeline_mode<synchronous>, transform_indices = @transform_2, window_bounds = array<i64: 1, 128>}, {pipeline_mode = #tpu.pipeline_mode<synchronous>, transform_indices = @transform_3, window_bounds = array<i64: 1, 128>}, {transform_indices = @transform_4, window_bounds = array<i64: 512, 128>}]} {
    %c0_i32 = arith.constant 0 : i32
    %0 = arith.cmpi eq, %arg0, %c0_i32 : i32
    %c0_i32_0 = arith.constant 0 : i32
    %1 = arith.cmpi eq, %arg1, %c0_i32_0 : i32
    %2 = arith.andi %0, %1 : i1
    %3 = arith.extui %2 : i1 to i32
    %c0_i32_1 = arith.constant 0 : i32
    %4 = arith.cmpi ne, %3, %c0_i32_1 : i32
    scf.if %4 {
      %cst_11 = arith.constant 0.000000e+00 : f32
      %19 = vector.broadcast %cst_11 : f32 to vector<1x128xf32>
      %c0_12 = arith.constant 0 : index
      %c0_13 = arith.constant 0 : index
      %20 = vector.load %arg7[%c0_12, %c0_13] : memref<1x128xf32, #tpu.memory_space<vmem>>, vector<1x128xf32>
      tpu.vector_store %arg7[%c0_12, %c0_13], %19 {strides = array<i32>} : memref<1x128xf32, #tpu.memory_space<vmem>>, vector<1x128xf32>,
      %cst_14 = arith.constant 0.000000e+00 : f32
      %21 = vector.broadcast %cst_14 : f32 to vector<1x128xf32>
      %c0_15 = arith.constant 0 : index
      %c0_16 = arith.constant 0 : index
      %22 = vector.load %arg8[%c0_15, %c0_16] : memref<1x128xf32, #tpu.memory_space<vmem>>, vector<1x128xf32>
      tpu.vector_store %arg8[%c0_15, %c0_16], %21 {strides = array<i32>} : memref<1x128xf32, #tpu.memory_space<vmem>>, vector<1x128xf32>,
    } else {
    }
    %c0 = arith.constant 0 : index
    %c0_2 = arith.constant 0 : index
    %5 = vector.load %arg2[%c0, %c0_2] : memref<512x32xbf16, #tpu.memory_space<vmem>>, vector<512x32xbf16>
    %c0_3 = arith.constant 0 : index
    %c0_4 = arith.constant 0 : index
    %6 = vector.load %arg3[%c0_3, %c0_4] : memref<32x128xbf16, #tpu.memory_space<vmem>>, vector<32x128xbf16>
    %cst = arith.constant dense<0.000000e+00> : vector<512x128xf32>
    %7 = tpu.matmul %5, %6, %cst {dimension_numbers = #tpu.dot_dimension_numbers<[1], [0], [0], [1], [0, 0, 1, 1], [], []>} : vector<512x32xbf16>, vector<32x128xbf16>, vector<512x128xf32> -> vector<512x128xf32>
    %c0_i32_5 = arith.constant 0 : i32
    %8 = arith.cmpi eq, %arg0, %c0_i32_5 : i32
    %9 = arith.extui %8 : i1 to i32
    %c0_i32_6 = arith.constant 0 : i32
    %10 = arith.cmpi ne, %9, %c0_i32_6 : i32
    scf.if %10 {
      %c0_11 = arith.constant 0 : index
      %c0_12 = arith.constant 0 : index
      %19 = vector.load %arg7[%c0_11, %c0_12] : memref<1x128xf32, #tpu.memory_space<vmem>>, vector<1x128xf32>
      %cst_13 = arith.constant dense<0.000000e+00> : vector<128xf32>
      %20 = vector.multi_reduction <add>, %7, %cst_13 [0] : vector<512x128xf32> to vector<128xf32>
      %21 = vector.shape_cast %20 : vector<128xf32> to vector<1x128xf32>
      %22 = arith.addf %19, %21 : vector<1x128xf32>
      %c0_14 = arith.constant 0 : index
      %c0_15 = arith.constant 0 : index
      %23 = vector.load %arg7[%c0_14, %c0_15] : memref<1x128xf32, #tpu.memory_space<vmem>>, vector<1x128xf32>
      tpu.vector_store %arg7[%c0_14, %c0_15], %22 {strides = array<i32>} : memref<1x128xf32, #tpu.memory_space<vmem>>, vector<1x128xf32>,
      %c0_16 = arith.constant 0 : index
      %c0_17 = arith.constant 0 : index
      %24 = vector.load %arg8[%c0_16, %c0_17] : memref<1x128xf32, #tpu.memory_space<vmem>>, vector<1x128xf32>
      %25 = arith.mulf %7, %7 : vector<512x128xf32>
      %cst_18 = arith.constant dense<0.000000e+00> : vector<128xf32>
      %26 = vector.multi_reduction <add>, %25, %cst_18 [0] : vector<512x128xf32> to vector<128xf32>
      %27 = vector.shape_cast %26 : vector<128xf32> to vector<1x128xf32>
      %28 = arith.addf %24, %27 : vector<1x128xf32>
      %c0_19 = arith.constant 0 : index
      %c0_20 = arith.constant 0 : index
      %29 = vector.load %arg8[%c0_19, %c0_20] : memref<1x128xf32, #tpu.memory_space<vmem>>, vector<1x128xf32>
      tpu.vector_store %arg8[%c0_19, %c0_20], %28 {strides = array<i32>} : memref<1x128xf32, #tpu.memory_space<vmem>>, vector<1x128xf32>,
    } else {
    }
    %c0_i32_7 = arith.constant 0 : i32
    %11 = arith.cmpi eq, %arg0, %c0_i32_7 : i32
    %c0_i32_8 = arith.constant 0 : i32
    %12 = arith.cmpi eq, %arg1, %c0_i32_8 : i32
    %13 = arith.andi %11, %12 : i1
    %14 = arith.extui %13 : i1 to i32
    %c0_i32_9 = arith.constant 0 : i32
    %15 = arith.cmpi ne, %14, %c0_i32_9 : i32
    scf.if %15 {
      %c0_11 = arith.constant 0 : index
      %c0_12 = arith.constant 0 : index
      %19 = vector.load %arg7[%c0_11, %c0_12] : memref<1x128xf32, #tpu.memory_space<vmem>>, vector<1x128xf32>
      %c0_13 = arith.constant 0 : index
      %c0_14 = arith.constant 0 : index
      %20 = vector.load %arg8[%c0_13, %c0_14] : memref<1x128xf32, #tpu.memory_space<vmem>>, vector<1x128xf32>
      %cst_15 = arith.constant 0.001953125 : f32
      %21 = vector.broadcast %cst_15 : f32 to vector<1x128xf32>
      %22 = arith.mulf %19, %21 : vector<1x128xf32>
      %cst_16 = arith.constant 0.001953125 : f32
      %23 = vector.broadcast %cst_16 : f32 to vector<1x128xf32>
      %24 = arith.mulf %20, %23 : vector<1x128xf32>
      %25 = arith.mulf %22, %22 : vector<1x128xf32>
      %26 = arith.subf %24, %25 : vector<1x128xf32>
      %cst_17 = arith.constant 0.000000e+00 : f32
      %27 = vector.broadcast %cst_17 : f32 to vector<1x128xf32>
      %28 = arith.maximumf %26, %27 : vector<1x128xf32>
      %c0_18 = arith.constant 0 : index
      %c0_19 = arith.constant 0 : index
      %29 = vector.load %arg4[%c0_18, %c0_19] : memref<1x128xf32, #tpu.memory_space<vmem>>, vector<1x128xf32>
      %cst_20 = arith.constant 9.99999974E-6 : f32
      %30 = vector.broadcast %cst_20 : f32 to vector<1x128xf32>
      %31 = arith.addf %28, %30 : vector<1x128xf32>
      %32 = math.rsqrt %31 : vector<1x128xf32>
      %33 = arith.mulf %29, %32 : vector<1x128xf32>
      %c0_21 = arith.constant 0 : index
      %c0_22 = arith.constant 0 : index
      %34 = vector.load %arg5[%c0_21, %c0_22] : memref<1x128xf32, #tpu.memory_space<vmem>>, vector<1x128xf32>
      %35 = arith.mulf %22, %33 : vector<1x128xf32>
      %36 = arith.subf %34, %35 : vector<1x128xf32>
      %c0_23 = arith.constant 0 : index
      %c0_24 = arith.constant 0 : index
      %37 = vector.load %arg9[%c0_23, %c0_24] : memref<1x128xf32, #tpu.memory_space<vmem>>, vector<1x128xf32>
      tpu.vector_store %arg9[%c0_23, %c0_24], %33 {strides = array<i32>} : memref<1x128xf32, #tpu.memory_space<vmem>>, vector<1x128xf32>,
      %c0_25 = arith.constant 0 : index
      %c0_26 = arith.constant 0 : index
      %38 = vector.load %arg10[%c0_25, %c0_26] : memref<1x128xf32, #tpu.memory_space<vmem>>, vector<1x128xf32>
      tpu.vector_store %arg10[%c0_25, %c0_26], %36 {strides = array<i32>} : memref<1x128xf32, #tpu.memory_space<vmem>>, vector<1x128xf32>,
    } else {
    }
    %c1_i32 = arith.constant 1 : i32
    %16 = arith.cmpi eq, %arg0, %c1_i32 : i32
    %17 = arith.extui %16 : i1 to i32
    %c0_i32_10 = arith.constant 0 : i32
    %18 = arith.cmpi ne, %17, %c0_i32_10 : i32
    scf.if %18 {
      %c0_11 = arith.constant 0 : index
      %c0_12 = arith.constant 0 : index
      %19 = vector.load %arg9[%c0_11, %c0_12] : memref<1x128xf32, #tpu.memory_space<vmem>>, vector<1x128xf32>
      %20 = vector.broadcast %19 : vector<1x128xf32> to vector<512x128xf32>
      %21 = arith.mulf %7, %20 : vector<512x128xf32>
      %c0_13 = arith.constant 0 : index
      %c0_14 = arith.constant 0 : index
      %22 = vector.load %arg10[%c0_13, %c0_14] : memref<1x128xf32, #tpu.memory_space<vmem>>, vector<1x128xf32>
      %23 = vector.broadcast %22 : vector<1x128xf32> to vector<512x128xf32>
      %24 = arith.addf %21, %23 : vector<512x128xf32>
      %cst_15 = arith.constant 0.000000e+00 : f32
      %25 = vector.broadcast %cst_15 : f32 to vector<512x128xf32>
      %26 = arith.maximumf %24, %25 : vector<512x128xf32>
      %c0_16 = arith.constant 0 : index
      %c0_17 = arith.constant 0 : index
      %27 = vector.load %arg6[%c0_16, %c0_17] : memref<512x128xf32, #tpu.memory_space<vmem>>, vector<512x128xf32>
      tpu.vector_store %arg6[%c0_16, %c0_17], %26 {strides = array<i32>} : memref<512x128xf32, #tpu.memory_space<vmem>>, vector<512x128xf32>,
    } else {
    }
    return
  }
  func.func @transform_0(%arg0: i32, %arg1: i32) -> (i32, i32) {
    %c0_i32 = arith.constant 0 : i32
    %c0_i32_0 = arith.constant 0 : i32
    return %arg1, %c0_i32 : i32, i32
  }
  func.func @transform_1(%arg0: i32, %arg1: i32) -> (i32, i32) {
    %c0_i32 = arith.constant 0 : i32
    %c0_i32_0 = arith.constant 0 : i32
    %c0_i32_1 = arith.constant 0 : i32
    return %c0_i32, %c0_i32_0 : i32, i32
  }
  func.func @transform_2(%arg0: i32, %arg1: i32) -> (i32, i32) {
    %c0_i32 = arith.constant 0 : i32
    %c0_i32_0 = arith.constant 0 : i32
    %c0_i32_1 = arith.constant 0 : i32
    return %c0_i32, %c0_i32_0 : i32, i32
  }
  func.func @transform_3(%arg0: i32, %arg1: i32) -> (i32, i32) {
    %c0_i32 = arith.constant 0 : i32
    %c0_i32_0 = arith.constant 0 : i32
    %c0_i32_1 = arith.constant 0 : i32
    return %c0_i32, %c0_i32_0 : i32, i32
  }
  func.func @transform_4(%arg0: i32, %arg1: i32) -> (i32, i32) {
    %c0_i32 = arith.constant 0 : i32
    %c0_i32_0 = arith.constant 0 : i32
    return %arg1, %c0_i32 : i32, i32
  }
}

</mosaic_0001>

<bundles_post_ra>
// kernel: decoder_pallas.4
= control target key start
LH: loop header
LB: loop body
LE: loop exit
PB: predicated region body
PF: predicated region fallthrough
CT: control target
= control target key end

     0   :  { %s787_s15 = smov 0   ;;  %s789_s16 = smov 0   ;;  %s931_s0 = inlined_call_operand.vmem [shape: bf16[32,256], index: 0, kind: input, shape index: {}]   ;;  %s932_s1 = inlined_call_operand.vmem [shape: bf16[256,128], index: 1, kind: input, shape index: {}]   ;;  %s933_s2 = inlined_call_operand.vmem [shape: f32[1,128], index: 2, kind: input, shape index: {}]   ;;  %s934_s3 = inlined_call_operand.vmem [shape: f32[1,128], index: 3, kind: input, shape index: {}]   ;;  %s935_s4 = inlined_call_operand.vmem [shape: bf16[32,128], index: 4, kind: output, shape index: {}]  }
   0x1   :  { %s791_s17 = smov 0  }
   0x2 LB: > { %s26_s18 = sadd.s32 1, %s755_s16  ;;  %p572_p0 = scmp.ge.s32.totalorder %s759_s17, 1  ;;  %s759_s17 = sphi %s791_s17, %s14_s17   ;;  %s755_s16 = sphi %s789_s16, %s937_s16   ;;  %s751_s15 = sphi %s787_s15, %s936_s15  }
   0x3   : > { %p28_p1 = scmp.ge.s32.totalorder %s26_s18, 2  ;;  %p176_p2 = scmp.lt.s32.totalorder %s759_s17, 3 }
   0x5   : > { %s939_s18 = smov (%p28_p1, %s26_s18), 0  ;;  %p177_p3 = pnand %p572_p0, %p176_p2 }
   0x6   : > { %p216_p4 = scmp.eq.s32.totalorder (!%p177_p3), %s751_s15, 0 }
   0x7   : > { %180 = sbr.rel (%p177_p3) target bundleno = 272 (0x110), region = 36 }
   0xc   : > { %221 = sbr.rel (!%p216_p4) target bundleno = 17 (0x11), region = 40  ;;  %v761_v0 = vmov (%p216_p4), 0.0  }
   0xd   : > { %222 = vst [vmem:[#allocation2] sm:$0x1] (%p216_p4), %v761_v0 }
   0xe   : > { %223 = vst [vmem:[#allocation3] sm:$0x1] (%p216_p4), %v761_v0 }
  0x11 PF: > { %v672_v1 = vld [vmem:[%s932_s1 + $0x38] sm:$0xff]  ;;  %v671_v3 = vld [vmem:[%s932_s1 + $0x30] sm:$0xff]  ;;  %v670_v5 = vld [vmem:[%s932_s1 + $0x28] sm:$0xff]  ;;  %p654_p5 = scmp.ne.s32.totalorder %s751_s15, 0 }
  0x12   : > { %v680_v2 = vld [vmem:[%s932_s1 + $0x78] sm:$0xff]  ;;  %376 = vmatpush.bf16.msra.mxu0 %v672_v1  ;;  %692 = vmatpush.bf16.msra.mxu2 %v672_v1  ;;  %v679_v4 = vld [vmem:[%s932_s1 + $0x70] sm:$0xff]  ;;  %v678_v6 = vld [vmem:[%s932_s1 + $0x68] sm:$0xff] }
  0x13   : > { %395 = vmatpush.bf16.msra.mxu1 %v680_v2  ;;  %700 = vmatpush.bf16.msra.mxu3 %v680_v2  ;;  %v669_v7 = vld [vmem:[%s932_s1 + $0x20] sm:$0xff]  ;;  %v668_v9 = vld [vmem:[%s932_s1 + $0x18] sm:$0xff]  ;;  %v667_v11 = vld [vmem:[%s932_s1 + $0x10] sm:$0xff] }
  0x14   : > { %v677_v8 = vld [vmem:[%s932_s1 + $0x60] sm:$0xff]  ;;  %v676_v10 = vld [vmem:[%s932_s1 + $0x58] sm:$0xff]  ;;  %v675_v12 = vld [vmem:[%s932_s1 + $0x50] sm:$0xff] }
  0x15   : > { %v666_v13 = vld [vmem:[%s932_s1 + $0x8] sm:$0xff]  ;;  %v665_v15 = vld [vmem:[%s932_s1] sm:$0xff]  ;;  %v584_v19 = vld [vmem:[%s931_s0 + $0x10] sm:$0xf] }
  0x16   : > { %377 = vmatpush.bf16.msra.mxu0 %v671_v3  ;;  %693 = vmatpush.bf16.msra.mxu2 %v671_v3  ;;  %v674_v14 = vld [vmem:[%s932_s1 + $0x48] sm:$0xff]  ;;  %v673_v16 = vld [vmem:[%s932_s1 + $0x40] sm:$0xff]  ;;  %v664_v20 = vld [vmem:[%s931_s0 + $0x14] sm:$0xf0] }
  0x17   : > { %396 = vmatpush.bf16.msra.mxu1 %v679_v4  ;;  %701 = vmatpush.bf16.msra.mxu3 %v679_v4  ;;  %v576_v17 = vld [vmem:[%s931_s0] sm:$0xf]  ;;  %v662_v18 = vld [vmem:[%s931_s0 + $0x4] sm:$0xf0]  ;;  %v661_v21 = vld [vmem:[%s931_s0 + $0x4] sm:$0xf]  ;;  %v585_v26 = vor.u32 %v664_v20, %v584_v19 }
  0x18   : > { %v578_v22 = vld [vmem:[%s931_s0 + $0x8] sm:$0xf0]  ;;  %v663_v23 = vld [vmem:[%s931_s0 + $0x14] sm:$0xf]  ;;  %v586_v24 = vld [vmem:[%s931_s0 + $0x18] sm:$0xf0]  ;;  %v577_v25 = vor.u32 %v662_v18, %v576_v17 }
  0x19   : > { %v581_v27 = vor.u32 %v661_v21, %v578_v22  ;;  %v589_v28 = vor.u32 %v663_v23, %v586_v24 }
  0x1a   : > { %378 = vmatpush.bf16.msra.mxu0 %v670_v5  ;;  %694 = vmatpush.bf16.msra.mxu2 %v670_v5 }
  0x1b   : > { %397 = vmatpush.bf16.msra.mxu1 %v678_v6  ;;  %702 = vmatpush.bf16.msra.mxu3 %v678_v6 }
  0x1e   : > { %379 = vmatpush.bf16.msra.mxu0 %v669_v7  ;;  %695 = vmatpush.bf16.msra.mxu2 %v669_v7 }
  0x1f   : > { %398 = vmatpush.bf16.msra.mxu1 %v677_v8  ;;  %703 = vmatpush.bf16.msra.mxu3 %v677_v8 }
  0x22   : > { %380 = vmatpush.bf16.msra.mxu0 %v668_v9  ;;  %696 = vmatpush.bf16.msra.mxu2 %v668_v9 }
  0x23   : > { %399 = vmatpush.bf16.msra.mxu1 %v676_v10  ;;  %704 = vmatpush.bf16.msra.mxu3 %v676_v10 }
  0x26   : > { %381 = vmatpush.bf16.msra.mxu0 %v667_v11  ;;  %697 = vmatpush.bf16.msra.mxu2 %v667_v11 }
  0x27   : > { %400 = vmatpush.bf16.msra.mxu1 %v675_v12  ;;  %705 = vmatpush.bf16.msra.mxu3 %v675_v12 }
  0x2a   : > { %382 = vmatpush.bf16.msra.mxu0 %v666_v13  ;;  %698 = vmatpush.bf16.msra.mxu2 %v666_v13 }
  0x2b   : > { %401 = vmatpush.bf16.msra.mxu1 %v674_v14  ;;  %706 = vmatpush.bf16.msra.mxu3 %v674_v14 }
  0x2e   : > { %383 = vmatpush.bf16.msra.mxu0 %v665_v15  ;;  %699 = vmatpush.bf16.msra.mxu2 %v665_v15 }
  0x2f   : > { %402 = vmatpush.bf16.msra.mxu1 %v673_v16  ;;  %707 = vmatpush.bf16.msra.mxu3 %v673_v16 }
  0x31   : > { %384 = vmatmul.bf16.vlgmr.msra.gmra.mxu0 %v577_v25  ;;  %389 = vmatmul.bf16.vlgmr.msra.gmra.mxu2 %v585_v26 }
  0x32   : > { %403 = vmatmul.bf16.vlgmr.msra.gmra.mxu1 %v581_v27  ;;  %408 = vmatmul.bf16.vlgmr.msra.gmra.mxu3 %v589_v28 }
  0xae   : > { %v385_v29 = vpop.f32.mrf.mxu0 }
  0xaf   : > { %v404_v30 = vpop.f32.mrf.mxu1 }
  0xb0   : > { %v882_v31 = vadd.f32 %v404_v30, %v385_v29 }
  0xb4   : > { %v390_v32 = vpop.f32.mrf.mxu2 }
  0xb5   : > { %v409_v33 = vpop.f32.mrf.mxu3 }
  0xb6   : > { %v884_v34 = vadd.f32 %v409_v33, %v390_v32  ;;  %v387_v35 = vpop.f32.mrf.mxu0 }
  0xb7   : > { %v406_v36 = vpop.f32.mrf.mxu1 }
  0xb8   : > { %v886_v37 = vadd.f32 %v406_v36, %v387_v35 }
  0xba   : > { %416 = sbr.rel (%p654_p5) target bundleno = 214 (0xd6), region = 44 }
  0xbc   : > { %v392_v38 = vpop.f32.mrf.mxu2 }
  0xbd   : > { %v411_v39 = vpop.f32.mrf.mxu3 }
  0xbe   : > { %v888_v40 = vadd.f32 %v411_v39, %v392_v38 }
  0xbf   : > { %v418_v41 = vadd.f32 %v886_v37, %v882_v31  ;;  %v430_v42 = vmul.f32 %v882_v31, %v882_v31  ;;  %v431_v43 = vmul.f32 %v886_v37, %v886_v37  ;;  %v432_v44 = vmul.f32 %v884_v34, %v884_v34  ;;  %v417_v60 = vld [vmem:[#allocation2] sm:$0x1]  ;;  %v429_v63 = vld [vmem:[#allocation3] sm:$0x1] }
  0xc0   : > { %v433_v46 = vmul.f32 %v888_v40, %v888_v40 }
  0xc1   : > { %v419_v45 = vadd.f32 %v418_v41, %v884_v34  ;;  %v434_v47 = vadd.f32 %v431_v43, %v430_v42 }
  0xc3   : > { %v420_v48 = vadd.f32 %v419_v45, %v888_v40  ;;  %v435_v49 = vadd.f32 %v434_v47, %v432_v44 }
  0xc5   : > { %v421_v50 = vrot.slane %v420_v48, 4  ;;  %v436_v51 = vadd.f32 %v435_v49, %v433_v46 }
  0xc7   : > { %v422_v52 = vadd.f32 %v421_v50, %v420_v48  ;;  %v437_v53 = vrot.slane %v436_v51, 4 }
  0xc9   : > { %v423_v54 = vrot.slane %v422_v52, 2  ;;  %v438_v55 = vadd.f32 %v437_v53, %v436_v51 }
  0xcb   : > { %v424_v56 = vadd.f32 %v423_v54, %v422_v52  ;;  %v439_v57 = vrot.slane %v438_v55, 2 }
  0xcd   : > { %v425_v58 = vrot.slane %v424_v56, 1  ;;  %v440_v59 = vadd.f32 %v439_v57, %v438_v55 }
  0xcf   : > { %v426_v61 = vadd.f32 %v425_v58, %v424_v56  ;;  %v441_v62 = vrot.slane %v440_v59, 1 }
  0xd1   : > { %v427_v0 = vadd.f32 %v426_v61, %v417_v60  ;;  %v442_v1 = vadd.f32 %v441_v62, %v440_v59 }
  0xd3   : > { %428 = vst [vmem:[#allocation2] sm:$0x1] %v427_v0  ;;  %v443_v2 = vadd.f32 %v442_v1, %v429_v63 }
  0xd5   : > { %444 = vst [vmem:[#allocation3] sm:$0x1] %v443_v2 }
  0xd6 PF: > { %446 = sbr.rel (!%p216_p4) target bundleno = 254 (0xfe), region = 48  ;;  %v454_v16 = vld [vmem:[%s933_s2] sm:$0x1] (%p216_p4) }
  0xd7   : > { %v467_v20 = vld [vmem:[%s934_s3] sm:$0x1] (%p216_p4) }
  0xda   : > { %v447_v3 = vld [vmem:[#allocation2] sm:$0x1] (%p216_p4) }
  0xdb   : > { %v449_v5 = vmul.f32 0.03125, %v447_v3 }
  0xdc   : > { %v448_v4 = vld [vmem:[#allocation3] sm:$0x1] }
  0xdd   : > { %v450_v6 = vmul.f32 0.03125, %v448_v4  ;;  %v451_v7 = vmul.f32 %v449_v5, %v449_v5 }
  0xdf   : > { %v452_v8 = vsub.f32 %v450_v6, %v451_v7 }
  0xe1   : > { %v453_v9 = vmax.f32 %v452_v8, 0.0 }
  0xe3   : > { %v455_v10 = vadd.f32 1e-05, %v453_v9 }
  0xe5   : > { %733 = vrsqrt.f32 %v455_v10  ;;  %vm462_vm0 = vweird.f32 %v455_v10 }
  0xeb   : > { %v734_v11 = vpop.eup %733 }
  0xec   : > { %v457_v12 = vmul.f32 %v734_v11, %v455_v10  ;;  %vm463_vm1 = vweird.f32 %v734_v11 }
  0xed   : > { %vm464_vm2 = vmor %vm462_vm0, %vm463_vm1 }
  0xee   : > { %v458_v13 = vmul.f32 %v734_v11, %v457_v12 }
  0xf0   : > { %v459_v14 = vmul.f32 0.5, %v458_v13 }
  0xf2   : > { %v460_v15 = vsub.f32 1.5, %v459_v14 }
  0xf4   : > { %v461_v17 = vmul.f32 %v734_v11, %v460_v15 }
  0xf6   : > { %v465_v18 = vsel %vm464_vm2, %v734_v11, %v461_v17 }
  0xf7   : > { %v466_v19 = vmul.f32 %v465_v18, %v454_v16 }
  0xf9   : > { %470 = vst [vmem:[#allocation4] sm:$0x1] %v466_v19  ;;  %v468_v21 = vmul.f32 %v466_v19, %v449_v5 }
  0xfb   : > { %v469_v22 = vsub.f32 %v467_v20, %v468_v21 }
  0xfd   : > { %471 = vst [vmem:[#allocation5] sm:$0x1] %v469_v22 }
  0xfe PF: > { %p655_p6 = scmp.ne.s32.totalorder %s751_s15, 1 }
 0x100   : > { %475 = sbr.rel (%p655_p6) target bundleno = 272 (0x110), region = 52 }
 0x105   : > { %v735_v23 = vld [vmem:[#allocation4] ss:$0 sm:$0xff]  ;;  %v736_v24 = vld [vmem:[#allocation5] ss:$0 sm:$0xff] }
 0x106   : > { %v480_v25 = vmul.f32 %v735_v23, %v882_v31  ;;  %v481_v26 = vmul.f32 %v735_v23, %v886_v37  ;;  %v482_v27 = vmul.f32 %v735_v23, %v884_v34  ;;  %v483_v28 = vmul.f32 %v735_v23, %v888_v40 }
 0x108   : > { %v488_v29 = vadd.f32 %v736_v24, %v480_v25  ;;  %v489_v30 = vadd.f32 %v736_v24, %v481_v26  ;;  %v490_v32 = vadd.f32 %v736_v24, %v482_v27  ;;  %v491_v33 = vadd.f32 %v736_v24, %v483_v28 }
 0x10a   : > { %v492_v35 = vmax.f32 %v488_v29, 0.0  ;;  %v493_v36 = vmax.f32 %v489_v30, 0.0  ;;  %v494_v38 = vmax.f32 %v490_v32, 0.0  ;;  %v495_v39 = vmax.f32 %v491_v33, 0.0 }
 0x10c   : > { %v684_v41 = vpack.c.bf16 %v493_v36, %v492_v35  ;;  %v689_v42 = vpack.c.bf16 %v495_v39, %v494_v38 }
 0x10e   : > { %685 = vst [vmem:[%s935_s4] sm:$0xff] %v684_v41  }
 0x10f   : > { %691 = vst [vmem:[%s935_s4 + $0x8] sm:$0xff] %v689_v42  }
 0x110 PF: > { %s14_s17 = sadd.s32 1, %s759_s17   ;;  %s936_s15 = smov %s755_s16 }
 0x111   : > { %p11_p7 = scmp.ge.s32.totalorder %s14_s17, 4   ;;  %s937_s16 = smov %s939_s18 }
 0x113   :  { %13 = sbr.rel (!%p11_p7) target bundleno = 2 (0x2), region = 82 }

// kernel: decoder_pallas.5
= control target key start
LH: loop header
LB: loop body
LE: loop exit
PB: predicated region body
PF: predicated region fallthrough
CT: control target
= control target key end

     0   :  { %s832_s15 = smov 0   ;;  %s834_s16 = smov 0   ;;  %s1040_s0 = inlined_call_operand.vmem [shape: bf16[32,128], index: 0, kind: input, shape index: {}]   ;;  %s1041_s1 = inlined_call_operand.vmem [shape: bf16[128,256], index: 1, kind: input, shape index: {}]   ;;  %s1042_s2 = inlined_call_operand.vmem [shape: f32[1,64], index: 2, kind: input, shape index: {}]   ;;  %s1043_s3 = inlined_call_operand.vmem [shape: f32[1,64], index: 3, kind: input, shape index: {}]   ;;  %s1044_s4 = inlined_call_operand.vmem [shape: bf16[32,256], index: 4, kind: output, shape index: {}]  }
   0x1   :  { %s836_s17 = smov 0  }
   0x2 LB: > { %s26_s18 = sadd.s32 1, %s799_s16  ;;  %p638_p0 = scmp.ge.s32.totalorder %s803_s17, 1  ;;  %s803_s17 = sphi %s836_s17, %s14_s17   ;;  %s799_s16 = sphi %s834_s16, %s1046_s16   ;;  %s795_s15 = sphi %s832_s15, %s1045_s15  }
   0x3   : > { %p28_p1 = scmp.ge.s32.totalorder %s26_s18, 2  ;;  %p175_p2 = scmp.lt.s32.totalorder %s803_s17, 3 }
   0x5   : > { %s1048_s18 = smov (%p28_p1, %s26_s18), 0  ;;  %p176_p3 = pnand %p638_p0, %p175_p2 }
   0x6   : > { %p215_p4 = scmp.eq.s32.totalorder (!%p176_p3), %s795_s15, 0 }
   0x7   : > { %179 = sbr.rel (%p176_p3) target bundleno = 532 (0x214), region = 36 }
   0xc   : > { %220 = sbr.rel (!%p215_p4) target bundleno = 17 (0x11), region = 40  ;;  %v221_v0 = vlaneseq (%p215_p4)  ;;  %v805_v1 = vmov (%p215_p4), 0.0  }
   0xe   : > { %vm223_vm0 = vcmp.lt.s32.totalorder (%p215_p4), %v221_v0, 256 }
   0xf   : > { %225 = vst.msk [vmem:[#allocation2] sm:$0x3] (%p215_p4), %vm223_vm0, %v805_v1 }
  0x10   : > { %226 = vst.msk [vmem:[#allocation3] sm:$0x3] (%p215_p4), %vm223_vm0, %v805_v1 }
  0x11 PF: > { %v706_v2 = vld [vmem:[%s1041_s1 + $0x70] sm:$0xf]  ;;  %v736_v3 = vld [vmem:[%s1041_s1 + $0x74] sm:$0xf0]  ;;  %v735_v4 = vld [vmem:[%s1041_s1 + $0x74] sm:$0xf] }
  0x12   : > { %v707_v5 = vor.u32 %v736_v3, %v706_v2  ;;  %v708_v6 = vld [vmem:[%s1041_s1 + $0x78] sm:$0xf0]  ;;  %v698_v7 = vld [vmem:[%s1041_s1 + $0x60] sm:$0xf]  ;;  %v734_v8 = vld [vmem:[%s1041_s1 + $0x64] sm:$0xf0] }
  0x13   : > { %v711_v9 = vor.u32 %v735_v4, %v708_v6  ;;  %v733_v10 = vld [vmem:[%s1041_s1 + $0x64] sm:$0xf]  ;;  %v700_v11 = vld [vmem:[%s1041_s1 + $0x68] sm:$0xf0]  ;;  %v699_v12 = vor.u32 %v734_v8, %v698_v7  ;;  %v690_v14 = vld [vmem:[%s1041_s1 + $0x50] sm:$0xf] }
  0x14   : > { %339 = vmatpush.bf16.msra.mxu0 %v707_v5  ;;  %737 = vmatpush.bf16.msra.mxu2 %v707_v5  ;;  %v703_v13 = vor.u32 %v733_v10, %v700_v11  ;;  %v732_v15 = vld [vmem:[%s1041_s1 + $0x54] sm:$0xf0]  ;;  %v731_v16 = vld [vmem:[%s1041_s1 + $0x54] sm:$0xf]  ;;  %v692_v17 = vld [vmem:[%s1041_s1 + $0x58] sm:$0xf0] }
  0x15   : > { %358 = vmatpush.bf16.msra.mxu1 %v711_v9  ;;  %745 = vmatpush.bf16.msra.mxu3 %v711_v9  ;;  %v691_v18 = vor.u32 %v732_v15, %v690_v14  ;;  %v695_v19 = vor.u32 %v731_v16, %v692_v17  ;;  %v682_v20 = vld [vmem:[%s1041_s1 + $0x40] sm:$0xf]  ;;  %v730_v21 = vld [vmem:[%s1041_s1 + $0x44] sm:$0xf0]  ;;  %v729_v22 = vld [vmem:[%s1041_s1 + $0x44] sm:$0xf] }
  0x16   : > { %v684_v23 = vld [vmem:[%s1041_s1 + $0x48] sm:$0xf0]  ;;  %v683_v24 = vor.u32 %v730_v21, %v682_v20  ;;  %v674_v26 = vld [vmem:[%s1041_s1 + $0x30] sm:$0xf]  ;;  %v728_v27 = vld [vmem:[%s1041_s1 + $0x34] sm:$0xf0] }
  0x17   : > { %v687_v25 = vor.u32 %v729_v22, %v684_v23  ;;  %v727_v28 = vld [vmem:[%s1041_s1 + $0x34] sm:$0xf]  ;;  %v676_v29 = vld [vmem:[%s1041_s1 + $0x38] sm:$0xf0]  ;;  %v675_v30 = vor.u32 %v728_v27, %v674_v26  ;;  %v666_v32 = vld [vmem:[%s1041_s1 + $0x20] sm:$0xf] }
  0x18   : > { %340 = vmatpush.bf16.msra.mxu0 %v699_v12  ;;  %738 = vmatpush.bf16.msra.mxu2 %v699_v12  ;;  %v679_v31 = vor.u32 %v727_v28, %v676_v29  ;;  %v726_v33 = vld [vmem:[%s1041_s1 + $0x24] sm:$0xf0]  ;;  %v725_v34 = vld [vmem:[%s1041_s1 + $0x24] sm:$0xf]  ;;  %v668_v35 = vld [vmem:[%s1041_s1 + $0x28] sm:$0xf0] }
  0x19   : > { %359 = vmatpush.bf16.msra.mxu1 %v703_v13  ;;  %746 = vmatpush.bf16.msra.mxu3 %v703_v13  ;;  %v667_v36 = vor.u32 %v726_v33, %v666_v32  ;;  %v671_v37 = vor.u32 %v725_v34, %v668_v35  ;;  %v658_v38 = vld [vmem:[%s1041_s1 + $0x10] sm:$0xf]  ;;  %v724_v39 = vld [vmem:[%s1041_s1 + $0x14] sm:$0xf0]  ;;  %v723_v40 = vld [vmem:[%s1041_s1 + $0x14] sm:$0xf] }
  0x1a   : > { %v660_v41 = vld [vmem:[%s1041_s1 + $0x18] sm:$0xf0]  ;;  %v659_v42 = vor.u32 %v724_v39, %v658_v38  ;;  %v650_v44 = vld [vmem:[%s1041_s1] sm:$0xf]  ;;  %v722_v45 = vld [vmem:[%s1041_s1 + $0x4] sm:$0xf0] }
  0x1b   : > { %v663_v43 = vor.u32 %v723_v40, %v660_v41  ;;  %v721_v46 = vld [vmem:[%s1041_s1 + $0x4] sm:$0xf]  ;;  %v652_v47 = vld [vmem:[%s1041_s1 + $0x8] sm:$0xf0]  ;;  %v651_v48 = vor.u32 %v722_v45, %v650_v44  ;;  %p712_p5 = scmp.ne.s32.totalorder %s795_s15, 0 }
  0x1c   : > { %341 = vmatpush.bf16.msra.mxu0 %v691_v18  ;;  %739 = vmatpush.bf16.msra.mxu2 %v691_v18  ;;  %v655_v49 = vor.u32 %v721_v46, %v652_v47  ;;  %v719_v50 = vld [vmem:[%s1040_s0] sm:$0xff]  ;;  %v720_v51 = vld [vmem:[%s1040_s0 + $0x8] sm:$0xff] }
  0x1d   : > { %360 = vmatpush.bf16.msra.mxu1 %v695_v19  ;;  %747 = vmatpush.bf16.msra.mxu3 %v695_v19 }
  0x20   : > { %342 = vmatpush.bf16.msra.mxu0 %v683_v24  ;;  %740 = vmatpush.bf16.msra.mxu2 %v683_v24 }
  0x21   : > { %361 = vmatpush.bf16.msra.mxu1 %v687_v25  ;;  %748 = vmatpush.bf16.msra.mxu3 %v687_v25 }
  0x24   : > { %343 = vmatpush.bf16.msra.mxu0 %v675_v30  ;;  %741 = vmatpush.bf16.msra.mxu2 %v675_v30 }
  0x25   : > { %362 = vmatpush.bf16.msra.mxu1 %v679_v31  ;;  %749 = vmatpush.bf16.msra.mxu3 %v679_v31 }
  0x28   : > { %344 = vmatpush.bf16.msra.mxu0 %v667_v36  ;;  %742 = vmatpush.bf16.msra.mxu2 %v667_v36 }
  0x29   : > { %363 = vmatpush.bf16.msra.mxu1 %v671_v37  ;;  %750 = vmatpush.bf16.msra.mxu3 %v671_v37 }
  0x2c   : > { %345 = vmatpush.bf16.msra.mxu0 %v659_v42  ;;  %743 = vmatpush.bf16.msra.mxu2 %v659_v42 }
  0x2d   : > { %364 = vmatpush.bf16.msra.mxu1 %v663_v43  ;;  %751 = vmatpush.bf16.msra.mxu3 %v663_v43 }
  0x30   : > { %346 = vmatpush.bf16.msra.mxu0 %v651_v48  ;;  %744 = vmatpush.bf16.msra.mxu2 %v651_v48 }
  0x31   : > { %365 = vmatpush.bf16.msra.mxu1 %v655_v49  ;;  %752 = vmatpush.bf16.msra.mxu3 %v655_v49 }
  0x33   : > { %347 = vmatmul.bf16.vlgmr.msra.gmra.mxu0 %v719_v50  ;;  %352 = vmatmul.bf16.vlgmr.msra.gmra.mxu2 %v720_v51 }
  0x34   : > { %366 = vmatmul.bf16.vlgmr.msra.gmra.mxu1 %v719_v50  ;;  %371 = vmatmul.bf16.vlgmr.msra.gmra.mxu3 %v720_v51 }
  0xb0   : > { %v957_v52 = vpop.f32.mrf.mxu0 }
  0xb1   : > { %v959_v53 = vpop.f32.mrf.mxu1 }
  0xb6   : > { %v961_v54 = vpop.f32.mrf.mxu2 }
  0xb7   : > { %v963_v55 = vpop.f32.mrf.mxu3 }
  0xb8   : > { %v965_v56 = vpop.f32.mrf.mxu0 }
  0xb9   : > { %v967_v57 = vpop.f32.mrf.mxu1 }
  0xbb   : > { %379 = sbr.rel (%p712_p5) target bundleno = 219 (0xdb), region = 44 }
  0xbe   : > { %v969_v58 = vpop.f32.mrf.mxu2 }
  0xbf   : > { %v971_v59 = vpop.f32.mrf.mxu3 }
  0xc0   : > { %v381_v60 = vadd.f32 %v965_v56, %v957_v52  ;;  %v390_v61 = vadd.f32 %v967_v57, %v959_v53  ;;  %v412_v62 = vmul.f32 %v957_v52, %v957_v52  ;;  %v413_v63 = vmul.f32 %v959_v53, %v959_v53  ;;  %v380_v38 = vld [vmem:[#allocation2] sm:$0x3]  ;;  %v411_v45 = vld [vmem:[#allocation3] sm:$0x3] }
  0xc1   : > { %v414_v0 = vmul.f32 %v965_v56, %v965_v56  ;;  %v415_v1 = vmul.f32 %v967_v57, %v967_v57  ;;  %v416_v4 = vmul.f32 %v961_v54, %v961_v54  ;;  %v417_v5 = vmul.f32 %v963_v55, %v963_v55 }
  0xc2   : > { %v382_v2 = vadd.f32 %v381_v60, %v961_v54  ;;  %v391_v3 = vadd.f32 %v390_v61, %v963_v55  ;;  %v418_v6 = vmul.f32 %v969_v58, %v969_v58  ;;  %v419_v10 = vmul.f32 %v971_v59, %v971_v59 }
  0xc3   : > { %v420_v7 = vadd.f32 %v414_v0, %v412_v62  ;;  %v429_v11 = vadd.f32 %v415_v1, %v413_v63  ;;  %v406_v35 = vlaneseq  ;;  %vm402_vm1 = vcmask 1040384  }
  0xc4   : > { %v383_v8 = vadd.f32 %v382_v2, %v969_v58  ;;  %v392_v9 = vadd.f32 %v391_v3, %v971_v59 }
  0xc5   : > { %v421_v12 = vadd.f32 %v420_v7, %v416_v4  ;;  %v430_v15 = vadd.f32 %v429_v11, %v417_v5  ;;  %vm408_vm2 = vcmp.lt.s32.totalorder %v406_v35, 256 }
  0xc6   : > { %v384_v13 = vrot.slane %v383_v8, 4  ;;  %v393_v14 = vrot.slane %v392_v9, 4 }
  0xc7   : > { %v422_v16 = vadd.f32 %v421_v12, %v418_v6  ;;  %v431_v19 = vadd.f32 %v430_v15, %v419_v10 }
  0xc8   : > { %v385_v17 = vadd.f32 %v384_v13, %v383_v8  ;;  %v394_v18 = vadd.f32 %v393_v14, %v392_v9 }
  0xc9   : > { %v423_v20 = vrot.slane %v422_v16, 4  ;;  %v432_v23 = vrot.slane %v431_v19, 4 }
  0xca   : > { %v386_v21 = vrot.slane %v385_v17, 2  ;;  %v395_v22 = vrot.slane %v394_v18, 2 }
  0xcb   : > { %v424_v24 = vadd.f32 %v423_v20, %v422_v16  ;;  %v433_v27 = vadd.f32 %v432_v23, %v431_v19 }
  0xcc   : > { %v387_v25 = vadd.f32 %v386_v21, %v385_v17  ;;  %v396_v26 = vadd.f32 %v395_v22, %v394_v18 }
  0xcd   : > { %v425_v28 = vrot.slane %v424_v24, 2  ;;  %v434_v31 = vrot.slane %v433_v27, 2 }
  0xce   : > { %v388_v29 = vrot.slane %v387_v25, 1  ;;  %v397_v30 = vrot.slane %v396_v26, 1 }
  0xcf   : > { %v426_v32 = vadd.f32 %v425_v28, %v424_v24  ;;  %v435_v36 = vadd.f32 %v434_v31, %v433_v27 }
  0xd0   : > { %v389_v33 = vadd.f32 %v388_v29, %v387_v25  ;;  %v398_v34 = vadd.f32 %v397_v30, %v396_v26 }
  0xd1   : > { %v427_v37 = vrot.slane %v426_v32, 1  ;;  %v436_v40 = vrot.slane %v435_v36, 1 }
  0xd2   : > { %v401_v39 = vrot.slane %v398_v34, 7 }
  0xd3   : > { %v428_v42 = vadd.f32 %v427_v37, %v426_v32  ;;  %v437_v43 = vadd.f32 %v436_v40, %v435_v36 }
  0xd4   : > { %v403_v41 = vsel %vm402_vm1, %v389_v33, %v401_v39 }
  0xd5   : > { %v405_v44 = vadd.f32 %v403_v41, %v380_v38  ;;  %v440_v46 = vrot.slane %v437_v43, 7 }
  0xd7   : > { %410 = vst.msk [vmem:[#allocation2] sm:$0x3] %vm408_vm2, %v405_v44  ;;  %v441_v47 = vsel %vm402_vm1, %v428_v42, %v440_v46 }
  0xd8   : > { %v443_v48 = vadd.f32 %v441_v47, %v411_v45 }
  0xda   : > { %444 = vst.msk [vmem:[#allocation3] sm:$0x3] %vm408_vm2, %v443_v48 }
  0xdb PF: > { %446 = sbr.rel (!%p215_p4) target bundleno = 510 (0x1fe), region = 48  ;;  %s806_s21 = smov (%p215_p4), 64   ;;  %v476_v18 = vld [vmem:[%s1042_s2] sm:$0x1] (%p215_p4)  ;;  %vm497_vm6 = vcmask (%p215_p4), 523264   ;;  %v504_v27 = vlaneseq (%p215_p4)  ;;  %vm501_vm7 = vcmask (%p215_p4), 1040384  }
  0xdc   : > { %v489_v24 = vld [vmem:[%s1043_s3] sm:$0x1] (%p215_p4) }
  0xdd   : > { %vm506_vm8 = vcmp.lt.s32.totalorder (%p215_p4), %v504_v27, 256 }
  0xde   : > { %v447_v49 = vld [vmem:[#allocation2] sm:$0x3] (%p215_p4) }
  0xdf   : > { %450 = vrot.lane.b32.xlu0 (%p215_p4), %v447_v49, %s806_s21  ;;  %v459_v51 = vrot.slane (%p215_p4), %v447_v49, 1 }
  0xe1   : > { %v448_v50 = vld [vmem:[#allocation3] sm:$0x3] }
  0xe2   : > { %v462_v0 = vrot.slane %v448_v50, 1 }
  0xe7   : > { %455 = vrot.lane.b32.xlu0 %v448_v50, %s806_s21 }
 0x151   : > { %v451_v60 = vpop.permute.xlu0 %450 }
 0x152   : > { %v453_v61 = vadd.f32 %v451_v60, %v447_v49  ;;  %v465_v63 = vrot.slane %v451_v60, 1 }
 0x154   : > { %v461_v62 = vadd.f32 %v459_v51, %v453_v61 }
 0x156   : > { %v467_v1 = vadd.f32 %v465_v63, %v461_v62 }
 0x158   : > { %v471_v4 = vmul.f32 0.0078125, %v467_v1 }
 0x159   : > { %v456_v2 = vpop.permute.xlu0 %455 }
 0x15a   : > { %v458_v3 = vadd.f32 %v456_v2, %v448_v50  ;;  %v468_v6 = vrot.slane %v456_v2, 1  ;;  %v473_v8 = vmul.f32 %v471_v4, %v471_v4 }
 0x15c   : > { %v464_v5 = vadd.f32 %v462_v0, %v458_v3 }
 0x15e   : > { %v470_v7 = vadd.f32 %v468_v6, %v464_v5 }
 0x160   : > { %v472_v9 = vmul.f32 0.0078125, %v470_v7 }
 0x162   : > { %v474_v10 = vsub.f32 %v472_v9, %v473_v8 }
 0x164   : > { %v475_v11 = vmax.f32 %v474_v10, 0.0 }
 0x166   : > { %v477_v12 = vadd.f32 1e-05, %v475_v11 }
 0x168   : > { %779 = vrsqrt.f32 %v477_v12  ;;  %vm484_vm4 = vweird.f32 %v477_v12 }
 0x16e   : > { %v780_v13 = vpop.eup %779 }
 0x16f   : > { %v479_v14 = vmul.f32 %v780_v13, %v477_v12  ;;  %vm485_vm3 = vweird.f32 %v780_v13 }
 0x170   : > { %vm486_vm5 = vmor %vm484_vm4, %vm485_vm3 }
 0x171   : > { %v480_v15 = vmul.f32 %v780_v13, %v479_v14 }
 0x173   : > { %v481_v16 = vmul.f32 0.5, %v480_v15 }
 0x175   : > { %v482_v17 = vsub.f32 1.5, %v481_v16 }
 0x177   : > { %v483_v19 = vmul.f32 %v780_v13, %v482_v17 }
 0x179   : > { %v487_v20 = vsel %vm486_vm5, %v780_v13, %v483_v19 }
 0x17a   : > { %v488_v21 = vmul.f32 %v487_v20, %v476_v18 }
 0x17c   : > { %v493_v22 = vperm.slane %v488_v21, 0  ;;  %v490_v23 = vmul.f32 %v488_v21, %v471_v4 }
 0x17e   : > { %494 = vrot.lane.b32.xlu1 %v493_v22, %s806_s21  ;;  %v491_v25 = vsub.f32 %v489_v24, %v490_v23 }
 0x180   : > { %v510_v26 = vperm.slane %v491_v25, 0 }
 0x186   : > { %511 = vrot.lane.b32.xlu1 %v510_v26, %s806_s21 }
 0x1f0   : > { %v495_v28 = vpop.permute.xlu1 %494 }
 0x1f1   : > { %v498_v29 = vsel %vm497_vm6, %v488_v21, %v495_v28 }
 0x1f2   : > { %v500_v30 = vrot.slane %v498_v29, 7 }
 0x1f4   : > { %v502_v31 = vsel %vm501_vm7, %v498_v29, %v500_v30 }
 0x1f5   : > { %508 = vst.msk [vmem:[#allocation4] sm:$0x3] %vm506_vm8, %v502_v31 }
 0x1f8   : > { %v512_v32 = vpop.permute.xlu1 %511 }
 0x1f9   : > { %v514_v33 = vsel %vm497_vm6, %v491_v25, %v512_v32 }
 0x1fa   : > { %v516_v34 = vrot.slane %v514_v33, 7 }
 0x1fc   : > { %v517_v35 = vsel %vm501_vm7, %v514_v33, %v516_v34 }
 0x1fd   : > { %519 = vst.msk [vmem:[#allocation5] sm:$0x3] %vm506_vm8, %v517_v35 }
 0x1fe PF: > { %p713_p6 = scmp.ne.s32.totalorder %s795_s15, 1 }
 0x200   : > { %523 = sbr.rel (%p713_p6) target bundleno = 532 (0x214), region = 52 }
 0x205   : > { %v524_v36 = vld [vmem:[#allocation4] sm:$0x3]  ;;  %v538_v37 = vld [vmem:[#allocation5] sm:$0x3] }
 0x206   : > { %v526_v38 = vperm.slane %v524_v36, 0  ;;  %v527_v39 = vperm.slane %v524_v36, 1  ;;  %v540_v40 = vperm.slane %v538_v37, 0  ;;  %v541_v41 = vperm.slane %v538_v37, 1 }
 0x208   : > { %v530_v42 = vmul.f32 %v526_v38, %v957_v52  ;;  %v531_v43 = vmul.f32 %v527_v39, %v959_v53  ;;  %v532_v44 = vmul.f32 %v526_v38, %v965_v56  ;;  %v533_v45 = vmul.f32 %v527_v39, %v967_v57 }
 0x209   : > { %v534_v46 = vmul.f32 %v526_v38, %v961_v54  ;;  %v535_v47 = vmul.f32 %v527_v39, %v963_v55  ;;  %v536_v48 = vmul.f32 %v526_v38, %v969_v58  ;;  %v537_v49 = vmul.f32 %v527_v39, %v971_v59 }
 0x20a   : > { %v544_v50 = vadd.f32 %v540_v40, %v530_v42  ;;  %v545_v51 = vadd.f32 %v541_v41, %v531_v43  ;;  %v546_v60 = vadd.f32 %v540_v40, %v532_v44  ;;  %v547_v61 = vadd.f32 %v541_v41, %v533_v45 }
 0x20b   : > { %v548_v62 = vadd.f32 %v540_v40, %v534_v46  ;;  %v549_v52 = vadd.f32 %v541_v41, %v535_v47  ;;  %v550_v63 = vadd.f32 %v540_v40, %v536_v48  ;;  %v551_v53 = vadd.f32 %v541_v41, %v537_v49 }
 0x20c   : > { %v552_v0 = vmax.f32 %v544_v50, 0.0  ;;  %v553_v56 = vmax.f32 %v545_v51, 0.0  ;;  %v554_v1 = vmax.f32 %v546_v60, 0.0  ;;  %v555_v57 = vmax.f32 %v547_v61, 0.0 }
 0x20d   : > { %v556_v2 = vmax.f32 %v548_v62, 0.0  ;;  %v557_v54 = vmax.f32 %v549_v52, 0.0  ;;  %v558_v3 = vmax.f32 %v550_v63, 0.0  ;;  %v559_v55 = vmax.f32 %v551_v53, 0.0 }
 0x20e   : > { %v560_v4 = vpack.c.bf16 %v553_v56, %v552_v0  ;;  %v561_v58 = vpack.c.bf16 %v555_v57, %v554_v1 }
 0x20f   : > { %v562_v5 = vpack.c.bf16 %v557_v54, %v556_v2  ;;  %v563_v59 = vpack.c.bf16 %v559_v55, %v558_v3 }
 0x210   : > { %564 = vst [vmem:[%s1044_s4] sm:$0xff] %v560_v4 }
 0x211   : > { %565 = vst [vmem:[%s1044_s4 + $0x8] sm:$0xff] %v561_v58 }
 0x212   : > { %566 = vst [vmem:[%s1044_s4 + $0x10] sm:$0xff] %v562_v5 }
 0x213   : > { %567 = vst [vmem:[%s1044_s4 + $0x18] sm:$0xff] %v563_v59 }
 0x214 PF: > { %s14_s17 = sadd.s32 1, %s803_s17   ;;  %s1045_s15 = smov %s799_s16 }
 0x215   : > { %p11_p7 = scmp.ge.s32.totalorder %s14_s17, 4   ;;  %s1046_s16 = smov %s1048_s18 }
 0x217   :  { %13 = sbr.rel (!%p11_p7) target bundleno = 2 (0x2), region = 82 }

// kernel: decoder_pallas.6
= control target key start
LH: loop header
LB: loop body
LE: loop exit
PB: predicated region body
PF: predicated region fallthrough
CT: control target
= control target key end

     0   :  { %s915_s15 = smov 0   ;;  %s917_s16 = smov 0   ;;  %s1135_s0 = inlined_call_operand.vmem [shape: bf16[128,64], index: 0, kind: input, shape index: {}]   ;;  %s1136_s1 = inlined_call_operand.vmem [shape: bf16[64,128], index: 1, kind: input, shape index: {}]   ;;  %s1137_s2 = inlined_call_operand.vmem [shape: f32[1,32], index: 2, kind: input, shape index: {}]   ;;  %s1138_s3 = inlined_call_operand.vmem [shape: f32[1,32], index: 3, kind: input, shape index: {}]   ;;  %s1139_s4 = inlined_call_operand.vmem [shape: bf16[128,128], index: 4, kind: output, shape index: {}]  }
   0x1   :  { %s919_s17 = smov 0  }
   0x2 LB: > { %s26_s18 = sadd.s32 1, %s880_s16  ;;  %p694_p0 = scmp.ge.s32.totalorder %s884_s17, 1  ;;  %s884_s17 = sphi %s919_s17, %s14_s17   ;;  %s880_s16 = sphi %s917_s16, %s1141_s16   ;;  %s876_s15 = sphi %s915_s15, %s1140_s15  }
   0x3   : > { %p28_p1 = scmp.ge.s32.totalorder %s26_s18, 2  ;;  %p175_p2 = scmp.lt.s32.totalorder %s884_s17, 3 }
   0x5   : > { %s1143_s18 = smov (%p28_p1, %s26_s18), 0  ;;  %p176_p3 = pnand %p694_p0, %p175_p2 }
   0x6   : > { %p214_p4 = scmp.eq.s32.totalorder (!%p176_p3), %s876_s15, 0 }
   0x7   : > { %179 = sbr.rel (%p176_p3) target bundleno = 556 (0x22c), region = 36 }
   0xc   : > { %219 = sbr.rel (!%p214_p4) target bundleno = 17 (0x11), region = 40  ;;  %v886_v0 = vmov (%p214_p4), 0.0  }
   0xd   : > { %220 = vst [vmem:[#allocation2] sm:$0x1] (%p214_p4), %v886_v0 }
   0xe   : > { %221 = vst [vmem:[#allocation3] sm:$0x1] (%p214_p4), %v886_v0 }
  0x11 PF: > { %v770_v1 = vld [vmem:[%s1136_s1 + $0x18] sm:$0xff]  ;;  %v769_v2 = vld [vmem:[%s1136_s1 + $0x10] sm:$0xff]  ;;  %v768_v3 = vld [vmem:[%s1136_s1 + $0x8] sm:$0xff]  ;;  %vm310_vm0 = vcmask 523264   ;;  %p752_p5 = scmp.ne.s32.totalorder %s876_s15, 0 }
  0x12   : > { %339 = vmatpush.bf16.msra.mxu0 %v770_v1  ;;  %818 = vmatpush.bf16.msra.mxu1 %v770_v1  ;;  %v767_v4 = vld [vmem:[%s1136_s1] sm:$0xff]  ;;  %v761_v6 = vld [vmem:[%s1135_s0 + $0x10] sm:$0xff]  ;;  %v760_v9 = vld [vmem:[%s1135_s0 + $0x8] sm:$0xff] }
  0x13   : > { %819 = vmatpush.bf16.msra.mxu2 %v770_v1  ;;  %820 = vmatpush.bf16.msra.mxu3 %v770_v1  ;;  %v759_v5 = vld [vmem:[%s1135_s0] sm:$0xff]  ;;  %v765_v8 = vld [vmem:[%s1135_s0 + $0x30] sm:$0xff]  ;;  %v762_v10 = vld [vmem:[%s1135_s0 + $0x18] sm:$0xff] }
  0x14   : > { %v763_v7 = vld [vmem:[%s1135_s0 + $0x20] sm:$0xff]  ;;  %v764_v11 = vld [vmem:[%s1135_s0 + $0x28] sm:$0xff]  ;;  %v766_v12 = vld [vmem:[%s1135_s0 + $0x38] sm:$0xff] }
  0x16   : > { %340 = vmatpush.bf16.msra.mxu0 %v769_v2  ;;  %821 = vmatpush.bf16.msra.mxu1 %v769_v2 }
  0x17   : > { %822 = vmatpush.bf16.msra.mxu2 %v769_v2  ;;  %823 = vmatpush.bf16.msra.mxu3 %v769_v2 }
  0x1a   : > { %341 = vmatpush.bf16.msra.mxu0 %v768_v3  ;;  %824 = vmatpush.bf16.msra.mxu1 %v768_v3 }
  0x1b   : > { %825 = vmatpush.bf16.msra.mxu2 %v768_v3  ;;  %826 = vmatpush.bf16.msra.mxu3 %v768_v3 }
  0x1e   : > { %342 = vmatpush.bf16.msra.mxu0 %v767_v4  ;;  %827 = vmatpush.bf16.msra.mxu1 %v767_v4 }
  0x1f   : > { %828 = vmatpush.bf16.msra.mxu2 %v767_v4  ;;  %829 = vmatpush.bf16.msra.mxu3 %v767_v4 }
  0x21   : > { %744 = vmatmul.msk.bf16.vlgmr.msra.gmra.mxu0 %vm310_vm0, %v759_v5  ;;  %746 = vmatmul.msk.bf16.vlgmr.msra.gmra.mxu1 %vm310_vm0, %v761_v6 }
  0x22   : > { %748 = vmatmul.msk.bf16.vlgmr.msra.gmra.mxu2 %vm310_vm0, %v763_v7  ;;  %750 = vmatmul.msk.bf16.vlgmr.msra.gmra.mxu3 %vm310_vm0, %v765_v8 }
  0x31   : > { %745 = vmatmul.msk.bf16.gmra.mxu0 %vm310_vm0, %v760_v9  ;;  %747 = vmatmul.msk.bf16.gmra.mxu1 %vm310_vm0, %v762_v10 }
  0x32   : > { %749 = vmatmul.msk.bf16.gmra.mxu2 %vm310_vm0, %v764_v11  ;;  %751 = vmatmul.msk.bf16.gmra.mxu3 %vm310_vm0, %v766_v12 }
  0x9e   : > { %v982_v13 = vpop.f32.mrf.mxu0  ;;  %v984_v14 = vpop.f32.mrf.mxu1 }
  0xa5   : > { %v986_v15 = vpop.f32.mrf.mxu2  ;;  %v988_v16 = vpop.f32.mrf.mxu3 }
  0xa6   : > { %v990_v17 = vpop.f32.mrf.mxu0  ;;  %v992_v18 = vpop.f32.mrf.mxu1 }
  0xad   : > { %v994_v19 = vpop.f32.mrf.mxu2  ;;  %v996_v20 = vpop.f32.mrf.mxu3 }
  0xae   : > { %v998_v21 = vpop.f32.mrf.mxu0  ;;  %v1000_v22 = vpop.f32.mrf.mxu1 }
  0xb5   : > { %v1002_v23 = vpop.f32.mrf.mxu2  ;;  %v1004_v24 = vpop.f32.mrf.mxu3 }
  0xb6   : > { %v1006_v25 = vpop.f32.mrf.mxu0  ;;  %v1008_v26 = vpop.f32.mrf.mxu1 }
  0xb9   : > { %386 = sbr.rel (%p752_p5) target bundleno = 237 (0xed), region = 44 }
  0xbd   : > { %v1010_v27 = vpop.f32.mrf.mxu2  ;;  %v1012_v28 = vpop.f32.mrf.mxu3 }
  0xbe   : > { %v388_v29 = vadd.f32 %v990_v17, %v982_v13  ;;  %v412_v30 = vmul.f32 %v982_v13, %v982_v13  ;;  %v413_v31 = vmul.f32 %v990_v17, %v990_v17  ;;  %v414_v33 = vmul.f32 %v998_v21, %v998_v21 }
  0xbf   : > { %v415_v35 = vmul.f32 %v1006_v25, %v1006_v25  ;;  %v416_v38 = vmul.f32 %v984_v14, %v984_v14  ;;  %v417_v41 = vmul.f32 %v992_v18, %v992_v18  ;;  %v418_v44 = vmul.f32 %v1000_v22, %v1000_v22 }
  0xc0   : > { %v389_v32 = vadd.f32 %v388_v29, %v998_v21  ;;  %v428_v36 = vadd.f32 %v413_v31, %v412_v30  ;;  %v419_v47 = vmul.f32 %v1008_v26, %v1008_v26  ;;  %v420_v50 = vmul.f32 %v986_v15, %v986_v15 }
  0xc1   : > { %v421_v53 = vmul.f32 %v994_v19, %v994_v19  ;;  %v422_v56 = vmul.f32 %v1002_v23, %v1002_v23  ;;  %v423_v59 = vmul.f32 %v1010_v27, %v1010_v27  ;;  %v424_v62 = vmul.f32 %v988_v16, %v988_v16 }
  0xc2   : > { %v390_v34 = vadd.f32 %v389_v32, %v1006_v25  ;;  %v429_v39 = vadd.f32 %v428_v36, %v414_v33  ;;  %v425_v1 = vmul.f32 %v996_v20, %v996_v20  ;;  %v426_v4 = vmul.f32 %v1004_v24, %v1004_v24 }
  0xc3   : > { %v427_v7 = vmul.f32 %v1012_v28, %v1012_v28 }
  0xc4   : > { %v391_v37 = vadd.f32 %v390_v34, %v984_v14  ;;  %v430_v42 = vadd.f32 %v429_v39, %v415_v35  ;;  %v387_v35 = vld [vmem:[#allocation2] sm:$0x1] }
  0xc6   : > { %v392_v40 = vadd.f32 %v391_v37, %v992_v18  ;;  %v431_v45 = vadd.f32 %v430_v42, %v416_v38 }
  0xc8   : > { %v393_v43 = vadd.f32 %v392_v40, %v1000_v22  ;;  %v432_v48 = vadd.f32 %v431_v45, %v417_v41  ;;  %v411_v40 = vld [vmem:[#allocation3] sm:$0x1] }
  0xca   : > { %v394_v46 = vadd.f32 %v393_v43, %v1008_v26  ;;  %v433_v51 = vadd.f32 %v432_v48, %v418_v44 }
  0xcc   : > { %v395_v49 = vadd.f32 %v394_v46, %v986_v15  ;;  %v434_v54 = vadd.f32 %v433_v51, %v419_v47 }
  0xce   : > { %v396_v52 = vadd.f32 %v395_v49, %v994_v19  ;;  %v435_v57 = vadd.f32 %v434_v54, %v420_v50 }
  0xd0   : > { %v397_v55 = vadd.f32 %v396_v52, %v1002_v23  ;;  %v436_v60 = vadd.f32 %v435_v57, %v421_v53 }
  0xd2   : > { %v398_v58 = vadd.f32 %v397_v55, %v1010_v27  ;;  %v437_v63 = vadd.f32 %v436_v60, %v422_v56 }
  0xd4   : > { %v399_v61 = vadd.f32 %v398_v58, %v988_v16  ;;  %v438_v2 = vadd.f32 %v437_v63, %v423_v59 }
  0xd6   : > { %v400_v0 = vadd.f32 %v399_v61, %v996_v20  ;;  %v439_v5 = vadd.f32 %v438_v2, %v424_v62 }
  0xd8   : > { %v401_v3 = vadd.f32 %v400_v0, %v1004_v24  ;;  %v440_v8 = vadd.f32 %v439_v5, %v425_v1 }
  0xda   : > { %v402_v6 = vadd.f32 %v401_v3, %v1012_v28  ;;  %v441_v10 = vadd.f32 %v440_v8, %v426_v4 }
  0xdc   : > { %v403_v9 = vrot.slane %v402_v6, 4  ;;  %v442_v12 = vadd.f32 %v441_v10, %v427_v7 }
  0xde   : > { %v404_v11 = vadd.f32 %v403_v9, %v402_v6  ;;  %v443_v30 = vrot.slane %v442_v12, 4 }
  0xe0   : > { %v405_v29 = vrot.slane %v404_v11, 2  ;;  %v444_v32 = vadd.f32 %v443_v30, %v442_v12 }
  0xe2   : > { %v406_v31 = vadd.f32 %v405_v29, %v404_v11  ;;  %v445_v34 = vrot.slane %v444_v32, 2 }
  0xe4   : > { %v407_v33 = vrot.slane %v406_v31, 1  ;;  %v446_v37 = vadd.f32 %v445_v34, %v444_v32 }
  0xe6   : > { %v408_v36 = vadd.f32 %v407_v33, %v406_v31  ;;  %v447_v39 = vrot.slane %v446_v37, 1 }
  0xe8   : > { %v409_v38 = vadd.f32 %v408_v36, %v387_v35  ;;  %v448_v41 = vadd.f32 %v447_v39, %v446_v37 }
  0xea   : > { %410 = vst [vmem:[#allocation2] sm:$0x1] %v409_v38  ;;  %v449_v42 = vadd.f32 %v448_v41, %v411_v40 }
  0xec   : > { %450 = vst [vmem:[#allocation3] sm:$0x1] %v449_v42 }
  0xed PF: > { %452 = sbr.rel (!%p214_p4) target bundleno = 530 (0x212), region = 48  ;;  %s887_s21 = smov (%p214_p4), 96   ;;  %v486_v5 = vld [vmem:[%s1137_s2] sm:$0x1] (%p214_p4)  ;;  %vm513_vm4 = vcmask (%p214_p4), 261120   ;;  %vm516_vm5 = vcmask (%p214_p4), 785408  }
  0xee   : > { %s888_s22 = smov (%p214_p4), 64   ;;  %s889_s23 = smov (%p214_p4), 32   ;;  %v499_v8 = vld [vmem:[%s1138_s3] sm:$0x1] (%p214_p4) }
  0xf1   : > { %v453_v43 = vld [vmem:[#allocation2] sm:$0x1] (%p214_p4) }
  0xf2   : > { %456 = vrot.lane.b32.xlu0 %v453_v43, %s887_s21  ;;  %465 = vrot.lane.b32.xlu1 %v453_v43, %s888_s22 }
  0xf3   : > { %473 = vrot.lane.b32.xlu2 %v453_v43, %s889_s23  ;;  %v454_v44 = vld [vmem:[#allocation3] sm:$0x1] }
  0xfa   : > { %461 = vrot.lane.b32.xlu0 %v454_v44, %s887_s21  ;;  %469 = vrot.lane.b32.xlu1 %v454_v44, %s888_s22 }
  0xfb   : > { %477 = vrot.lane.b32.xlu2 %v454_v44, %s889_s23 }
 0x14d   : > { %v474_v45 = vpop.permute.xlu2 %473 }
 0x155   : > { %v478_v54 = vpop.permute.xlu2 %477 }
 0x164   : > { %v457_v46 = vpop.permute.xlu0 %456  ;;  %v466_v47 = vpop.permute.xlu1 %465 }
 0x165   : > { %v459_v48 = vadd.f32 %v457_v46, %v453_v43 }
 0x167   : > { %v468_v49 = vadd.f32 %v466_v47, %v459_v48 }
 0x169   : > { %v476_v50 = vadd.f32 %v474_v45, %v468_v49 }
 0x16b   : > { %v481_v55 = vmul.f32 0.001953125, %v476_v50 }
 0x16c   : > { %v462_v51 = vpop.permute.xlu0 %461  ;;  %v470_v52 = vpop.permute.xlu1 %469 }
 0x16d   : > { %v464_v53 = vadd.f32 %v462_v51, %v454_v44  ;;  %v483_v58 = vmul.f32 %v481_v55, %v481_v55 }
 0x16f   : > { %v472_v56 = vadd.f32 %v470_v52, %v464_v53 }
 0x171   : > { %v480_v57 = vadd.f32 %v478_v54, %v472_v56 }
 0x173   : > { %v482_v59 = vmul.f32 0.001953125, %v480_v57 }
 0x175   : > { %v484_v60 = vsub.f32 %v482_v59, %v483_v58 }
 0x177   : > { %v485_v61 = vmax.f32 %v484_v60, 0.0 }
 0x179   : > { %v487_v62 = vadd.f32 1e-05, %v485_v61 }
 0x17b   : > { %858 = vrsqrt.f32 %v487_v62  ;;  %vm494_vm2 = vweird.f32 %v487_v62 }
 0x181   : > { %v859_v63 = vpop.eup %858 }
 0x182   : > { %v489_v0 = vmul.f32 %v859_v63, %v487_v62  ;;  %vm495_vm1 = vweird.f32 %v859_v63 }
 0x183   : > { %vm496_vm3 = vmor %vm494_vm2, %vm495_vm1 }
 0x184   : > { %v490_v1 = vmul.f32 %v859_v63, %v489_v0 }
 0x186   : > { %v491_v2 = vmul.f32 0.5, %v490_v1 }
 0x188   : > { %v492_v3 = vsub.f32 1.5, %v491_v2 }
 0x18a   : > { %v493_v4 = vmul.f32 %v859_v63, %v492_v3 }
 0x18c   : > { %v497_v6 = vsel %vm496_vm3, %v859_v63, %v493_v4 }
 0x18d   : > { %v498_v7 = vmul.f32 %v497_v6, %v486_v5 }
 0x18f   : > { %v503_v9 = vperm.slane %v498_v7, 0  ;;  %v500_v10 = vmul.f32 %v498_v7, %v481_v55 }
 0x191   : > { %507 = vrot.lane.b32.xlu2 %v503_v9, %s888_s22  ;;  %504 = vrot.lane.b32.xlu0 %v503_v9, %s889_s23  ;;  %v501_v11 = vsub.f32 %v499_v8, %v500_v10 }
 0x193   : > { %v520_v12 = vperm.slane %v501_v11, 0 }
 0x195   : > { %521 = vrot.lane.b32.xlu1 %v520_v12, %s889_s23 }
 0x199   : > { %527 = vrot.lane.b32.xlu2 %v520_v12, %s887_s21  ;;  %524 = vrot.lane.b32.xlu0 %v520_v12, %s888_s22 }
 0x19d   : > { %510 = vrot.lane.b32.xlu1 %v503_v9, %s887_s21 }
 0x1eb   : > { %v508_v29 = vpop.permute.xlu2 %507 }
 0x1f3   : > { %v528_v34 = vpop.permute.xlu2 %527 }
 0x203   : > { %v505_v30 = vpop.permute.xlu0 %504 }
 0x204   : > { %v514_v35 = vsel %vm513_vm4, %v498_v7, %v505_v30 }
 0x205   : > { %v515_v38 = vsel %vm310_vm0, %v514_v35, %v508_v29 }
 0x207   : > { %v522_v31 = vpop.permute.xlu1 %521 }
 0x208   : > { %v530_v33 = vsel %vm513_vm4, %v501_v11, %v522_v31 }
 0x20b   : > { %v525_v32 = vpop.permute.xlu0 %524 }
 0x20c   : > { %v531_v36 = vsel %vm310_vm0, %v530_v33, %v525_v32 }
 0x20d   : > { %v532_v37 = vsel %vm516_vm5, %v531_v36, %v528_v34 }
 0x20e   : > { %533 = vst [vmem:[#allocation5] sm:$0x1] %v532_v37 }
 0x20f   : > { %v511_v39 = vpop.permute.xlu1 %510 }
 0x210   : > { %v517_v40 = vsel %vm516_vm5, %v515_v38, %v511_v39 }
 0x211   : > { %518 = vst [vmem:[#allocation4] sm:$0x1] %v517_v40 }
 0x212 PF: > { %p753_p6 = scmp.ne.s32.totalorder %s876_s15, 1 }
 0x214   : > { %537 = sbr.rel (%p753_p6) target bundleno = 556 (0x22c), region = 52 }
 0x219   : > { %v860_v41 = vld [vmem:[#allocation4] ss:$0 sm:$0xff]  ;;  %v861_v42 = vld [vmem:[#allocation5] ss:$0 sm:$0xff] }
 0x21a   : > { %v542_v43 = vmul.f32 %v860_v41, %v982_v13  ;;  %v543_v44 = vmul.f32 %v860_v41, %v990_v17  ;;  %v544_v45 = vmul.f32 %v860_v41, %v998_v21  ;;  %v545_v46 = vmul.f32 %v860_v41, %v1006_v25 }
 0x21b   : > { %v546_v47 = vmul.f32 %v860_v41, %v984_v14  ;;  %v547_v48 = vmul.f32 %v860_v41, %v992_v18  ;;  %v548_v49 = vmul.f32 %v860_v41, %v1000_v22  ;;  %v549_v50 = vmul.f32 %v860_v41, %v1008_v26 }
 0x21c   : > { %v562_v51 = vadd.f32 %v861_v42, %v542_v43  ;;  %v563_v52 = vadd.f32 %v861_v42, %v543_v44  ;;  %v564_v53 = vadd.f32 %v861_v42, %v544_v45  ;;  %v565_v54 = vadd.f32 %v861_v42, %v545_v46 }
 0x21d   : > { %v566_v55 = vadd.f32 %v861_v42, %v546_v47  ;;  %v567_v13 = vadd.f32 %v861_v42, %v547_v48  ;;  %v568_v56 = vadd.f32 %v861_v42, %v548_v49  ;;  %v569_v17 = vadd.f32 %v861_v42, %v549_v50 }
 0x21e   : > { %v578_v57 = vmax.f32 %v562_v51, 0.0  ;;  %v579_v21 = vmax.f32 %v563_v52, 0.0  ;;  %v580_v58 = vmax.f32 %v564_v53, 0.0  ;;  %v581_v25 = vmax.f32 %v565_v54, 0.0 }
 0x21f   : > { %v582_v59 = vmax.f32 %v566_v55, 0.0  ;;  %v583_v14 = vmax.f32 %v567_v13, 0.0  ;;  %v584_v60 = vmax.f32 %v568_v56, 0.0  ;;  %v585_v18 = vmax.f32 %v569_v17, 0.0 }
 0x220   : > { %v774_v61 = vpack.c.bf16 %v579_v21, %v578_v57  ;;  %v779_v22 = vpack.c.bf16 %v581_v25, %v580_v58  ;;  %v550_v26 = vmul.f32 %v860_v41, %v986_v15  ;;  %v551_v62 = vmul.f32 %v860_v41, %v994_v19 }
 0x221   : > { %v784_v63 = vpack.c.bf16 %v583_v14, %v582_v59  ;;  %v789_v0 = vpack.c.bf16 %v585_v18, %v584_v60  ;;  %v552_v1 = vmul.f32 %v860_v41, %v1002_v23  ;;  %v553_v2 = vmul.f32 %v860_v41, %v1010_v27 }
 0x222   : > { %775 = vst [vmem:[%s1139_s4] sm:$0xff] %v774_v61   ;;  %v570_v3 = vadd.f32 %v861_v42, %v550_v26  ;;  %v571_v4 = vadd.f32 %v861_v42, %v551_v62  ;;  %v554_v5 = vmul.f32 %v860_v41, %v988_v16  ;;  %v555_v6 = vmul.f32 %v860_v41, %v996_v20 }
 0x223   : > { %811 = vst [vmem:[%s1139_s4 + $0x8] sm:$0xff] %v779_v22   ;;  %v572_v15 = vadd.f32 %v861_v42, %v552_v1  ;;  %v573_v19 = vadd.f32 %v861_v42, %v553_v2  ;;  %v556_v23 = vmul.f32 %v860_v41, %v1004_v24  ;;  %v557_v27 = vmul.f32 %v860_v41, %v1012_v28 }
 0x224   : > { %812 = vst [vmem:[%s1139_s4 + $0x10] sm:$0xff] %v784_v63   ;;  %v586_v7 = vmax.f32 %v570_v3, 0.0  ;;  %v587_v8 = vmax.f32 %v571_v4, 0.0  ;;  %v574_v9 = vadd.f32 %v861_v42, %v554_v5  ;;  %v575_v16 = vadd.f32 %v861_v42, %v555_v6 }
 0x225   : > { %813 = vst [vmem:[%s1139_s4 + $0x18] sm:$0xff] %v789_v0   ;;  %v588_v20 = vmax.f32 %v572_v15, 0.0  ;;  %v589_v10 = vmax.f32 %v573_v19, 0.0  ;;  %v576_v11 = vadd.f32 %v861_v42, %v556_v23  ;;  %v577_v12 = vadd.f32 %v861_v42, %v557_v27 }
 0x226   : > { %v794_v29 = vpack.c.bf16 %v587_v8, %v586_v7  ;;  %v590_v24 = vmax.f32 %v574_v9, 0.0  ;;  %v591_v30 = vmax.f32 %v575_v16, 0.0 }
 0x227   : > { %v799_v28 = vpack.c.bf16 %v589_v10, %v588_v20  ;;  %v592_v31 = vmax.f32 %v576_v11, 0.0  ;;  %v593_v32 = vmax.f32 %v577_v12, 0.0 }
 0x228   : > { %814 = vst [vmem:[%s1139_s4 + $0x20] sm:$0xff] %v794_v29   ;;  %v804_v33 = vpack.c.bf16 %v591_v30, %v590_v24 }
 0x229   : > { %815 = vst [vmem:[%s1139_s4 + $0x28] sm:$0xff] %v799_v28   ;;  %v809_v34 = vpack.c.bf16 %v593_v32, %v592_v31 }
 0x22a   : > { %816 = vst [vmem:[%s1139_s4 + $0x30] sm:$0xff] %v804_v33  }
 0x22b   : > { %817 = vst [vmem:[%s1139_s4 + $0x38] sm:$0xff] %v809_v34  }
 0x22c PF: > { %s14_s17 = sadd.s32 1, %s884_s17   ;;  %s1140_s15 = smov %s880_s16 }
 0x22d   : > { %p11_p7 = scmp.ge.s32.totalorder %s14_s17, 4   ;;  %s1141_s16 = smov %s1143_s18 }
 0x22f   :  { %13 = sbr.rel (!%p11_p7) target bundleno = 2 (0x2), region = 82 }

// kernel: decoder_pallas.7
= control target key start
LH: loop header
LB: loop body
LE: loop exit
PB: predicated region body
PF: predicated region fallthrough
CT: control target
= control target key end

     0   :  { %s1598_s15 = smov 0   ;;  %s1600_s16 = smov 0   ;;  %s2485_s0 = inlined_call_operand.vmem [shape: bf16[512,32], index: 0, kind: input, shape index: {}]   ;;  %s2486_s1 = inlined_call_operand.vmem [shape: bf16[32,128], index: 1, kind: input, shape index: {}]   ;;  %s2487_s2 = inlined_call_operand.vmem [shape: f32[1,128], index: 2, kind: input, shape index: {}]   ;;  %s2488_s3 = inlined_call_operand.vmem [shape: f32[1,128], index: 3, kind: input, shape index: {}]   ;;  %s2489_s4 = inlined_call_operand.vmem [shape: f32[512,128], index: 4, kind: output, shape index: {}]  }
   0x1   :  { %s1602_s17 = smov 0  }
   0x2 LB: > { %s26_s18 = sadd.s32 1, %s1566_s16  ;;  %p1302_p0 = scmp.ge.s32.totalorder %s1570_s17, 1  ;;  %s1570_s17 = sphi %s1602_s17, %s14_s17   ;;  %s1566_s16 = sphi %s1600_s16, %s2575_s16   ;;  %s1562_s15 = sphi %s1598_s15, %s2574_s15  }
   0x3   : > { %p28_p1 = scmp.ge.s32.totalorder %s26_s18, 2  ;;  %p175_p2 = scmp.lt.s32.totalorder %s1570_s17, 3 }
   0x5   : > { %s2577_s18 = smov (%p28_p1, %s26_s18), 0  ;;  %p176_p3 = pnand %p1302_p0, %p175_p2 }
   0x7   : > { %179 = sbr.rel (%p176_p3) target bundleno = 543 (0x21f), region = 36 }
   0xc   : > { %p214_p4 = scmp.eq.s32.totalorder %s1562_s15, 0 }
   0xd   : > { %v1572_v0 = vmov (%p214_p4), 0.0  }
   0xe   : > { %219 = sbr.rel (!%p214_p4) target bundleno = 19 (0x13), region = 40  ;;  %220 = vst [vmem:[#allocation2] sm:$0x1] (%p214_p4), %v1572_v0 }
   0xf   : > { %221 = vst [vmem:[#allocation3] sm:$0x1] (%p214_p4), %v1572_v0 }
  0x13 PF: > { %v1512_v1 = vld [vmem:[%s2486_s1 + $0x8] sm:$0xff]  ;;  %v1511_v2 = vld [vmem:[%s2486_s1] sm:$0xff]  ;;  %vm462_vm0 = vcmask 261120   ;;  %v1481_v11 = vld [vmem:[%s2485_s0 + $0x10] sm:$0xff]  ;;  %p1472_p5 = scmp.ne.s32.totalorder %s1562_s15, 0 }
  0x14   : > { %565 = vmatpush.bf16.msra.mxu0 %v1512_v1  ;;  %1513 = vmatpush.bf16.msra.mxu1 %v1512_v1  ;;  %v1479_v3 = vld [vmem:[%s2485_s0] sm:$0xff]  ;;  %v1480_v7 = vld [vmem:[%s2485_s0 + $0x8] sm:$0xff]  ;;  %v1489_v12 = vld [vmem:[%s2485_s0 + $0x50] sm:$0xff] }
  0x15   : > { %1514 = vmatpush.bf16.msra.mxu2 %v1512_v1  ;;  %1515 = vmatpush.bf16.msra.mxu3 %v1512_v1  ;;  %v1487_v4 = vld [vmem:[%s2485_s0 + $0x40] sm:$0xff]  ;;  %v1488_v8 = vld [vmem:[%s2485_s0 + $0x48] sm:$0xff]  ;;  %v1497_v13 = vld [vmem:[%s2485_s0 + $0x90] sm:$0xff] }
  0x16   : > { %v1495_v5 = vld [vmem:[%s2485_s0 + $0x80] sm:$0xff]  ;;  %v1496_v9 = vld [vmem:[%s2485_s0 + $0x88] sm:$0xff]  ;;  %v1505_v14 = vld [vmem:[%s2485_s0 + $0xd0] sm:$0xff] }
  0x17   : > { %v1503_v6 = vld [vmem:[%s2485_s0 + $0xc0] sm:$0xff]  ;;  %v1504_v10 = vld [vmem:[%s2485_s0 + $0xc8] sm:$0xff]  ;;  %v1482_v15 = vld [vmem:[%s2485_s0 + $0x18] sm:$0xff] }
  0x18   : > { %566 = vmatpush.bf16.msra.mxu0 %v1511_v2  ;;  %1516 = vmatpush.bf16.msra.mxu1 %v1511_v2  ;;  %v1490_v16 = vld [vmem:[%s2485_s0 + $0x58] sm:$0xff]  ;;  %v1483_v19 = vld [vmem:[%s2485_s0 + $0x20] sm:$0xff]  ;;  %v1484_v23 = vld [vmem:[%s2485_s0 + $0x28] sm:$0xff] }
  0x19   : > { %1517 = vmatpush.bf16.msra.mxu2 %v1511_v2  ;;  %1518 = vmatpush.bf16.msra.mxu3 %v1511_v2  ;;  %v1498_v17 = vld [vmem:[%s2485_s0 + $0x98] sm:$0xff]  ;;  %v1491_v20 = vld [vmem:[%s2485_s0 + $0x60] sm:$0xff]  ;;  %v1492_v24 = vld [vmem:[%s2485_s0 + $0x68] sm:$0xff] }
  0x1a   : > { %v1506_v18 = vld [vmem:[%s2485_s0 + $0xd8] sm:$0xff]  ;;  %v1499_v21 = vld [vmem:[%s2485_s0 + $0xa0] sm:$0xff]  ;;  %v1500_v25 = vld [vmem:[%s2485_s0 + $0xa8] sm:$0xff] }
  0x1b   : > { %1440 = vmatmul.msk.bf16.vlgmr.msra.gmra.mxu0 %vm462_vm0, %v1479_v3  ;;  %1448 = vmatmul.msk.bf16.vlgmr.msra.gmra.mxu1 %vm462_vm0, %v1487_v4  ;;  %v1507_v22 = vld [vmem:[%s2485_s0 + $0xe0] sm:$0xff]  ;;  %v1508_v26 = vld [vmem:[%s2485_s0 + $0xe8] sm:$0xff]  ;;  %v1485_v27 = vld [vmem:[%s2485_s0 + $0x30] sm:$0xff] }
  0x1c   : > { %1456 = vmatmul.msk.bf16.vlgmr.msra.gmra.mxu2 %vm462_vm0, %v1495_v5  ;;  %1464 = vmatmul.msk.bf16.vlgmr.msra.gmra.mxu3 %vm462_vm0, %v1503_v6  ;;  %v1493_v28 = vld [vmem:[%s2485_s0 + $0x70] sm:$0xff]  ;;  %v1486_v31 = vld [vmem:[%s2485_s0 + $0x38] sm:$0xff] }
  0x1d   : > { %v1501_v29 = vld [vmem:[%s2485_s0 + $0xb0] sm:$0xff]  ;;  %v1494_v32 = vld [vmem:[%s2485_s0 + $0x78] sm:$0xff] }
  0x1e   : > { %v1509_v30 = vld [vmem:[%s2485_s0 + $0xf0] sm:$0xff]  ;;  %v1502_v33 = vld [vmem:[%s2485_s0 + $0xb8] sm:$0xff] }
  0x1f   : > { %v1510_v34 = vld [vmem:[%s2485_s0 + $0xf8] sm:$0xff] }
  0x2b   : > { %1441 = vmatmul.msk.bf16.gmra.mxu0 %vm462_vm0, %v1480_v7  ;;  %1449 = vmatmul.msk.bf16.gmra.mxu1 %vm462_vm0, %v1488_v8 }
  0x2c   : > { %1457 = vmatmul.msk.bf16.gmra.mxu2 %vm462_vm0, %v1496_v9  ;;  %1465 = vmatmul.msk.bf16.gmra.mxu3 %vm462_vm0, %v1504_v10 }
  0x3b   : > { %1442 = vmatmul.msk.bf16.gmra.mxu0 %vm462_vm0, %v1481_v11  ;;  %1450 = vmatmul.msk.bf16.gmra.mxu1 %vm462_vm0, %v1489_v12 }
  0x3c   : > { %1458 = vmatmul.msk.bf16.gmra.mxu2 %vm462_vm0, %v1497_v13  ;;  %1466 = vmatmul.msk.bf16.gmra.mxu3 %vm462_vm0, %v1505_v14 }
  0x4b   : > { %1443 = vmatmul.msk.bf16.gmra.mxu0 %vm462_vm0, %v1482_v15  ;;  %1451 = vmatmul.msk.bf16.gmra.mxu1 %vm462_vm0, %v1490_v16 }
  0x4c   : > { %1459 = vmatmul.msk.bf16.gmra.mxu2 %vm462_vm0, %v1498_v17  ;;  %1467 = vmatmul.msk.bf16.gmra.mxu3 %vm462_vm0, %v1506_v18 }
  0x5b   : > { %1444 = vmatmul.msk.bf16.gmra.mxu0 %vm462_vm0, %v1483_v19  ;;  %1452 = vmatmul.msk.bf16.gmra.mxu1 %vm462_vm0, %v1491_v20 }
  0x5c   : > { %1460 = vmatmul.msk.bf16.gmra.mxu2 %vm462_vm0, %v1499_v21  ;;  %1468 = vmatmul.msk.bf16.gmra.mxu3 %vm462_vm0, %v1507_v22 }
  0x6b   : > { %1445 = vmatmul.msk.bf16.gmra.mxu0 %vm462_vm0, %v1484_v23  ;;  %1453 = vmatmul.msk.bf16.gmra.mxu1 %vm462_vm0, %v1492_v24 }
  0x6c   : > { %1461 = vmatmul.msk.bf16.gmra.mxu2 %vm462_vm0, %v1500_v25  ;;  %1469 = vmatmul.msk.bf16.gmra.mxu3 %vm462_vm0, %v1508_v26 }
  0x7b   : > { %1446 = vmatmul.msk.bf16.gmra.mxu0 %vm462_vm0, %v1485_v27  ;;  %1454 = vmatmul.msk.bf16.gmra.mxu1 %vm462_vm0, %v1493_v28 }
  0x7c   : > { %1462 = vmatmul.msk.bf16.gmra.mxu2 %vm462_vm0, %v1501_v29  ;;  %1470 = vmatmul.msk.bf16.gmra.mxu3 %vm462_vm0, %v1509_v30 }
  0x8b   : > { %1447 = vmatmul.msk.bf16.gmra.mxu0 %vm462_vm0, %v1486_v31  ;;  %1455 = vmatmul.msk.bf16.gmra.mxu1 %vm462_vm0, %v1494_v32 }
  0x8c   : > { %1463 = vmatmul.msk.bf16.gmra.mxu2 %vm462_vm0, %v1502_v33  ;;  %1471 = vmatmul.msk.bf16.gmra.mxu3 %vm462_vm0, %v1510_v34 }
  0x98   : > { %v1755_v35 = vpop.f32.mrf.mxu0  ;;  %v1757_v36 = vpop.f32.mrf.mxu1 }
  0x99   : > { %2514 = vst [vmem:[#allocation6_spill] sm:$0xff] %v1755_v35 }
  0x9f   : > { %v1759_v37 = vpop.f32.mrf.mxu2  ;;  %v1761_v38 = vpop.f32.mrf.mxu3 }
  0xa0   : > { %2515 = vst [vmem:[#allocation7_spill] sm:$0xff] %v1761_v38  ;;  %v1763_v39 = vpop.f32.mrf.mxu0  ;;  %v1765_v40 = vpop.f32.mrf.mxu1 }
  0xa1   : > { %2516 = vst [vmem:[#allocation8_spill] sm:$0xff] %v1763_v39 }
  0xa7   : > { %v1767_v41 = vpop.f32.mrf.mxu2  ;;  %v1769_v42 = vpop.f32.mrf.mxu3 }
  0xa8   : > { %2517 = vst [vmem:[#allocation9_spill] sm:$0xff] %v1769_v42  ;;  %v1771_v43 = vpop.f32.mrf.mxu0  ;;  %v1773_v44 = vpop.f32.mrf.mxu1 }
  0xa9   : > { %2518 = vst [vmem:[#allocation10_spill] sm:$0xff] %v1771_v43 }
  0xaf   : > { %v1775_v45 = vpop.f32.mrf.mxu2  ;;  %v1777_v46 = vpop.f32.mrf.mxu3 }
  0xb0   : > { %2519 = vst [vmem:[#allocation11_spill] sm:$0xff] %v1777_v46  ;;  %v1779_v47 = vpop.f32.mrf.mxu0  ;;  %v1781_v48 = vpop.f32.mrf.mxu1 }
  0xb7   : > { %v1783_v49 = vpop.f32.mrf.mxu2  ;;  %v1785_v50 = vpop.f32.mrf.mxu3 }
  0xb8   : > { %2520 = vst [vmem:[#allocation12_spill] sm:$0xff] %v1785_v50  ;;  %v1787_v51 = vpop.f32.mrf.mxu0  ;;  %v1789_v52 = vpop.f32.mrf.mxu1 }
  0xbf   : > { %v1791_v53 = vpop.f32.mrf.mxu2  ;;  %v1793_v54 = vpop.f32.mrf.mxu3 }
  0xc0   : > { %2521 = vst [vmem:[#allocation13_spill] sm:$0xff] %v1793_v54  ;;  %v1795_v55 = vpop.f32.mrf.mxu0  ;;  %v1797_v56 = vpop.f32.mrf.mxu1 }
  0xc7   : > { %v1799_v57 = vpop.f32.mrf.mxu2  ;;  %v1801_v58 = vpop.f32.mrf.mxu3 }
  0xc8   : > { %2522 = vst [vmem:[#allocation14_spill] sm:$0xff] %v1801_v58  ;;  %v1803_v59 = vpop.f32.mrf.mxu0  ;;  %v1805_v60 = vpop.f32.mrf.mxu1 }
  0xcf   : > { %v1807_v61 = vpop.f32.mrf.mxu2  ;;  %v1809_v62 = vpop.f32.mrf.mxu3 }
  0xd0   : > { %2523 = vst [vmem:[#allocation15_spill] sm:$0xff] %v1809_v62  ;;  %v1811_v63 = vpop.f32.mrf.mxu0  ;;  %v1813_v0 = vpop.f32.mrf.mxu1 }
  0xd7   : > { %v1815_v1 = vpop.f32.mrf.mxu2  ;;  %v1817_v2 = vpop.f32.mrf.mxu3 }
  0xd8   : > { %2524 = vst [vmem:[#allocation16_spill] sm:$0xff] %v1817_v2  ;;  %v1819_v3 = vpop.f32.mrf.mxu0  ;;  %v1821_v4 = vpop.f32.mrf.mxu1 }
  0xdf   : > { %v1823_v5 = vpop.f32.mrf.mxu2  ;;  %v1825_v6 = vpop.f32.mrf.mxu3 }
  0xe0   : > { %2525 = vst [vmem:[#allocation17_spill] sm:$0xff] %v1825_v6  ;;  %v1827_v7 = vpop.f32.mrf.mxu0  ;;  %v1829_v8 = vpop.f32.mrf.mxu1 }
  0xe7   : > { %v1831_v9 = vpop.f32.mrf.mxu2  ;;  %v1833_v10 = vpop.f32.mrf.mxu3 }
  0xe8   : > { %2526 = vst [vmem:[#allocation18_spill] sm:$0xff] %v1833_v10  ;;  %v1835_v11 = vpop.f32.mrf.mxu0  ;;  %v1837_v12 = vpop.f32.mrf.mxu1 }
  0xef   : > { %v1839_v13 = vpop.f32.mrf.mxu2  ;;  %v1841_v14 = vpop.f32.mrf.mxu3 }
  0xf0   : > { %2527 = vst [vmem:[#allocation19_spill] sm:$0xff] %v1841_v14  ;;  %v1843_v15 = vpop.f32.mrf.mxu0  ;;  %v1845_v16 = vpop.f32.mrf.mxu1 }
  0xf7   : > { %v1847_v17 = vpop.f32.mrf.mxu2  ;;  %v1849_v18 = vpop.f32.mrf.mxu3 }
  0xf8   : > { %2528 = vst [vmem:[#allocation20_spill] sm:$0xff] %v1847_v17  ;;  %v1851_v19 = vpop.f32.mrf.mxu0  ;;  %v1853_v20 = vpop.f32.mrf.mxu1 }
  0xf9   : > { %2529 = vst [vmem:[#allocation21_spill] sm:$0xff] %v1849_v18 }
  0xff   : > { %v1855_v21 = vpop.f32.mrf.mxu2  ;;  %v1857_v22 = vpop.f32.mrf.mxu3 }
 0x100   : > { %2530 = vst [vmem:[#allocation22_spill] sm:$0xff] %v1855_v21  ;;  %v1859_v23 = vpop.f32.mrf.mxu0  ;;  %v1861_v24 = vpop.f32.mrf.mxu1 }
 0x101   : > { %2531 = vst [vmem:[#allocation23_spill] sm:$0xff] %v1857_v22 }
 0x107   : > { %v1863_v25 = vpop.f32.mrf.mxu2  ;;  %v1865_v26 = vpop.f32.mrf.mxu3 }
 0x108   : > { %2532 = vst [vmem:[#allocation24_spill] sm:$0xff] %v1863_v25  ;;  %v1867_v27 = vpop.f32.mrf.mxu0  ;;  %v1869_v28 = vpop.f32.mrf.mxu1 }
 0x109   : > { %2533 = vst [vmem:[#allocation25_spill] sm:$0xff] %v1865_v26 }
 0x10f   : > { %v1871_v29 = vpop.f32.mrf.mxu2  ;;  %v1873_v30 = vpop.f32.mrf.mxu3 }
 0x110   : > { %2534 = vst [vmem:[#allocation26_spill] sm:$0xff] %v1871_v29  ;;  %v1875_v31 = vpop.f32.mrf.mxu0  ;;  %v1877_v32 = vpop.f32.mrf.mxu1 }
 0x111   : > { %2535 = vst [vmem:[#allocation27_spill] sm:$0xff] %v1873_v30 }
 0x115   : > { %730 = sbr.rel (%p1472_p5) target bundleno = 425 (0x1a9), region = 44 }
 0x117   : > { %v1879_v33 = vpop.f32.mrf.mxu2  ;;  %v1881_v34 = vpop.f32.mrf.mxu3 }
 0x118   : > { %2536 = vst [vmem:[#allocation28_spill] sm:$0xff] %v1879_v33 }
 0x119   : > { %2537 = vst [vmem:[#allocation29_spill] sm:$0xff] %v1881_v34 }
 0x11a   : > { %v732_v26 = vadd.f32 %v1763_v39, %v1755_v35  ;;  %v804_v22 = vmul.f32 %v1755_v35, %v1755_v35  ;;  %v805_v30 = vmul.f32 %v1763_v39, %v1763_v39  ;;  %v806_v14 = vmul.f32 %v1771_v43, %v1771_v43 }
 0x11b   : > { %v807_v34 = vmul.f32 %v1779_v47, %v1779_v47  ;;  %v808_v62 = vmul.f32 %v1787_v51, %v1787_v51 }
 0x11c   : > { %v733_v18 = vadd.f32 %v732_v26, %v1771_v43  ;;  %v868_v6 = vadd.f32 %v805_v30, %v804_v22  ;;  %v809_v26 = vmul.f32 %v1795_v55, %v1795_v55 }
 0x11e   : > { %v734_v10 = vadd.f32 %v733_v18, %v1779_v47  ;;  %v869_v35 = vadd.f32 %v868_v6, %v806_v14  ;;  %v810_v18 = vmul.f32 %v1803_v59, %v1803_v59 }
 0x120   : > { %v735_v2 = vadd.f32 %v734_v10, %v1787_v51  ;;  %v870_v39 = vadd.f32 %v869_v35, %v807_v34  ;;  %v811_v10 = vmul.f32 %v1811_v63, %v1811_v63 }
 0x122   : > { %v736_v58 = vadd.f32 %v735_v2, %v1795_v55  ;;  %v871_v54 = vadd.f32 %v870_v39, %v808_v62  ;;  %v812_v2 = vmul.f32 %v1819_v3, %v1819_v3 }
 0x124   : > { %v737_v43 = vadd.f32 %v736_v58, %v1803_v59  ;;  %v872_v30 = vadd.f32 %v871_v54, %v809_v26  ;;  %v813_v58 = vmul.f32 %v1827_v7, %v1827_v7  ;;  %v815_v26 = vmul.f32 %v1843_v15, %v1843_v15 }
 0x126   : > { %v738_v22 = vadd.f32 %v737_v43, %v1811_v63  ;;  %v873_v14 = vadd.f32 %v872_v30, %v810_v18  ;;  %v814_v43 = vmul.f32 %v1835_v11, %v1835_v11  ;;  %v816_v30 = vmul.f32 %v1851_v19, %v1851_v19 }
 0x128   : > { %v739_v6 = vadd.f32 %v738_v22, %v1819_v3  ;;  %v874_v34 = vadd.f32 %v873_v14, %v811_v10  ;;  %v817_v14 = vmul.f32 %v1859_v23, %v1859_v23 }
 0x12a   : > { %v740_v35 = vadd.f32 %v739_v6, %v1827_v7  ;;  %v875_v62 = vadd.f32 %v874_v34, %v812_v2  ;;  %v818_v34 = vmul.f32 %v1867_v27, %v1867_v27 }
 0x12c   : > { %v741_v39 = vadd.f32 %v740_v35, %v1835_v11  ;;  %v876_v22 = vadd.f32 %v875_v62, %v813_v58  ;;  %v819_v62 = vmul.f32 %v1875_v31, %v1875_v31 }
 0x12e   : > { %v742_v54 = vadd.f32 %v741_v39, %v1843_v15  ;;  %v877_v6 = vadd.f32 %v876_v22, %v814_v43  ;;  %v820_v22 = vmul.f32 %v1757_v36, %v1757_v36 }
 0x130   : > { %v743_v18 = vadd.f32 %v742_v54, %v1851_v19  ;;  %v878_v35 = vadd.f32 %v877_v6, %v815_v26  ;;  %v821_v6 = vmul.f32 %v1765_v40, %v1765_v40 }
 0x132   : > { %v744_v10 = vadd.f32 %v743_v18, %v1859_v23  ;;  %v879_v39 = vadd.f32 %v878_v35, %v816_v30  ;;  %v822_v35 = vmul.f32 %v1773_v44, %v1773_v44 }
 0x134   : > { %v745_v2 = vadd.f32 %v744_v10, %v1867_v27  ;;  %v880_v54 = vadd.f32 %v879_v39, %v817_v14  ;;  %v823_v39 = vmul.f32 %v1781_v48, %v1781_v48 }
 0x136   : > { %v746_v58 = vadd.f32 %v745_v2, %v1875_v31  ;;  %v881_v18 = vadd.f32 %v880_v54, %v818_v34  ;;  %v824_v54 = vmul.f32 %v1789_v52, %v1789_v52 }
 0x138   : > { %v747_v43 = vadd.f32 %v746_v58, %v1757_v36  ;;  %v882_v10 = vadd.f32 %v881_v18, %v819_v62  ;;  %v825_v18 = vmul.f32 %v1797_v56, %v1797_v56 }
 0x13a   : > { %v748_v26 = vadd.f32 %v747_v43, %v1765_v40  ;;  %v883_v2 = vadd.f32 %v882_v10, %v820_v22  ;;  %v826_v10 = vmul.f32 %v1805_v60, %v1805_v60 }
 0x13c   : > { %v749_v30 = vadd.f32 %v748_v26, %v1773_v44  ;;  %v884_v58 = vadd.f32 %v883_v2, %v821_v6  ;;  %v827_v2 = vmul.f32 %v1813_v0, %v1813_v0 }
 0x13e   : > { %v750_v14 = vadd.f32 %v749_v30, %v1781_v48  ;;  %v885_v43 = vadd.f32 %v884_v58, %v822_v35  ;;  %v828_v58 = vmul.f32 %v1821_v4, %v1821_v4 }
 0x140   : > { %v751_v34 = vadd.f32 %v750_v14, %v1789_v52  ;;  %v886_v26 = vadd.f32 %v885_v43, %v823_v39  ;;  %v829_v43 = vmul.f32 %v1829_v8, %v1829_v8 }
 0x142   : > { %v752_v62 = vadd.f32 %v751_v34, %v1797_v56  ;;  %v887_v30 = vadd.f32 %v886_v26, %v824_v54  ;;  %v830_v26 = vmul.f32 %v1837_v12, %v1837_v12 }
 0x144   : > { %v753_v22 = vadd.f32 %v752_v62, %v1805_v60  ;;  %v888_v14 = vadd.f32 %v887_v30, %v825_v18  ;;  %v831_v30 = vmul.f32 %v1845_v16, %v1845_v16 }
 0x146   : > { %v754_v6 = vadd.f32 %v753_v22, %v1813_v0  ;;  %v889_v34 = vadd.f32 %v888_v14, %v826_v10  ;;  %v832_v14 = vmul.f32 %v1853_v20, %v1853_v20 }
 0x148   : > { %v755_v35 = vadd.f32 %v754_v6, %v1821_v4  ;;  %v890_v62 = vadd.f32 %v889_v34, %v827_v2  ;;  %v833_v34 = vmul.f32 %v1861_v24, %v1861_v24 }
 0x14a   : > { %v756_v39 = vadd.f32 %v755_v35, %v1829_v8  ;;  %v891_v22 = vadd.f32 %v890_v62, %v828_v58  ;;  %v834_v62 = vmul.f32 %v1869_v28, %v1869_v28 }
 0x14c   : > { %v757_v54 = vadd.f32 %v756_v39, %v1837_v12  ;;  %v892_v6 = vadd.f32 %v891_v22, %v829_v43  ;;  %v835_v22 = vmul.f32 %v1877_v32, %v1877_v32 }
 0x14e   : > { %v758_v18 = vadd.f32 %v757_v54, %v1845_v16  ;;  %v893_v35 = vadd.f32 %v892_v6, %v830_v26  ;;  %v836_v6 = vmul.f32 %v1759_v37, %v1759_v37 }
 0x150   : > { %v759_v10 = vadd.f32 %v758_v18, %v1853_v20  ;;  %v894_v39 = vadd.f32 %v893_v35, %v831_v30  ;;  %v837_v35 = vmul.f32 %v1767_v41, %v1767_v41 }
 0x152   : > { %v760_v2 = vadd.f32 %v759_v10, %v1861_v24  ;;  %v895_v54 = vadd.f32 %v894_v39, %v832_v14  ;;  %v838_v39 = vmul.f32 %v1775_v45, %v1775_v45 }
 0x154   : > { %v761_v58 = vadd.f32 %v760_v2, %v1869_v28  ;;  %v896_v18 = vadd.f32 %v895_v54, %v833_v34  ;;  %v839_v54 = vmul.f32 %v1783_v49, %v1783_v49 }
 0x156   : > { %v762_v43 = vadd.f32 %v761_v58, %v1877_v32  ;;  %v897_v10 = vadd.f32 %v896_v18, %v834_v62  ;;  %v840_v18 = vmul.f32 %v1791_v53, %v1791_v53 }
 0x158   : > { %v763_v26 = vadd.f32 %v762_v43, %v1759_v37  ;;  %v898_v2 = vadd.f32 %v897_v10, %v835_v22  ;;  %v841_v10 = vmul.f32 %v1799_v57, %v1799_v57 }
 0x15a   : > { %v764_v30 = vadd.f32 %v763_v26, %v1767_v41  ;;  %v899_v58 = vadd.f32 %v898_v2, %v836_v6  ;;  %v842_v2 = vmul.f32 %v1807_v61, %v1807_v61 }
 0x15c   : > { %v765_v14 = vadd.f32 %v764_v30, %v1775_v45  ;;  %v900_v43 = vadd.f32 %v899_v58, %v837_v35  ;;  %v843_v58 = vmul.f32 %v1815_v1, %v1815_v1 }
 0x15e   : > { %v766_v34 = vadd.f32 %v765_v14, %v1783_v49  ;;  %v901_v26 = vadd.f32 %v900_v43, %v838_v39  ;;  %v844_v43 = vmul.f32 %v1823_v5, %v1823_v5 }
 0x160   : > { %v767_v62 = vadd.f32 %v766_v34, %v1791_v53  ;;  %v902_v30 = vadd.f32 %v901_v26, %v839_v54  ;;  %v845_v26 = vmul.f32 %v1831_v9, %v1831_v9 }
 0x162   : > { %v768_v22 = vadd.f32 %v767_v62, %v1799_v57  ;;  %v903_v14 = vadd.f32 %v902_v30, %v840_v18  ;;  %v846_v30 = vmul.f32 %v1839_v13, %v1839_v13 }
 0x164   : > { %v769_v6 = vadd.f32 %v768_v22, %v1807_v61  ;;  %v904_v34 = vadd.f32 %v903_v14, %v841_v10  ;;  %v847_v14 = vmul.f32 %v1847_v17, %v1847_v17 }
 0x166   : > { %v770_v35 = vadd.f32 %v769_v6, %v1815_v1  ;;  %v905_v62 = vadd.f32 %v904_v34, %v842_v2  ;;  %v848_v34 = vmul.f32 %v1855_v21, %v1855_v21 }
 0x168   : > { %v771_v39 = vadd.f32 %v770_v35, %v1823_v5  ;;  %v906_v22 = vadd.f32 %v905_v62, %v843_v58  ;;  %v849_v62 = vmul.f32 %v1863_v25, %v1863_v25 }
 0x16a   : > { %v772_v54 = vadd.f32 %v771_v39, %v1831_v9  ;;  %v907_v6 = vadd.f32 %v906_v22, %v844_v43  ;;  %v850_v22 = vmul.f32 %v1871_v29, %v1871_v29 }
 0x16c   : > { %v773_v18 = vadd.f32 %v772_v54, %v1839_v13  ;;  %v908_v35 = vadd.f32 %v907_v6, %v845_v26  ;;  %v851_v6 = vmul.f32 %v1879_v33, %v1879_v33 }
 0x16e   : > { %v774_v10 = vadd.f32 %v773_v18, %v1847_v17  ;;  %v909_v39 = vadd.f32 %v908_v35, %v846_v30  ;;  %v852_v35 = vmul.f32 %v1761_v38, %v1761_v38 }
 0x170   : > { %v775_v2 = vadd.f32 %v774_v10, %v1855_v21  ;;  %v910_v54 = vadd.f32 %v909_v39, %v847_v14  ;;  %v853_v39 = vmul.f32 %v1769_v42, %v1769_v42 }
 0x172   : > { %v776_v58 = vadd.f32 %v775_v2, %v1863_v25  ;;  %v911_v18 = vadd.f32 %v910_v54, %v848_v34  ;;  %v854_v54 = vmul.f32 %v1777_v46, %v1777_v46 }
 0x174   : > { %v777_v43 = vadd.f32 %v776_v58, %v1871_v29  ;;  %v912_v10 = vadd.f32 %v911_v18, %v849_v62  ;;  %v855_v18 = vmul.f32 %v1785_v50, %v1785_v50 }
 0x176   : > { %v778_v26 = vadd.f32 %v777_v43, %v1879_v33  ;;  %v913_v2 = vadd.f32 %v912_v10, %v850_v22 }
 0x178   : > { %v779_v30 = vadd.f32 %v778_v26, %v1761_v38  ;;  %v914_v58 = vadd.f32 %v913_v2, %v851_v6  ;;  %v2538_v38 = vld [vmem:[#allocation13_spill] sm:$0xff] }
 0x179   : > { %v856_v10 = vmul.f32 %v2538_v38, %v2538_v38 }
 0x17a   : > { %v780_v14 = vadd.f32 %v779_v30, %v1769_v42  ;;  %v915_v43 = vadd.f32 %v914_v58, %v852_v35  ;;  %v2539_v42 = vld [vmem:[#allocation14_spill] sm:$0xff] }
 0x17b   : > { %v857_v2 = vmul.f32 %v2539_v42, %v2539_v42 }
 0x17c   : > { %v781_v34 = vadd.f32 %v780_v14, %v1777_v46  ;;  %v916_v26 = vadd.f32 %v915_v43, %v853_v39  ;;  %v2540_v46 = vld [vmem:[#allocation15_spill] sm:$0xff] }
 0x17d   : > { %v858_v58 = vmul.f32 %v2540_v46, %v2540_v46 }
 0x17e   : > { %v782_v62 = vadd.f32 %v781_v34, %v1785_v50  ;;  %v917_v30 = vadd.f32 %v916_v26, %v854_v54  ;;  %v2541_v50 = vld [vmem:[#allocation16_spill] sm:$0xff] }
 0x17f   : > { %v859_v43 = vmul.f32 %v2541_v50, %v2541_v50 }
 0x180   : > { %v783_v22 = vadd.f32 %v782_v62, %v2538_v38  ;;  %v918_v14 = vadd.f32 %v917_v30, %v855_v18  ;;  %v2542_v38 = vld [vmem:[#allocation17_spill] sm:$0xff] }
 0x181   : > { %v860_v26 = vmul.f32 %v2542_v38, %v2542_v38 }
 0x182   : > { %v784_v6 = vadd.f32 %v783_v22, %v2539_v42  ;;  %v919_v34 = vadd.f32 %v918_v14, %v856_v10  ;;  %v2543_v42 = vld [vmem:[#allocation18_spill] sm:$0xff] }
 0x183   : > { %v861_v30 = vmul.f32 %v2543_v42, %v2543_v42 }
 0x184   : > { %v785_v35 = vadd.f32 %v784_v6, %v2540_v46  ;;  %v920_v62 = vadd.f32 %v919_v34, %v857_v2  ;;  %v2544_v46 = vld [vmem:[#allocation19_spill] sm:$0xff] }
 0x185   : > { %v862_v14 = vmul.f32 %v2544_v46, %v2544_v46 }
 0x186   : > { %v786_v39 = vadd.f32 %v785_v35, %v2541_v50  ;;  %v921_v22 = vadd.f32 %v920_v62, %v858_v58  ;;  %v2545_v50 = vld [vmem:[#allocation21_spill] sm:$0xff] }
 0x187   : > { %v863_v34 = vmul.f32 %v2545_v50, %v2545_v50 }
 0x188   : > { %v787_v54 = vadd.f32 %v786_v39, %v2542_v38  ;;  %v922_v6 = vadd.f32 %v921_v22, %v859_v43  ;;  %v2546_v38 = vld [vmem:[#allocation23_spill] sm:$0xff] }
 0x189   : > { %v864_v62 = vmul.f32 %v2546_v38, %v2546_v38 }
 0x18a   : > { %v788_v18 = vadd.f32 %v787_v54, %v2543_v42  ;;  %v923_v35 = vadd.f32 %v922_v6, %v860_v26  ;;  %v2547_v42 = vld [vmem:[#allocation25_spill] sm:$0xff] }
 0x18b   : > { %v865_v22 = vmul.f32 %v2547_v42, %v2547_v42 }
 0x18c   : > { %v789_v10 = vadd.f32 %v788_v18, %v2544_v46  ;;  %v924_v39 = vadd.f32 %v923_v35, %v861_v30  ;;  %v2548_v46 = vld [vmem:[#allocation27_spill] sm:$0xff] }
 0x18d   : > { %v866_v6 = vmul.f32 %v2548_v46, %v2548_v46 }
 0x18e   : > { %v790_v2 = vadd.f32 %v789_v10, %v2545_v50  ;;  %v925_v54 = vadd.f32 %v924_v39, %v862_v14  ;;  %v2549_v50 = vld [vmem:[#allocation29_spill] sm:$0xff] }
 0x18f   : > { %v867_v35 = vmul.f32 %v2549_v50, %v2549_v50 }
 0x190   : > { %v791_v58 = vadd.f32 %v790_v2, %v2546_v38  ;;  %v926_v18 = vadd.f32 %v925_v54, %v863_v34 }
 0x192   : > { %v792_v43 = vadd.f32 %v791_v58, %v2547_v42  ;;  %v927_v10 = vadd.f32 %v926_v18, %v864_v62 }
 0x194   : > { %v793_v26 = vadd.f32 %v792_v43, %v2548_v46  ;;  %v928_v2 = vadd.f32 %v927_v10, %v865_v22  ;;  %v731_v43 = vld [vmem:[#allocation2] sm:$0x1] }
 0x196   : > { %v794_v30 = vadd.f32 %v793_v26, %v2549_v50  ;;  %v929_v14 = vadd.f32 %v928_v2, %v866_v6  ;;  %v803_v26 = vld [vmem:[#allocation3] sm:$0x1] }
 0x198   : > { %v795_v38 = vrot.slane %v794_v30, 4  ;;  %v930_v58 = vadd.f32 %v929_v14, %v867_v35 }
 0x19a   : > { %v796_v39 = vadd.f32 %v795_v38, %v794_v30  ;;  %v931_v29 = vrot.slane %v930_v58, 4 }
 0x19c   : > { %v797_v33 = vrot.slane %v796_v39, 2  ;;  %v932_v34 = vadd.f32 %v931_v29, %v930_v58 }
 0x19e   : > { %v798_v42 = vadd.f32 %v797_v33, %v796_v39  ;;  %v933_v25 = vrot.slane %v932_v34, 2 }
 0x1a0   : > { %v799_v54 = vrot.slane %v798_v42, 1  ;;  %v934_v46 = vadd.f32 %v933_v25, %v932_v34 }
 0x1a2   : > { %v800_v21 = vadd.f32 %v799_v54, %v798_v42  ;;  %v935_v18 = vrot.slane %v934_v46, 1 }
 0x1a4   : > { %v801_v62 = vadd.f32 %v800_v21, %v731_v43  ;;  %v936_v17 = vadd.f32 %v935_v18, %v934_v46 }
 0x1a6   : > { %802 = vst [vmem:[#allocation2] sm:$0x1] %v801_v62  ;;  %v937_v50 = vadd.f32 %v936_v17, %v803_v26 }
 0x1a8   : > { %938 = vst [vmem:[#allocation3] sm:$0x1] %v937_v50 }
 0x1a9 PF: > { %940 = sbr.rel (!%p214_p4) target bundleno = 465 (0x1d1), region = 48  ;;  %v948_v39 = vld [vmem:[%s2487_s2] sm:$0x1] (%p214_p4) }
 0x1aa   : > { %v961_v54 = vld [vmem:[%s2488_s3] sm:$0x1] (%p214_p4) }
 0x1ad   : > { %v941_v22 = vld [vmem:[#allocation2] sm:$0x1] (%p214_p4) }
 0x1ae   : > { %v943_v33 = vmul.f32 0.001953125, %v941_v22 }
 0x1af   : > { %v942_v6 = vld [vmem:[#allocation3] sm:$0x1] }
 0x1b0   : > { %v944_v29 = vmul.f32 0.001953125, %v942_v6  ;;  %v945_v10 = vmul.f32 %v943_v33, %v943_v33 }
 0x1b2   : > { %v946_v30 = vsub.f32 %v944_v29, %v945_v10 }
 0x1b4   : > { %v947_v35 = vmax.f32 %v946_v30, 0.0 }
 0x1b6   : > { %v949_v2 = vadd.f32 1e-05, %v947_v35 }
 0x1b8   : > { %1544 = vrsqrt.f32 %v949_v2  ;;  %vm956_vm1 = vweird.f32 %v949_v2 }
 0x1be   : > { %v1545_v21 = vpop.eup %1544 }
 0x1bf   : > { %v951_v25 = vmul.f32 %v1545_v21, %v949_v2  ;;  %vm957_vm2 = vweird.f32 %v1545_v21 }
 0x1c0   : > { %vm958_vm3 = vmor %vm956_vm1, %vm957_vm2 }
 0x1c1   : > { %v952_v38 = vmul.f32 %v1545_v21, %v951_v25 }
 0x1c3   : > { %v953_v14 = vmul.f32 0.5, %v952_v38 }
 0x1c5   : > { %v954_v17 = vsub.f32 1.5, %v953_v14 }
 0x1c7   : > { %v955_v58 = vmul.f32 %v1545_v21, %v954_v17 }
 0x1c9   : > { %v959_v42 = vsel %vm958_vm3, %v1545_v21, %v955_v58 }
 0x1ca   : > { %v960_v34 = vmul.f32 %v959_v42, %v948_v39 }
 0x1cc   : > { %964 = vst [vmem:[#allocation4] sm:$0x1] %v960_v34  ;;  %v962_v43 = vmul.f32 %v960_v34, %v943_v33 }
 0x1ce   : > { %v963_v46 = vsub.f32 %v961_v54, %v962_v43 }
 0x1d0   : > { %965 = vst [vmem:[#allocation5] sm:$0x1] %v963_v46 }
 0x1d1 PF: > { %p1473_p6 = scmp.ne.s32.totalorder %s1562_s15, 1 }
 0x1d3   : > { %969 = sbr.rel (%p1473_p6) target bundleno = 543 (0x21f), region = 52 }
 0x1d8   : > { %v2085_v62 = vld [vmem:[#allocation4] ss:$0 sm:$0xff]  ;;  %v2087_v18 = vld [vmem:[#allocation5] ss:$0 sm:$0xff]  ;;  %v2550_v26 = vld [vmem:[#allocation6_spill] sm:$0xff] }
 0x1d9   : > { %v974_v50 = vmul.f32 %v2085_v62, %v2550_v26  ;;  %v2551_v22 = vld [vmem:[#allocation8_spill] sm:$0xff]  ;;  %v2552_v29 = vld [vmem:[#allocation10_spill] sm:$0xff]  ;;  %v977_v33 = vmul.f32 %v2085_v62, %v1779_v47  ;;  %v978_v30 = vmul.f32 %v2085_v62, %v1787_v51  ;;  %v979_v35 = vmul.f32 %v2085_v62, %v1795_v55 }
 0x1da   : > { %v975_v6 = vmul.f32 %v2085_v62, %v2551_v22  ;;  %v976_v10 = vmul.f32 %v2085_v62, %v2552_v29  ;;  %v980_v2 = vmul.f32 %v2085_v62, %v1803_v59  ;;  %v981_v21 = vmul.f32 %v2085_v62, %v1811_v63 }
 0x1db   : > { %v1042_v25 = vadd.f32 %v2087_v18, %v974_v50  ;;  %v1045_v47 = vadd.f32 %v2087_v18, %v977_v33  ;;  %v1046_v17 = vadd.f32 %v2087_v18, %v978_v30  ;;  %v1047_v51 = vadd.f32 %v2087_v18, %v979_v35 }
 0x1dc   : > { %v1043_v38 = vadd.f32 %v2087_v18, %v975_v6  ;;  %v1044_v14 = vadd.f32 %v2087_v18, %v976_v10  ;;  %v1048_v59 = vadd.f32 %v2087_v18, %v980_v2  ;;  %v1049_v63 = vadd.f32 %v2087_v18, %v981_v21 }
 0x1dd   : > { %v1106_v39 = vmax.f32 %v1042_v25, 0.0  ;;  %v1109_v42 = vmax.f32 %v1045_v47, 0.0  ;;  %v1110_v34 = vmax.f32 %v1046_v17, 0.0  ;;  %v982_v54 = vmul.f32 %v2085_v62, %v1819_v3 }
 0x1de   : > { %v1107_v55 = vmax.f32 %v1043_v38, 0.0  ;;  %v1108_v58 = vmax.f32 %v1044_v14, 0.0  ;;  %v983_v43 = vmul.f32 %v2085_v62, %v1827_v7  ;;  %v984_v46 = vmul.f32 %v2085_v62, %v1835_v11 }
 0x1df   : > { %1170 = vst [vmem:[%s2489_s4] sm:$0xff] %v1106_v39  ;;  %v985_v26 = vmul.f32 %v2085_v62, %v1843_v15  ;;  %v1111_v50 = vmax.f32 %v1047_v51, 0.0  ;;  %v986_v22 = vmul.f32 %v2085_v62, %v1851_v19  ;;  %v987_v3 = vmul.f32 %v2085_v62, %v1859_v23 }
 0x1e0   : > { %1171 = vst [vmem:[%s2489_s4 + $0x8] sm:$0xff] %v1107_v55  ;;  %v988_v7 = vmul.f32 %v2085_v62, %v1867_v27  ;;  %v1112_v11 = vmax.f32 %v1048_v59, 0.0  ;;  %v1050_v15 = vadd.f32 %v2087_v18, %v982_v54  ;;  %v1051_v6 = vadd.f32 %v2087_v18, %v983_v43 }
 0x1e1   : > { %1172 = vst [vmem:[%s2489_s4 + $0x10] sm:$0xff] %v1108_v58  ;;  %v1052_v29 = vadd.f32 %v2087_v18, %v984_v46  ;;  %v1113_v19 = vmax.f32 %v1049_v63, 0.0  ;;  %v1053_v23 = vadd.f32 %v2087_v18, %v985_v26  ;;  %v989_v27 = vmul.f32 %v2085_v62, %v1875_v31 }
 0x1e2   : > { %1173 = vst [vmem:[%s2489_s4 + $0x18] sm:$0xff] %v1109_v42  ;;  %v1114_v10 = vmax.f32 %v1050_v15, 0.0  ;;  %v1054_v33 = vadd.f32 %v2087_v18, %v986_v22  ;;  %v1115_v30 = vmax.f32 %v1051_v6, 0.0  ;;  %v1055_v35 = vadd.f32 %v2087_v18, %v987_v3 }
 0x1e3   : > { %1174 = vst [vmem:[%s2489_s4 + $0x20] sm:$0xff] %v1110_v34  ;;  %v1056_v2 = vadd.f32 %v2087_v18, %v988_v7  ;;  %v1116_v31 = vmax.f32 %v1052_v29, 0.0  ;;  %v990_v21 = vmul.f32 %v2085_v62, %v1757_v36  ;;  %v991_v25 = vmul.f32 %v2085_v62, %v1765_v40 }
 0x1e4   : > { %1175 = vst [vmem:[%s2489_s4 + $0x28] sm:$0xff] %v1111_v50  ;;  %v992_v38 = vmul.f32 %v2085_v62, %v1773_v44  ;;  %v1117_v14 = vmax.f32 %v1053_v23, 0.0  ;;  %v1057_v47 = vadd.f32 %v2087_v18, %v989_v27  ;;  %v993_v17 = vmul.f32 %v2085_v62, %v1781_v48 }
 0x1e5   : > { %1176 = vst [vmem:[%s2489_s4 + $0x30] sm:$0xff] %v1112_v11  ;;  %v1118_v36 = vmax.f32 %v1054_v33, 0.0  ;;  %v1058_v40 = vadd.f32 %v2087_v18, %v990_v21  ;;  %v994_v44 = vmul.f32 %v2085_v62, %v1789_v52  ;;  %v1119_v51 = vmax.f32 %v1055_v35, 0.0 }
 0x1e6   : > { %1177 = vst [vmem:[%s2489_s4 + $0x38] sm:$0xff] %v1113_v19  ;;  %v1059_v39 = vadd.f32 %v2087_v18, %v991_v25  ;;  %v995_v48 = vmul.f32 %v2085_v62, %v1797_v56  ;;  %v1120_v55 = vmax.f32 %v1056_v2, 0.0  ;;  %v1060_v58 = vadd.f32 %v2087_v18, %v992_v38 }
 0x1e7   : > { %1178 = vst [vmem:[%s2489_s4 + $0x40] sm:$0xff] %v1114_v10  ;;  %v996_v52 = vmul.f32 %v2085_v62, %v1805_v60  ;;  %v1121_v59 = vmax.f32 %v1057_v47, 0.0  ;;  %v1061_v42 = vadd.f32 %v2087_v18, %v993_v17  ;;  %v997_v56 = vmul.f32 %v2085_v62, %v1813_v0 }
 0x1e8   : > { %1179 = vst [vmem:[%s2489_s4 + $0x48] sm:$0xff] %v1115_v30  ;;  %v1122_v34 = vmax.f32 %v1058_v40, 0.0  ;;  %v1062_v63 = vadd.f32 %v2087_v18, %v994_v44  ;;  %v998_v60 = vmul.f32 %v2085_v62, %v1821_v4  ;;  %v1123_v54 = vmax.f32 %v1059_v39, 0.0 }
 0x1e9   : > { %1180 = vst [vmem:[%s2489_s4 + $0x50] sm:$0xff] %v1116_v31  ;;  %v1063_v43 = vadd.f32 %v2087_v18, %v995_v48  ;;  %v999_v0 = vmul.f32 %v2085_v62, %v1829_v8  ;;  %v1124_v46 = vmax.f32 %v1060_v58, 0.0  ;;  %v1064_v26 = vadd.f32 %v2087_v18, %v996_v52 }
 0x1ea   : > { %1181 = vst [vmem:[%s2489_s4 + $0x58] sm:$0xff] %v1117_v14  ;;  %v1000_v4 = vmul.f32 %v2085_v62, %v1837_v12  ;;  %v1125_v50 = vmax.f32 %v1061_v42, 0.0  ;;  %v1065_v22 = vadd.f32 %v2087_v18, %v997_v56  ;;  %v1001_v8 = vmul.f32 %v2085_v62, %v1845_v16  ;;  %v2553_v56 = vld [vmem:[#allocation20_spill] sm:$0xff] }
 0x1eb   : > { %1182 = vst [vmem:[%s2489_s4 + $0x60] sm:$0xff] %v1118_v36  ;;  %v1126_v3 = vmax.f32 %v1062_v63, 0.0  ;;  %v1066_v7 = vadd.f32 %v2087_v18, %v998_v60  ;;  %v1002_v12 = vmul.f32 %v2085_v62, %v1853_v20  ;;  %v1127_v11 = vmax.f32 %v1063_v43, 0.0  ;;  %v2554_v60 = vld [vmem:[#allocation22_spill] sm:$0xff] }
 0x1ec   : > { %1183 = vst [vmem:[%s2489_s4 + $0x68] sm:$0xff] %v1119_v51  ;;  %v1067_v15 = vadd.f32 %v2087_v18, %v999_v0  ;;  %v1003_v16 = vmul.f32 %v2085_v62, %v1861_v24  ;;  %v1128_v6 = vmax.f32 %v1064_v26, 0.0  ;;  %v1068_v29 = vadd.f32 %v2087_v18, %v1000_v4  ;;  %v2555_v0 = vld [vmem:[#allocation24_spill] sm:$0xff] }
 0x1ed   : > { %1184 = vst [vmem:[%s2489_s4 + $0x70] sm:$0xff] %v1120_v55  ;;  %v1004_v20 = vmul.f32 %v2085_v62, %v1869_v28  ;;  %v1129_v19 = vmax.f32 %v1065_v22, 0.0  ;;  %v1069_v23 = vadd.f32 %v2087_v18, %v1001_v8  ;;  %v1005_v24 = vmul.f32 %v2085_v62, %v1877_v32 }
 0x1ee   : > { %1185 = vst [vmem:[%s2489_s4 + $0x78] sm:$0xff] %v1121_v59  ;;  %v1130_v27 = vmax.f32 %v1066_v7, 0.0  ;;  %v1070_v10 = vadd.f32 %v2087_v18, %v1002_v12  ;;  %v1006_v28 = vmul.f32 %v2085_v62, %v1759_v37  ;;  %v1131_v33 = vmax.f32 %v1067_v15, 0.0  ;;  %v2557_v7 = vld [vmem:[#allocation28_spill] sm:$0xff] }
 0x1ef   : > { %1186 = vst [vmem:[%s2489_s4 + $0x80] sm:$0xff] %v1122_v34  ;;  %v1071_v30 = vadd.f32 %v2087_v18, %v1003_v16  ;;  %v1007_v32 = vmul.f32 %v2085_v62, %v1767_v41  ;;  %v1132_v35 = vmax.f32 %v1068_v29, 0.0  ;;  %v1072_v2 = vadd.f32 %v2087_v18, %v1004_v20  ;;  %v2558_v16 = vld [vmem:[#allocation7_spill] sm:$0xff] }
 0x1f0   : > { %1187 = vst [vmem:[%s2489_s4 + $0x88] sm:$0xff] %v1123_v54  ;;  %v1008_v37 = vmul.f32 %v2085_v62, %v1775_v45  ;;  %v1133_v31 = vmax.f32 %v1069_v23, 0.0  ;;  %v1073_v21 = vadd.f32 %v2087_v18, %v1005_v24  ;;  %v1009_v41 = vmul.f32 %v2085_v62, %v1783_v49  ;;  %v2560_v24 = vld [vmem:[#allocation29_spill] sm:$0xff] }
 0x1f1   : > { %1188 = vst [vmem:[%s2489_s4 + $0x90] sm:$0xff] %v1124_v46  ;;  %v1134_v25 = vmax.f32 %v1070_v10, 0.0  ;;  %v1074_v38 = vadd.f32 %v2087_v18, %v1006_v28  ;;  %v1010_v45 = vmul.f32 %v2085_v62, %v1791_v53  ;;  %v1135_v14 = vmax.f32 %v1071_v30, 0.0 }
 0x1f2   : > { %1189 = vst [vmem:[%s2489_s4 + $0x98] sm:$0xff] %v1125_v50  ;;  %v1075_v47 = vadd.f32 %v2087_v18, %v1007_v32  ;;  %v1011_v49 = vmul.f32 %v2085_v62, %v1799_v57  ;;  %v1136_v17 = vmax.f32 %v1072_v2, 0.0  ;;  %v1076_v36 = vadd.f32 %v2087_v18, %v1008_v37  ;;  %v2556_v50 = vld [vmem:[#allocation26_spill] sm:$0xff]  ;;  %v2562_v2 = vld [vmem:[#allocation12_spill] sm:$0xff] }
 0x1f3   : > { %1190 = vst [vmem:[%s2489_s4 + $0xa0] sm:$0xff] %v1126_v3  ;;  %v1012_v53 = vmul.f32 %v2085_v62, %v1807_v61  ;;  %v1137_v40 = vmax.f32 %v1073_v21, 0.0  ;;  %v1077_v44 = vadd.f32 %v2087_v18, %v1009_v41  ;;  %v1013_v57 = vmul.f32 %v2085_v62, %v1815_v1 }
 0x1f4   : > { %1191 = vst [vmem:[%s2489_s4 + $0xa8] sm:$0xff] %v1127_v11  ;;  %v1138_v51 = vmax.f32 %v1074_v38, 0.0  ;;  %v1078_v39 = vadd.f32 %v2087_v18, %v1010_v45  ;;  %v1014_v61 = vmul.f32 %v2085_v62, %v1823_v5  ;;  %v1139_v48 = vmax.f32 %v1075_v47, 0.0  ;;  %v2564_v47 = vld [vmem:[#allocation14_spill] sm:$0xff] }
 0x1f5   : > { %1192 = vst [vmem:[%s2489_s4 + $0xb0] sm:$0xff] %v1128_v6  ;;  %v1079_v55 = vadd.f32 %v2087_v18, %v1011_v49  ;;  %v1015_v1 = vmul.f32 %v2085_v62, %v1831_v9  ;;  %v1140_v58 = vmax.f32 %v1076_v36, 0.0  ;;  %v1080_v52 = vadd.f32 %v2087_v18, %v1012_v53  ;;  %v2565_v53 = vld [vmem:[#allocation15_spill] sm:$0xff] }
 0x1f6   : > { %1193 = vst [vmem:[%s2489_s4 + $0xb8] sm:$0xff] %v1129_v19  ;;  %v1016_v5 = vmul.f32 %v2085_v62, %v1839_v13  ;;  %v1141_v59 = vmax.f32 %v1077_v44, 0.0  ;;  %v1081_v42 = vadd.f32 %v2087_v18, %v1013_v57  ;;  %v1017_v9 = vmul.f32 %v2085_v62, %v2553_v56  ;;  %v2559_v19 = vld [vmem:[#allocation9_spill] sm:$0xff] }
 0x1f7   : > { %1194 = vst [vmem:[%s2489_s4 + $0xc0] sm:$0xff] %v1130_v27  ;;  %v1142_v34 = vmax.f32 %v1078_v39, 0.0  ;;  %v1082_v63 = vadd.f32 %v2087_v18, %v1014_v61  ;;  %v1018_v13 = vmul.f32 %v2085_v62, %v2554_v60  ;;  %v1143_v54 = vmax.f32 %v1079_v55, 0.0  ;;  %v2567_v55 = vld [vmem:[#allocation17_spill] sm:$0xff] }
 0x1f8   : > { %1195 = vst [vmem:[%s2489_s4 + $0xc8] sm:$0xff] %v1131_v33  ;;  %v1083_v43 = vadd.f32 %v2087_v18, %v1015_v1  ;;  %v1019_v46 = vmul.f32 %v2085_v62, %v2555_v0  ;;  %v1144_v26 = vmax.f32 %v1080_v52, 0.0  ;;  %v1084_v4 = vadd.f32 %v2087_v18, %v1016_v5  ;;  %v2561_v33 = vld [vmem:[#allocation11_spill] sm:$0xff]  ;;  %v2568_v5 = vld [vmem:[#allocation18_spill] sm:$0xff] }
 0x1f9   : > { %1196 = vst [vmem:[%s2489_s4 + $0xd0] sm:$0xff] %v1132_v35  ;;  %v1020_v22 = vmul.f32 %v2085_v62, %v2556_v50  ;;  %v1145_v8 = vmax.f32 %v1081_v42, 0.0  ;;  %v1085_v3 = vadd.f32 %v2087_v18, %v1017_v9  ;;  %v1021_v12 = vmul.f32 %v2085_v62, %v2557_v7  ;;  %v2569_v9 = vld [vmem:[#allocation19_spill] sm:$0xff] }
 0x1fa   : > { %1197 = vst [vmem:[%s2489_s4 + $0xd8] sm:$0xff] %v1133_v31  ;;  %v1146_v11 = vmax.f32 %v1082_v63, 0.0  ;;  %v1086_v15 = vadd.f32 %v2087_v18, %v1018_v13  ;;  %v1022_v6 = vmul.f32 %v2085_v62, %v2558_v16  ;;  %v1147_v29 = vmax.f32 %v1083_v43, 0.0  ;;  %v2570_v13 = vld [vmem:[#allocation21_spill] sm:$0xff] }
 0x1fb   : > { %1198 = vst [vmem:[%s2489_s4 + $0xe0] sm:$0xff] %v1134_v25  ;;  %v1087_v20 = vadd.f32 %v2087_v18, %v1019_v46  ;;  %v1023_v23 = vmul.f32 %v2085_v62, %v2559_v19  ;;  %v1037_v27 = vmul.f32 %v2085_v62, %v2560_v24  ;;  %v1148_v10 = vmax.f32 %v1084_v4, 0.0  ;;  %v2563_v25 = vld [vmem:[#allocation13_spill] sm:$0xff]  ;;  %v2571_v46 = vld [vmem:[#allocation23_spill] sm:$0xff] }
 0x1fc   : > { %1199 = vst [vmem:[%s2489_s4 + $0xe8] sm:$0xff] %v1135_v14  ;;  %v1088_v28 = vadd.f32 %v2087_v18, %v1020_v22  ;;  %v1024_v30 = vmul.f32 %v2085_v62, %v2561_v33  ;;  %v1149_v32 = vmax.f32 %v1085_v3, 0.0  ;;  %v1089_v35 = vadd.f32 %v2087_v18, %v1021_v12  ;;  %v2572_v22 = vld [vmem:[#allocation25_spill] sm:$0xff]  ;;  %v2573_v12 = vld [vmem:[#allocation27_spill] sm:$0xff] }
 0x1fd   : > { %1200 = vst [vmem:[%s2489_s4 + $0xf0] sm:$0xff] %v1136_v17  ;;  %v1025_v37 = vmul.f32 %v2085_v62, %v2562_v2  ;;  %v2364_v31 = vadd.f32 %v2087_v18, %v1037_v27  ;;  %v1150_v21 = vmax.f32 %v1086_v15, 0.0  ;;  %v1090_v41 = vadd.f32 %v2087_v18, %v1022_v6 }
 0x1fe   : > { %1201 = vst [vmem:[%s2489_s4 + $0xf8] sm:$0xff] %v1137_v40  ;;  %v1026_v38 = vmul.f32 %v2085_v62, %v2563_v25  ;;  %v1151_v45 = vmax.f32 %v1087_v20, 0.0  ;;  %v1091_v14 = vadd.f32 %v2087_v18, %v1023_v23  ;;  %v1027_v49 = vmul.f32 %v2085_v62, %v2564_v47 }
 0x1ff   : > { %1202 = vst [vmem:[%s2489_s4 + $0x100] sm:$0xff] %v1138_v51  ;;  %v1152_v17 = vmax.f32 %v1088_v28, 0.0  ;;  %v1092_v36 = vadd.f32 %v2087_v18, %v1024_v30  ;;  %v1028_v40 = vmul.f32 %v2085_v62, %v2565_v53  ;;  %v1153_v44 = vmax.f32 %v1089_v35, 0.0  ;;  %v2566_v51 = vld [vmem:[#allocation16_spill] sm:$0xff] }
 0x200   : > { %1203 = vst [vmem:[%s2489_s4 + $0x108] sm:$0xff] %v1139_v48  ;;  %v1093_v57 = vadd.f32 %v2087_v18, %v1025_v37  ;;  %v1029_v39 = vmul.f32 %v2085_v62, %v2566_v51  ;;  %v1154_v61 = vmax.f32 %v1090_v41, 0.0  ;;  %v1094_v48 = vadd.f32 %v2087_v18, %v1026_v38 }
 0x201   : > { %1204 = vst [vmem:[%s2489_s4 + $0x110] sm:$0xff] %v1140_v58  ;;  %v1030_v1 = vmul.f32 %v2085_v62, %v2567_v55  ;;  %v1155_v58 = vmax.f32 %v1091_v14, 0.0  ;;  %v1095_v52 = vadd.f32 %v2087_v18, %v1027_v49  ;;  %v1156_v42 = vmax.f32 %v1092_v36, 0.0 }
 0x202   : > { %1205 = vst [vmem:[%s2489_s4 + $0x118] sm:$0xff] %v1141_v59  ;;  %v1031_v59 = vmul.f32 %v2085_v62, %v2568_v5  ;;  %v1096_v56 = vadd.f32 %v2087_v18, %v1028_v40  ;;  %v1157_v63 = vmax.f32 %v1093_v57, 0.0  ;;  %v1097_v60 = vadd.f32 %v2087_v18, %v1029_v39 }
 0x203   : > { %1206 = vst [vmem:[%s2489_s4 + $0x120] sm:$0xff] %v1142_v34  ;;  %v1032_v34 = vmul.f32 %v2085_v62, %v2569_v9  ;;  %v1158_v43 = vmax.f32 %v1094_v48, 0.0  ;;  %v1098_v0 = vadd.f32 %v2087_v18, %v1030_v1  ;;  %v1159_v4 = vmax.f32 %v1095_v52, 0.0 }
 0x204   : > { %1207 = vst [vmem:[%s2489_s4 + $0x128] sm:$0xff] %v1143_v54  ;;  %v1033_v54 = vmul.f32 %v2085_v62, %v2570_v13  ;;  %v1099_v50 = vadd.f32 %v2087_v18, %v1031_v59  ;;  %v1160_v3 = vmax.f32 %v1096_v56, 0.0  ;;  %v1161_v15 = vmax.f32 %v1097_v60, 0.0 }
 0x205   : > { %1208 = vst [vmem:[%s2489_s4 + $0x130] sm:$0xff] %v1144_v26  ;;  %v1034_v26 = vmul.f32 %v2085_v62, %v2571_v46  ;;  %v1100_v7 = vadd.f32 %v2087_v18, %v1032_v34  ;;  %v1162_v6 = vmax.f32 %v1098_v0, 0.0  ;;  %v1169_v28 = vmax.f32 %v2364_v31, 0.0 }
 0x206   : > { %1209 = vst [vmem:[%s2489_s4 + $0x138] sm:$0xff] %v1145_v8  ;;  %v1035_v8 = vmul.f32 %v2085_v62, %v2572_v22  ;;  %v1101_v16 = vadd.f32 %v2087_v18, %v1033_v54  ;;  %v1163_v20 = vmax.f32 %v1099_v50, 0.0 }
 0x207   : > { %1210 = vst [vmem:[%s2489_s4 + $0x140] sm:$0xff] %v1146_v11  ;;  %v1036_v11 = vmul.f32 %v2085_v62, %v2573_v12  ;;  %v1164_v19 = vmax.f32 %v1100_v7, 0.0 }
 0x208   : > { %1211 = vst [vmem:[%s2489_s4 + $0x148] sm:$0xff] %v1147_v29  ;;  %v1102_v29 = vadd.f32 %v2087_v18, %v1034_v26  ;;  %v1103_v62 = vadd.f32 %v2087_v18, %v1035_v8  ;;  %v1165_v24 = vmax.f32 %v1101_v16, 0.0 }
 0x209   : > { %1212 = vst [vmem:[%s2489_s4 + $0x150] sm:$0xff] %v1148_v10  ;;  %v1104_v23 = vadd.f32 %v2087_v18, %v1036_v11 }
 0x20a   : > { %1213 = vst [vmem:[%s2489_s4 + $0x158] sm:$0xff] %v1149_v32  ;;  %v1166_v27 = vmax.f32 %v1102_v29, 0.0  ;;  %v1167_v10 = vmax.f32 %v1103_v62, 0.0 }
 0x20b   : > { %1214 = vst [vmem:[%s2489_s4 + $0x160] sm:$0xff] %v1150_v21  ;;  %v1168_v18 = vmax.f32 %v1104_v23, 0.0 }
 0x20c   : > { %1215 = vst [vmem:[%s2489_s4 + $0x168] sm:$0xff] %v1151_v45 }
 0x20d   : > { %1216 = vst [vmem:[%s2489_s4 + $0x170] sm:$0xff] %v1152_v17 }
 0x20e   : > { %1217 = vst [vmem:[%s2489_s4 + $0x178] sm:$0xff] %v1153_v44 }
 0x20f   : > { %1218 = vst [vmem:[%s2489_s4 + $0x180] sm:$0xff] %v1154_v61 }
 0x210   : > { %1219 = vst [vmem:[%s2489_s4 + $0x188] sm:$0xff] %v1155_v58 }
 0x211   : > { %1220 = vst [vmem:[%s2489_s4 + $0x190] sm:$0xff] %v1156_v42 }
 0x212   : > { %1221 = vst [vmem:[%s2489_s4 + $0x198] sm:$0xff] %v1157_v63 }
 0x213   : > { %1222 = vst [vmem:[%s2489_s4 + $0x1a0] sm:$0xff] %v1158_v43 }
 0x214   : > { %1223 = vst [vmem:[%s2489_s4 + $0x1a8] sm:$0xff] %v1159_v4 }
 0x215   : > { %1224 = vst [vmem:[%s2489_s4 + $0x1b0] sm:$0xff] %v1160_v3 }
 0x216   : > { %1225 = vst [vmem:[%s2489_s4 + $0x1b8] sm:$0xff] %v1161_v15 }
 0x217   : > { %1226 = vst [vmem:[%s2489_s4 + $0x1c0] sm:$0xff] %v1162_v6 }
 0x218   : > { %1227 = vst [vmem:[%s2489_s4 + $0x1c8] sm:$0xff] %v1163_v20 }
 0x219   : > { %1228 = vst [vmem:[%s2489_s4 + $0x1d0] sm:$0xff] %v1164_v19 }
 0x21a   : > { %1229 = vst [vmem:[%s2489_s4 + $0x1d8] sm:$0xff] %v1165_v24 }
 0x21b   : > { %1230 = vst [vmem:[%s2489_s4 + $0x1e0] sm:$0xff] %v1166_v27 }
 0x21c   : > { %1231 = vst [vmem:[%s2489_s4 + $0x1e8] sm:$0xff] %v1167_v10 }
 0x21d   : > { %1232 = vst [vmem:[%s2489_s4 + $0x1f0] sm:$0xff] %v1168_v18 }
 0x21e   : > { %1233 = vst [vmem:[%s2489_s4 + $0x1f8] sm:$0xff] %v1169_v28 }
 0x21f PF: > { %s14_s17 = sadd.s32 1, %s1570_s17   ;;  %s2574_s15 = smov %s1566_s16 }
 0x220   : > { %p11_p7 = scmp.ge.s32.totalorder %s14_s17, 4   ;;  %s2575_s16 = smov %s2577_s18 }
 0x222   :  { %13 = sbr.rel (!%p11_p7) target bundleno = 2 (0x2), region = 82 }

</bundles_post_ra>
